<compile_context>
chip_gen: v5e
topology: v5e:2x2
jax: 0.10.0
libtpu: 0.0.40
codegen_flags: <defaults>
</compile_context>

<pallas_src>
import functools

import jax
import jax.numpy as jnp
from jax.experimental import pallas as pl
from jax.experimental.pallas import tpu as pltpu


def _dilated_knn_kernel(xs_ref, sqs_ref, xq_ref, sqq_ref, idx_ref, *,
                        k: int, dilation: int, tq: int, n_valid: int,
                        fast_skip: bool):
    """One (batch, query-row-tile) grid step.

    xs_ref:  (1, C, Np)  centered support, transposed (VMEM-resident over q)
    sqs_ref: (1, 1, Np)  support squared norms (lane-dense row)
    xq_ref:  (1, TQ, C)  centered query row tile
    sqq_ref: (1, TQ, 1)  query squared norms
    idx_ref: (1, TQ, k)  int32 neighbor indices, nearest first, already dilated
    """
    n_pad = xs_ref.shape[2]
    inf = jnp.float32(jnp.inf)

    xq = xq_ref[0]                                                   # (TQ, C)
    xs = xs_ref[0]                                                   # (C, Np)

    # d[r, j] = ||q_r||^2 + ||s_j||^2 - 2<q_r, s_j>  (same ordering as cdist).
    # The factor 2 is folded into the tiny (TQ, C) lhs, not a (TQ, Np) multiply.
    gram2 = jax.lax.dot_general(xq * 2, xs, (((1,), (0,)), ((), ())),
                                preferred_element_type=jnp.float32)  # (TQ, Np)
    d = sqq_ref[0] + (sqs_ref[0] - gram2)                            # (TQ, Np)

    col = jax.lax.broadcasted_iota(jnp.int32, (1, n_pad), 1)         # (1, Np)
    q_ids = pl.program_id(1) * tq + jax.lax.broadcasted_iota(
        jnp.int32, (tq, 1), 0)                                       # (TQ, 1)

    # Neighbor 0 is the query point itself (cdist self-distance is exactly 0):
    # store it directly (single-lane column store, no relayout) and mask the
    # self column plus any padded support columns.
    idx_ref[0, :, 0:1] = q_ids
    dd = jnp.where(col == q_ids, inf, d)
    if n_pad != n_valid:
        dd = jnp.where(col >= n_valid, inf, dd)

    def skip_by_value(_, acc):
        # Mask the current minimum by value only (half the passes of a full
        # argmin); exact duplicate distances are consumed together.
        return jnp.where(acc == jnp.min(acc, axis=-1, keepdims=True), inf, acc)

    def skip_by_index(_, acc):
        mval = jnp.min(acc, axis=-1, keepdims=True)
        amin = jnp.min(jnp.where(acc == mval, col, n_pad), axis=-1, keepdims=True)
        return jnp.where(col == amin, inf, acc)

    skip_body = skip_by_value if fast_skip else skip_by_index

    for j in range(1, k):                            # static, small (k ~ 9)
        if dilation > 1:
            # Consume the (dilation - 1) in-between neighbors; fori_loop keeps
            # the live set to one (TQ, Np) tile even when k*dilation is large.
            dd = jax.lax.fori_loop(0, dilation - 1, skip_body, dd,
                                   unroll=dilation <= 8)
        # Fused-argmin equivalent along the lane axis: min + masked-index + min.
        mval = jnp.min(dd, axis=-1, keepdims=True)                   # (TQ, 1)
        amin = jnp.min(jnp.where(dd == mval, col, n_pad),            # first tie
                       axis=-1, keepdims=True)                       # (TQ, 1) i32
        idx_ref[0, :, j:j + 1] = amin                                # column store
        if j < k - 1:
            dd = jnp.where(col == amin, inf, dd)


def _round_up(x: int, m: int) -> int:
    return ((x + m - 1) // m) * m


def _vmem_capacity_bytes() -> int:
    """Per-core VMEM capacity; conservative 64 MiB fallback (v7x per-TC)."""
    try:
        info = pltpu.get_tpu_info()
        for name in ("vmem_capacity_bytes", "vmem_bytes", "vmem_size_bytes"):
            cap = getattr(info, name, None)
            if cap:
                return int(cap)
    except Exception:
        pass
    return 64 * 1024 * 1024


def _pick_tq(n_pad: int, budget_bytes: int) -> int:
    """Largest 128-multiple divisor of n_pad whose ~6 live (TQ, Np) f32/i32
    selection-loop temporaries fit inside `budget_bytes`."""
    cap_rows = budget_bytes // (6 * 4 * n_pad)
    if n_pad <= cap_rows:
        return n_pad
    best = 128
    t = 128
    while t <= cap_rows:
        if n_pad % t == 0:
            best = t
        t += 128
    return best


def dilated_knn(query: jax.Array, *, k: int = 9, dilation: int = 1,
                tq: int | None = None, fast_skip: bool = True) -> jax.Array:
    """query: [B, N, C] float. Returns dilated-kNN indices [B, N, k] int32."""
    B, N, C = query.shape
    if k * dilation > N:
        raise ValueError(f"k*dilation={k * dilation} must be <= N={N}")

    n_pad = _round_up(N, 128)

    # Per-batch support preprocessing, hoisted out of the kernel. Centering
    # tames the catastrophic cancellation of ||q||^2+||s||^2-2<q,s> for clouds
    # far from the origin.
    xf = query.astype(jnp.float32)
    xc = xf - jnp.mean(xf, axis=1, keepdims=True)                    # (B, N, C)
    sq = jnp.sum(xc * xc, axis=-1)                                   # (B, N) f32
    if n_pad != N:
        xc = jnp.pad(xc, ((0, 0), (0, n_pad - N), (0, 0)))
        sq = jnp.pad(sq, ((0, 0), (0, n_pad - N)))
    # Native-bf16 MXU path if the caller hands us bf16 (squared norms stay f32).
    mm_dtype = jnp.bfloat16 if query.dtype == jnp.bfloat16 else jnp.float32
    xq_in = xc.astype(mm_dtype)                                      # (B, Np, C)
    xs_in = jnp.transpose(xc, (0, 2, 1)).astype(mm_dtype)            # (B, C, Np)
    sqs_in = sq[:, None, :]                                          # (B, 1, Np)
    sqq_in = sq[:, :, None]                                          # (B, Np, 1)

    # Generation-aware budgets: ~3/4 of per-core VMEM as the scoped limit,
    # ~1/3 as the live-temporary budget used to size the query tile.
    vmem_cap = _vmem_capacity_bytes()
    vmem_limit = (vmem_cap // 4) * 3
    if tq is None:
        tq = _pick_tq(n_pad, vmem_cap // 3)
        # Keep >= 2 query tiles for single-batch inputs so multi-TensorCore
        # parts (v7x) get parallel grid work on the q axis.
        if B == 1 and tq == n_pad and n_pad % 256 == 0:
            tq = n_pad // 2
    if tq != n_pad and (n_pad % tq != 0 or tq % 128 != 0):
        tq = n_pad                      # keep blocks legal: full rows or x128

    kernel = functools.partial(_dilated_knn_kernel, k=k, dilation=dilation,
                               tq=tq, n_valid=N, fast_skip=fast_skip)
    idx = pl.pallas_call(
        kernel,
        out_shape=jax.ShapeDtypeStruct((B, n_pad, k), jnp.int32),
        grid=(B, n_pad // tq),
        in_specs=[
            pl.BlockSpec((1, C, n_pad), lambda b, q: (b, 0, 0)),  # support (resident over q)
            pl.BlockSpec((1, 1, n_pad), lambda b, q: (b, 0, 0)),  # ||s||^2 lane row
            pl.BlockSpec((1, tq, C), lambda b, q: (b, q, 0)),     # query row tile
            pl.BlockSpec((1, tq, 1), lambda b, q: (b, q, 0)),     # ||q||^2 column
        ],
        out_specs=pl.BlockSpec((1, tq, k), lambda b, q: (b, q, 0)),
        compiler_params=pltpu.CompilerParams(
            dimension_semantics=("parallel", "parallel"),
            vmem_limit_bytes=int(vmem_limit),
        ),
    )(xs_in, sqs_in, xq_in, sqq_in)

    # PyTorch returns [B, N, k] after .transpose(1, 2)[:, :, ::dilation]; the
    # dilation slice already happened in-kernel and the output is row-major,
    # so only the padded rows need dropping.
    # TODO(synk): DenseDilated's stochastic=True training-time random-permutation
    # branch is host-side RNG control flow; only the deterministic path is implemented.
    return idx[:, :N, :] if n_pad != N else idx


if __name__ == "__main__":
    key = jax.random.PRNGKey(0)
    B, N, C = 2, 256, 16
    k, dilation = 4, 2

    # Offset away from the origin to exercise the centered-gram numerics.
    query = jax.random.normal(key, (B, N, C), dtype=jnp.float32) + 2.0

    idx = dilated_knn(query, k=k, dilation=dilation, tq=128)      # tiled: grid (B, 2)
    jax.block_until_ready(idx)
    idx_full = dilated_knn(query, k=k, dilation=dilation)         # auto-sized tiles
    jax.block_until_ready(idx_full)

    assert idx.shape == (B, N, k), idx.shape
    assert idx.dtype == jnp.int32, idx.dtype
    assert bool(jnp.array_equal(idx, idx_full)), "tiled vs untiled mismatch"

    # Neighbor 0 of every point is the point itself.
    self_idx = jnp.broadcast_to(jnp.arange(N, dtype=jnp.int32)[None, :], (B, N))
    assert bool(jnp.all(idx[:, :, 0] == self_idx))

    # Cross-check against a pure-JAX reference of the PyTorch pipeline
    # (cdist -> topk(largest=False) -> transpose -> ::dilation). Compare the
    # squared distances of the selected neighbors (robust to near-tie swaps).
    def ref_check(q, got, kk, dil):
        diff = q[:, :, None, :] - q[:, None, :, :]
        d_ref = jnp.sum(diff * diff, axis=-1)                        # (B, N, N)
        ref_idx = jnp.argsort(d_ref, axis=-1)[:, :, : kk * dil][:, :, ::dil]
        ref_d = jnp.take_along_axis(d_ref, ref_idx, axis=-1)
        got_d = jnp.take_along_axis(d_ref, got, axis=-1)
        assert bool(jnp.allclose(ref_d, got_d, atol=1e-3, rtol=1e-3)), (
            float(jnp.max(jnp.abs(ref_d - got_d))))

    ref_check(query, idx, k, dilation)

    # Non-128-multiple N exercises the padded-support-column path (and the
    # forced >=2 query tiles at B == 1).
    q2 = jax.random.normal(jax.random.PRNGKey(0), (1, 200, 8), jnp.float32) - 1.5
    idx2 = dilated_knn(q2, k=3, dilation=1)
    jax.block_until_ready(idx2)
    assert idx2.shape == (1, 200, 3), idx2.shape
    assert bool(jnp.all((idx2 >= 0) & (idx2 < 200)))
    ref_check(q2, idx2, 3, 1)

    print("KERNEL_OK")
</pallas_src>

<mosaic_0001>
module attributes {stable_mosaic.version = 11 : i64} {
  func.func @_dilated_knn_kernel(%arg0: i32, %arg1: i32, %arg2: memref<1x16x256xf32, #tpu.memory_space<vmem>>, %arg3: memref<1x1x256xf32, #tpu.memory_space<vmem>>, %arg4: memref<1x128x16xf32, #tpu.memory_space<vmem>>, %arg5: memref<1x128x1xf32, #tpu.memory_space<vmem>>, %arg6: memref<1x128x4xi32, #tpu.memory_space<vmem>>) attributes {dimension_semantics = [#tpu.dimension_semantics<parallel>, #tpu.dimension_semantics<parallel>], iteration_bounds = array<i64: 2, 2>, scalar_prefetch = 0 : i64, scratch_operands = 0 : i64, tpu.core_type = #tpu.core_type<tc>, window_params = [{transform_indices = @transform_0, window_bounds = array<i64: 1, 16, 256>}, {transform_indices = @transform_1, window_bounds = array<i64: 1, 1, 256>}, {transform_indices = @transform_2, window_bounds = array<i64: 1, 128, 16>}, {transform_indices = @transform_3, window_bounds = array<i64: 1, 128, 1>}, {transform_indices = @transform_4, window_bounds = array<i64: 1, 128, 4>}]} {
    %c0 = arith.constant 0 : index
    %c0_0 = arith.constant 0 : index
    %c0_1 = arith.constant 0 : index
    %0 = vector.load %arg4[%c0, %c0_0, %c0_1] : memref<1x128x16xf32, #tpu.memory_space<vmem>>, vector<1x128x16xf32>
    %1 = vector.shape_cast %0 : vector<1x128x16xf32> to vector<128x16xf32>
    %c0_2 = arith.constant 0 : index
    %c0_3 = arith.constant 0 : index
    %c0_4 = arith.constant 0 : index
    %2 = vector.load %arg2[%c0_2, %c0_3, %c0_4] : memref<1x16x256xf32, #tpu.memory_space<vmem>>, vector<1x16x256xf32>
    %3 = vector.shape_cast %2 : vector<1x16x256xf32> to vector<16x256xf32>
    %cst = arith.constant 2.000000e+00 : f32
    %4 = vector.broadcast %cst : f32 to vector<128x16xf32>
    %5 = arith.mulf %1, %4 : vector<128x16xf32>
    %cst_5 = arith.constant dense<0.000000e+00> : vector<128x256xf32>
    %6 = tpu.matmul %5, %3, %cst_5 {dimension_numbers = #tpu.dot_dimension_numbers<[1], [0], [0], [1], [0, 0, 1, 1], [], []>} : vector<128x16xf32>, vector<16x256xf32>, vector<128x256xf32> -> vector<128x256xf32>
    %c0_6 = arith.constant 0 : index
    %c0_7 = arith.constant 0 : index
    %c0_8 = arith.constant 0 : index
    %7 = vector.load %arg5[%c0_6, %c0_7, %c0_8] : memref<1x128x1xf32, #tpu.memory_space<vmem>>, vector<1x128x1xf32>
    %8 = vector.shape_cast %7 : vector<1x128x1xf32> to vector<128x1xf32>
    %c0_9 = arith.constant 0 : index
    %c0_10 = arith.constant 0 : index
    %c0_11 = arith.constant 0 : index
    %9 = vector.load %arg3[%c0_9, %c0_10, %c0_11] : memref<1x1x256xf32, #tpu.memory_space<vmem>>, vector<1x1x256xf32>
    %10 = vector.shape_cast %9 : vector<1x1x256xf32> to vector<1x256xf32>
    %11 = vector.broadcast %10 : vector<1x256xf32> to vector<128x256xf32>
    %12 = arith.subf %11, %6 : vector<128x256xf32>
    %13 = vector.broadcast %8 : vector<128x1xf32> to vector<128x256xf32>
    %14 = arith.addf %13, %12 : vector<128x256xf32>
    %15 = tpu.iota {dimensions = array<i32: 1>} : vector<1x256xi32>
    %c128_i32 = arith.constant 128 : i32
    %16 = arith.muli %arg1, %c128_i32 : i32
    %17 = tpu.iota {dimensions = array<i32: 0>} : vector<128x1xi32>
    %18 = vector.broadcast %16 : i32 to vector<128x1xi32>
    %19 = arith.addi %18, %17 : vector<128x1xi32>
    %c0_12 = arith.constant 0 : index
    %c0_13 = arith.constant 0 : index
    %c0_14 = arith.constant 0 : index
    %20 = vector.load %arg6[%c0_12, %c0_13, %c0_14] : memref<1x128x4xi32, #tpu.memory_space<vmem>>, vector<1x128x1xi32>
    %21 = vector.shape_cast %20 : vector<1x128x1xi32> to vector<128x1xi32>
    %22 = vector.shape_cast %19 : vector<128x1xi32> to vector<1x128x1xi32>
    tpu.vector_store %arg6[%c0_12, %c0_13, %c0_14], %22 {strides = array<i32>} : memref<1x128x4xi32, #tpu.memory_space<vmem>>, vector<1x128x1xi32>,
    %23 = vector.broadcast %15 : vector<1x256xi32> to vector<128x256xi32>
    %24 = vector.broadcast %19 : vector<128x1xi32> to vector<128x256xi32>
    %25 = arith.cmpi eq, %23, %24 : vector<128x256xi32>
    %cst_15 = arith.constant 0x7F800000 : f32
    %26 = vector.broadcast %cst_15 : f32 to vector<128x256xf32>
    %27 = arith.select %25, %26, %14 : vector<128x256xi1>, vector<128x256xf32>
    %cst_16 = arith.constant 0x7F800000 : f32
    %c0_i32 = arith.constant 0 : i32
    %cst_17 = arith.constant dense<0x7F800000> : vector<128xf32>
    %28 = vector.multi_reduction <minimumf>, %27, %cst_17 [1] : vector<128x256xf32> to vector<128xf32>
    %29 = vector.shape_cast %28 : vector<128xf32> to vector<128x1xf32>
    %30 = vector.broadcast %29 : vector<128x1xf32> to vector<128x256xf32>
    %31 = arith.cmpf oeq, %27, %30 : vector<128x256xf32>
    %32 = vector.broadcast %cst_16 : f32 to vector<128x256xf32>
    %33 = arith.select %31, %32, %27 : vector<128x256xi1>, vector<128x256xf32>
    %cst_18 = arith.constant dense<0x7F800000> : vector<128xf32>
    %34 = vector.multi_reduction <minimumf>, %33, %cst_18 [1] : vector<128x256xf32> to vector<128xf32>
    %35 = vector.shape_cast %34 : vector<128xf32> to vector<128x1xf32>
    %36 = vector.broadcast %35 : vector<128x1xf32> to vector<128x256xf32>
    %37 = arith.cmpf oeq, %33, %36 : vector<128x256xf32>
    %c256_i32 = arith.constant 256 : i32
    %38 = vector.shape_cast %15 : vector<1x256xi32> to vector<1x256xi32>
    %39 = vector.broadcast %38 : vector<1x256xi32> to vector<128x256xi32>
    %40 = vector.broadcast %c256_i32 : i32 to vector<128x256xi32>
    %41 = arith.select %37, %39, %40 : vector<128x256xi1>, vector<128x256xi32>
    %cst_19 = arith.constant dense<2147483647> : vector<128xi32>
    %42 = vector.multi_reduction <minsi>, %41, %cst_19 [1] : vector<128x256xi32> to vector<128xi32>
    %43 = vector.shape_cast %42 : vector<128xi32> to vector<128x1xi32>
    %c0_20 = arith.constant 0 : index
    %c0_21 = arith.constant 0 : index
    %c1 = arith.constant 1 : index
    %44 = vector.load %arg6[%c0_20, %c0_21, %c1] : memref<1x128x4xi32, #tpu.memory_space<vmem>>, vector<1x128x1xi32>
    %45 = vector.shape_cast %44 : vector<1x128x1xi32> to vector<128x1xi32>
    %46 = vector.shape_cast %43 : vector<128x1xi32> to vector<1x128x1xi32>
    tpu.vector_store %arg6[%c0_20, %c0_21, %c1], %46 {strides = array<i32>} : memref<1x128x4xi32, #tpu.memory_space<vmem>>, vector<1x128x1xi32>,
    %47 = vector.broadcast %15 : vector<1x256xi32> to vector<128x256xi32>
    %48 = vector.broadcast %43 : vector<128x1xi32> to vector<128x256xi32>
    %49 = arith.cmpi eq, %47, %48 : vector<128x256xi32>
    %cst_22 = arith.constant 0x7F800000 : f32
    %50 = vector.broadcast %cst_22 : f32 to vector<128x256xf32>
    %51 = arith.select %49, %50, %33 : vector<128x256xi1>, vector<128x256xf32>
    %cst_23 = arith.constant 0x7F800000 : f32
    %c0_i32_24 = arith.constant 0 : i32
    %cst_25 = arith.constant dense<0x7F800000> : vector<128xf32>
    %52 = vector.multi_reduction <minimumf>, %51, %cst_25 [1] : vector<128x256xf32> to vector<128xf32>
    %53 = vector.shape_cast %52 : vector<128xf32> to vector<128x1xf32>
    %54 = vector.broadcast %53 : vector<128x1xf32> to vector<128x256xf32>
    %55 = arith.cmpf oeq, %51, %54 : vector<128x256xf32>
    %56 = vector.broadcast %cst_23 : f32 to vector<128x256xf32>
    %57 = arith.select %55, %56, %51 : vector<128x256xi1>, vector<128x256xf32>
    %cst_26 = arith.constant dense<0x7F800000> : vector<128xf32>
    %58 = vector.multi_reduction <minimumf>, %57, %cst_26 [1] : vector<128x256xf32> to vector<128xf32>
    %59 = vector.shape_cast %58 : vector<128xf32> to vector<128x1xf32>
    %60 = vector.broadcast %59 : vector<128x1xf32> to vector<128x256xf32>
    %61 = arith.cmpf oeq, %57, %60 : vector<128x256xf32>
    %c256_i32_27 = arith.constant 256 : i32
    %62 = vector.shape_cast %15 : vector<1x256xi32> to vector<1x256xi32>
    %63 = vector.broadcast %62 : vector<1x256xi32> to vector<128x256xi32>
    %64 = vector.broadcast %c256_i32_27 : i32 to vector<128x256xi32>
    %65 = arith.select %61, %63, %64 : vector<128x256xi1>, vector<128x256xi32>
    %cst_28 = arith.constant dense<2147483647> : vector<128xi32>
    %66 = vector.multi_reduction <minsi>, %65, %cst_28 [1] : vector<128x256xi32> to vector<128xi32>
    %67 = vector.shape_cast %66 : vector<128xi32> to vector<128x1xi32>
    %c0_29 = arith.constant 0 : index
    %c0_30 = arith.constant 0 : index
    %c2 = arith.constant 2 : index
    %68 = vector.load %arg6[%c0_29, %c0_30, %c2] : memref<1x128x4xi32, #tpu.memory_space<vmem>>, vector<1x128x1xi32>
    %69 = vector.shape_cast %68 : vector<1x128x1xi32> to vector<128x1xi32>
    %70 = vector.shape_cast %67 : vector<128x1xi32> to vector<1x128x1xi32>
    tpu.vector_store %arg6[%c0_29, %c0_30, %c2], %70 {strides = array<i32>} : memref<1x128x4xi32, #tpu.memory_space<vmem>>, vector<1x128x1xi32>,
    %71 = vector.broadcast %15 : vector<1x256xi32> to vector<128x256xi32>
    %72 = vector.broadcast %67 : vector<128x1xi32> to vector<128x256xi32>
    %73 = arith.cmpi eq, %71, %72 : vector<128x256xi32>
    %cst_31 = arith.constant 0x7F800000 : f32
    %74 = vector.broadcast %cst_31 : f32 to vector<128x256xf32>
    %75 = arith.select %73, %74, %57 : vector<128x256xi1>, vector<128x256xf32>
    %cst_32 = arith.constant 0x7F800000 : f32
    %c0_i32_33 = arith.constant 0 : i32
    %cst_34 = arith.constant dense<0x7F800000> : vector<128xf32>
    %76 = vector.multi_reduction <minimumf>, %75, %cst_34 [1] : vector<128x256xf32> to vector<128xf32>
    %77 = vector.shape_cast %76 : vector<128xf32> to vector<128x1xf32>
    %78 = vector.broadcast %77 : vector<128x1xf32> to vector<128x256xf32>
    %79 = arith.cmpf oeq, %75, %78 : vector<128x256xf32>
    %80 = vector.broadcast %cst_32 : f32 to vector<128x256xf32>
    %81 = arith.select %79, %80, %75 : vector<128x256xi1>, vector<128x256xf32>
    %cst_35 = arith.constant dense<0x7F800000> : vector<128xf32>
    %82 = vector.multi_reduction <minimumf>, %81, %cst_35 [1] : vector<128x256xf32> to vector<128xf32>
    %83 = vector.shape_cast %82 : vector<128xf32> to vector<128x1xf32>
    %84 = vector.broadcast %83 : vector<128x1xf32> to vector<128x256xf32>
    %85 = arith.cmpf oeq, %81, %84 : vector<128x256xf32>
    %c256_i32_36 = arith.constant 256 : i32
    %86 = vector.shape_cast %15 : vector<1x256xi32> to vector<1x256xi32>
    %87 = vector.broadcast %86 : vector<1x256xi32> to vector<128x256xi32>
    %88 = vector.broadcast %c256_i32_36 : i32 to vector<128x256xi32>
    %89 = arith.select %85, %87, %88 : vector<128x256xi1>, vector<128x256xi32>
    %cst_37 = arith.constant dense<2147483647> : vector<128xi32>
    %90 = vector.multi_reduction <minsi>, %89, %cst_37 [1] : vector<128x256xi32> to vector<128xi32>
    %91 = vector.shape_cast %90 : vector<128xi32> to vector<128x1xi32>
    %c0_38 = arith.constant 0 : index
    %c0_39 = arith.constant 0 : index
    %c3 = arith.constant 3 : index
    %92 = vector.load %arg6[%c0_38, %c0_39, %c3] : memref<1x128x4xi32, #tpu.memory_space<vmem>>, vector<1x128x1xi32>
    %93 = vector.shape_cast %92 : vector<1x128x1xi32> to vector<128x1xi32>
    %94 = vector.shape_cast %91 : vector<128x1xi32> to vector<1x128x1xi32>
    tpu.vector_store %arg6[%c0_38, %c0_39, %c3], %94 {strides = array<i32>} : memref<1x128x4xi32, #tpu.memory_space<vmem>>, vector<1x128x1xi32>,
    return
  }
  func.func @transform_0(%arg0: i32, %arg1: i32) -> (i32, i32, i32) {
    %c0_i32 = arith.constant 0 : i32
    %c0_i32_0 = arith.constant 0 : i32
    %c0_i32_1 = arith.constant 0 : i32
    return %arg0, %c0_i32, %c0_i32_0 : i32, i32, i32
  }
  func.func @transform_1(%arg0: i32, %arg1: i32) -> (i32, i32, i32) {
    %c0_i32 = arith.constant 0 : i32
    %c0_i32_0 = arith.constant 0 : i32
    %c0_i32_1 = arith.constant 0 : i32
    return %arg0, %c0_i32, %c0_i32_0 : i32, i32, i32
  }
  func.func @transform_2(%arg0: i32, %arg1: i32) -> (i32, i32, i32) {
    %c0_i32 = arith.constant 0 : i32
    %c0_i32_0 = arith.constant 0 : i32
    return %arg0, %arg1, %c0_i32 : i32, i32, i32
  }
  func.func @transform_3(%arg0: i32, %arg1: i32) -> (i32, i32, i32) {
    %c0_i32 = arith.constant 0 : i32
    %c0_i32_0 = arith.constant 0 : i32
    return %arg0, %arg1, %c0_i32 : i32, i32, i32
  }
  func.func @transform_4(%arg0: i32, %arg1: i32) -> (i32, i32, i32) {
    %c0_i32 = arith.constant 0 : i32
    %c0_i32_0 = arith.constant 0 : i32
    return %arg0, %arg1, %c0_i32 : i32, i32, i32
  }
}

</mosaic_0001>

<bundles_post_ra>
// kernel: tpu_custom_call.1
= control target key start
LH: loop header
LB: loop body
LE: loop exit
PB: predicated region body
PF: predicated region fallthrough
CT: control target
= control target key end

     0   :  { %s2728_s15 = smov 0   ;;  %s2730_s16 = smov 0   ;;  %s4889_s0 = inlined_call_operand.vmem [shape: f32[2,16,256], index: 0, kind: input, shape index: {}]   ;;  %s4890_s1 = inlined_call_operand.vmem [shape: f32[2,1,256], index: 1, kind: input, shape index: {}]   ;;  %s4891_s2 = inlined_call_operand.vmem [shape: f32[2,256,16], index: 2, kind: input, shape index: {}]   ;;  %s4892_s3 = inlined_call_operand.vmem [shape: f32[2,256,1], index: 3, kind: input, shape index: {}]   ;;  %s4893_s4 = inlined_call_operand.vmem [shape: s32[2,256,4], index: 4, kind: output, shape index: {}]  }
   0x1   :  { %s2732_s17 = smov 0   ;;  %s2734_s18 = smov 0  }
   0x2   :  { %s2736_s19 = smov 0  }
   0x3 LB: > { %s23_s20 = sadd.s32 1, %s2692_s17  ;;  %s26_s21 = sadd.s32 1, %s2696_s18  ;;  %s2700_s19 = sphi %s2736_s19, %s14_s19   ;;  %s2696_s18 = sphi %s2734_s18, %s4963_s18   ;;  %s2692_s17 = sphi %s2732_s17, %s4962_s17   ;;  %s2688_s16 = sphi %s2730_s16, %s4961_s16   ;;  %s2684_s15 = sphi %s2728_s15, %s4960_s15  }
   0x4   : > { %p24_p0 = scmp.ge.s32.totalorder %s23_s20, 2  ;;  %p2565_p1 = scmp.ge.s32.totalorder %s2700_s19, 1 }
   0x5   : > { %p219_p2 = scmp.lt.s32.totalorder %s2700_s19, 5 }
   0x6   : > { %s4965_s20 = smov (%p24_p0, %s23_s20), 0  ;;  %s4967_s21 = smov (!%p24_p0, %s26_s21), %s2696_s18 }
   0x7   : > { %p220_p3 = pnand %p2565_p1, %p219_p2  ;;  %p28_p4 = scmp.ge.s32.totalorder %s4967_s21, 2 }
   0x9   : > { %s4969_s21 = smov (%p28_p4, %s4967_s21), 0  ;;  %223 = sbr.rel (%p220_p3) target bundleno = 1709 (0x6ad), region = 36 }
   0xe   : > { %p271_p5 = scmp.lt.s32.totalorder %s2688_s16, 1  ;;  %s2569_s22 = sshll.u32 %s2684_s15, 4  ;;  %v2702_v0 = vmov 0   ;;  %vm346_vm0 = vcmask 130048   ;;  %v691_v53 = vlaneseq  ;;  %vm729_vm1 = vcmask 7168  }
   0xf   : > { %2660 = vset.pattern.permute.xlu1 %v2702_v0  ;;  %2659 = vset.pattern.permute.xlu0 %v2702_v0  ;;  %p283_p6 = scmp.lt.s32.totalorder %s2569_s22, 31  ;;  %s2610_s9 = sshll.u32 %s2684_s15, 7 }
  0x10   : > { %s4971_s16 = smov (!%p271_p5, %s2688_s16), 1  ;;  %2661 = vset.pattern.permute.xlu2 %v2702_v0  ;;  %v2846_v54 = vshrl.u32 %v691_v53, 7  ;;  %v2848_v55 = vstv %s2610_s9 }
  0x11   : > { %s4973_s22 = smov (!%p283_p6, %s2569_s22), 31  ;;  %s2613_s23 = sshll.u32 %s4971_s16, 5 }
  0x12   : > { %s275_s26 = scalar_lea.vmem %s4889_s0, %s2613_s23  ;;  %s286_s27 = sadd.s32 %s2613_s23, %s4973_s22  ;;  %v704_v56 = vadd.s32 64, %v2846_v54  ;;  %v697_v57 = vadd.s32 8, %v2846_v54  ;;  %v713_v58 = vadd.s32 %v2848_v55, %v2846_v54  ;;  %v705_v61 = vadd.s32 72, %v2846_v54 }
  0x13   : > { %v328_v1 = vld [vmem:[%s275_s26 + $0x10] sm:$0xff]  ;;  %v329_v2 = vld [vmem:[%s275_s26 + $0x18] sm:$0xff]  ;;  %s2767_s28 = sshll.u32 %s286_s27, 3  ;;  %v326_v3 = vld [vmem:[%s275_s26] sm:$0xff]  ;;  %v698_v63 = vadd.s32 16, %v2846_v54  ;;  %s2568_s13 = sshll.u32 %s4971_s16, 1 }
  0x14   : > { %409 = vmatpush.msra.mxu0 %v328_v1  ;;  %2614 = vmatpush.msra.mxu2 %v328_v1  ;;  %s2773_s5 = scalar_lea.vmem %s4891_s2, %s2767_s28  ;;  %s2779_s8 = scalar_lea.vmem %s4892_s3, %s2767_s28  ;;  %v327_v4 = vld [vmem:[%s275_s26 + $0x8] sm:$0xff]  ;;  %v2861_v59 = vadd.s32 %v2848_v55, %v704_v56  ;;  %v2866_v60 = vadd.s32 %v2848_v55, %v697_v57  ;;  %v2876_v62 = vadd.s32 %v2848_v55, %v705_v61 }
  0x15   : > { %474 = vmatpush.msra.mxu1 %v329_v2  ;;  %2616 = vmatpush.msra.mxu3 %v329_v2  ;;  %v527_v5 = vld [vmem:[%s2779_s8 + $0x10] sm:$0xff]  ;;  %v525_v6 = vld [vmem:[%s2779_s8] sm:$0xff]  ;;  %v311_v12 = vld [vmem:[%s2773_s5 + $0x8] sm:$0xff]  ;;  %s2855_s12 = scalar_lea.vmem %s4893_s4, %s2767_s28  ;;  %v2883_v1 = vadd.s32 %v2848_v55, %v698_v63  ;;  %s279_s22 = scalar_lea.vmem %s4890_s1, %s2568_s13 }
  0x16   : > { %410 = vmatpush.msra.mxu0 %v326_v3  ;;  %2615 = vmatpush.msra.mxu2 %v326_v3  ;;  %v310_v7 = vld [vmem:[%s2773_s5] sm:$0xff]  ;;  %v319_v13 = vld [vmem:[%s2773_s5 + $0x48] sm:$0xff]  ;;  %v528_v14 = vld [vmem:[%s2779_s8 + $0x18] sm:$0xff]  ;;  %v331_v16 = vmul.f32 2.0, %v311_v12  ;;  %730 = vst.msk [vmem:[%s2855_s12] sm:$0xff] %vm729_vm1, %v713_v58  ;;  %v706_v3 = vadd.s32 80, %v2846_v54 }
  0x17   : > { %591 = vperm.xlu1 %2660, %v527_v5   ;;  %581 = vperm.xlu0 %2659, %v525_v6   ;;  %v330_v8 = vmul.f32 2.0, %v310_v7  ;;  %v318_v9 = vld [vmem:[%s2773_s5 + $0x40] sm:$0xff]  ;;  %v526_v15 = vld [vmem:[%s2779_s8 + $0x8] sm:$0xff]  ;;  %v339_v17 = vmul.f32 2.0, %v319_v13  ;;  %v312_v19 = vld [vmem:[%s2773_s5 + $0x10] sm:$0xff]  ;;  %738 = vst.msk [vmem:[%s2855_s12 + $0x40] sm:$0xff] %vm729_vm1, %v2861_v59 }
  0x18   : > { %475 = vmatpush.msra.mxu1 %v327_v4  ;;  %2617 = vmatpush.msra.mxu3 %v327_v4  ;;  %v338_v10 = vmul.f32 2.0, %v318_v9  ;;  %v529_v11 = vld [vmem:[%s2779_s8 + $0x20] sm:$0xff]  ;;  %v530_v18 = vld [vmem:[%s2779_s8 + $0x28] sm:$0xff]  ;;  %v320_v20 = vld [vmem:[%s2773_s5 + $0x50] sm:$0xff]  ;;  %v332_v23 = vmul.f32 2.0, %v312_v19  ;;  %731 = vst.msk [vmem:[%s2855_s12 + $0x8] sm:$0xff] %vm729_vm1, %v2866_v60  ;;  %v2896_v4 = vadd.s32 %v2848_v55, %v706_v3 }
  0x19   : > { %2578 = vmatmul.msk.f32.vlgmr.msra.gmra.mxu0 %vm346_vm0, %v330_v8  ;;  %2594 = vmatmul.msk.f32.vlgmr.msra.gmra.mxu1 %vm346_vm0, %v330_v8  ;;  %v532_v21 = vld [vmem:[%s2779_s8 + $0x38] sm:$0xff]  ;;  %v531_v22 = vld [vmem:[%s2779_s8 + $0x30] sm:$0xff]  ;;  %v340_v24 = vmul.f32 2.0, %v320_v20  ;;  %v533_v25 = vld [vmem:[%s2779_s8 + $0x40] sm:$0xff]  ;;  %739 = vst.msk [vmem:[%s2855_s12 + $0x48] sm:$0xff] %vm729_vm1, %v2876_v62  ;;  %v699_v5 = vadd.s32 24, %v2846_v54 }
  0x1a   : > { %2586 = vmatmul.msk.f32.vlgmr.msra.gmra.mxu2 %vm346_vm0, %v338_v10  ;;  %2602 = vmatmul.msk.f32.vlgmr.msra.gmra.mxu3 %vm346_vm0, %v338_v10  ;;  %v313_v26 = vld [vmem:[%s2773_s5 + $0x18] sm:$0xff]  ;;  %v535_v28 = vld [vmem:[%s2779_s8 + $0x50] sm:$0xff]  ;;  %v534_v29 = vld [vmem:[%s2779_s8 + $0x48] sm:$0xff]  ;;  %732 = vst.msk [vmem:[%s2855_s12 + $0x10] sm:$0xff] %vm729_vm1, %v2883_v1  ;;  %v2901_v8 = vand.u32 127, %v691_v53  ;;  %v709_v53 = vadd.s32 104, %v2846_v54 }
  0x1b   : > { %601 = vperm.xlu2 %2661, %v529_v11   ;;  %v321_v27 = vld [vmem:[%s2773_s5 + $0x58] sm:$0xff]  ;;  %v333_v30 = vmul.f32 2.0, %v313_v26  ;;  %v314_v33 = vld [vmem:[%s2773_s5 + $0x20] sm:$0xff]  ;;  %v538_v35 = vld [vmem:[%s2779_s8 + $0x68] sm:$0xff]  ;;  %740 = vst.msk [vmem:[%s2855_s12 + $0x50] sm:$0xff] %vm729_vm1, %v2896_v4  ;;  %v2907_v9 = vadd.s32 %v2848_v55, %v699_v5  ;;  %v702_v3 = vadd.s32 48, %v2846_v54 }
  0x1c   : > { %v341_v31 = vmul.f32 2.0, %v321_v27  ;;  %v536_v32 = vld [vmem:[%s2779_s8 + $0x58] sm:$0xff]  ;;  %v322_v34 = vld [vmem:[%s2773_s5 + $0x60] sm:$0xff]  ;;  %v334_v37 = vmul.f32 2.0, %v314_v33  ;;  %v539_v39 = vld [vmem:[%s2779_s8 + $0x70] sm:$0xff]  ;;  %v2917_v13 = vadd.s32 128, %v2901_v8  ;;  %vm746_vm2 = vcmp.eq.s32.totalorder %v2901_v8, %v713_v58 }
  0x1d   : > { %v537_v36 = vld [vmem:[%s2779_s8 + $0x60] sm:$0xff]  ;;  %v342_v38 = vmul.f32 2.0, %v322_v34  ;;  %v315_v40 = vld [vmem:[%s2773_s5 + $0x28] sm:$0xff]  ;;  %v540_v42 = vld [vmem:[%s2779_s8 + $0x78] sm:$0xff]  ;;  %733 = vst.msk [vmem:[%s2855_s12 + $0x18] sm:$0xff] %vm729_vm1, %v2907_v9  ;;  %vm762_vm4 = vcmp.eq.s32.totalorder %v2901_v8, %v2861_v59  ;;  %vm748_vm6 = vcmp.eq.s32.totalorder %v2901_v8, %v2866_v60  ;;  %vm764_vm8 = vcmp.eq.s32.totalorder %v2901_v8, %v2876_v62 }
  0x1e   : > { %v323_v41 = vld [vmem:[%s2773_s5 + $0x68] sm:$0xff]  ;;  %v335_v43 = vmul.f32 2.0, %v315_v40  ;;  %v316_v45 = vld [vmem:[%s2773_s5 + $0x30] sm:$0xff]  ;;  %v317_v49 = vld [vmem:[%s2773_s5 + $0x38] sm:$0xff]  ;;  %vm747_vm3 = vcmp.eq.s32.totalorder %v2917_v13, %v713_v58  ;;  %vm763_vm5 = vcmp.eq.s32.totalorder %v2917_v13, %v2861_v59  ;;  %vm749_vm7 = vcmp.eq.s32.totalorder %v2917_v13, %v2866_v60 }
  0x1f   : > { %596 = vperm.xlu1 %2660, %v528_v14   ;;  %586 = vperm.xlu0 %2659, %v526_v15   ;;  %v343_v44 = vmul.f32 2.0, %v323_v41  ;;  %v324_v46 = vld [vmem:[%s2773_s5 + $0x70] sm:$0xff]  ;;  %v336_v47 = vmul.f32 2.0, %v316_v45  ;;  %v325_v50 = vld [vmem:[%s2773_s5 + $0x78] sm:$0xff]  ;;  %v337_v51 = vmul.f32 2.0, %v317_v49  ;;  %v707_v15 = vadd.s32 88, %v2846_v54 }
  0x20   : > { %v344_v48 = vmul.f32 2.0, %v324_v46  ;;  %v345_v52 = vmul.f32 2.0, %v325_v50  ;;  %v541_v6 = vld [vmem:[%s279_s22] sm:$0x3]  ;;  %v701_v41 = vadd.s32 40, %v2846_v54  ;;  %vm765_vm9 = vcmp.eq.s32.totalorder %v2917_v13, %v2876_v62 }
  0x21   : > { %2579 = vmatmul.msk.f32.gmra.mxu0 %vm346_vm0, %v331_v16  ;;  %2595 = vmatmul.msk.f32.gmra.mxu1 %vm346_vm0, %v331_v16  ;;  %v2909_v11 = vperm.slane %v541_v6, 0  ;;  %v2911_v12 = vperm.slane %v541_v6, 1  ;;  %v2925_v20 = vadd.s32 %v2848_v55, %v707_v15  ;;  %vm750_vm10 = vcmp.eq.s32.totalorder %v2901_v8, %v2883_v1 }
  0x22   : > { %2587 = vmatmul.msk.f32.gmra.mxu2 %vm346_vm0, %v339_v17  ;;  %2603 = vmatmul.msk.f32.gmra.mxu3 %vm346_vm0, %v339_v17  ;;  %v2970_v46 = vadd.s32 %v2848_v55, %v701_v41  ;;  %vm766_vm11 = vcmp.eq.s32.totalorder %v2901_v8, %v2896_v4  ;;  %vm767_vm12 = vcmp.eq.s32.totalorder %v2917_v13, %v2896_v4 }
  0x23   : > { %606 = vperm.xlu2 %2661, %v530_v18   ;;  %741 = vst.msk [vmem:[%s2855_s12 + $0x58] sm:$0xff] %vm729_vm1, %v2925_v20  ;;  %vm751_vm13 = vcmp.eq.s32.totalorder %v2917_v13, %v2883_v1  ;;  %vm752_vm14 = vcmp.eq.s32.totalorder %v2901_v8, %v2907_v9  ;;  %vm753_vm15 = vcmp.eq.s32.totalorder %v2917_v13, %v2907_v9 }
  0x24   : > { %735 = vst.msk [vmem:[%s2855_s12 + $0x28] sm:$0xff] %vm729_vm1, %v2970_v46 }
  0x27   : > { %616 = vperm.xlu1 %2660, %v532_v21   ;;  %611 = vperm.xlu0 %2659, %v531_v22   ;;  %v700_v21 = vadd.s32 32, %v2846_v54 }
  0x29   : > { %2580 = vmatmul.msk.f32.gmra.mxu0 %vm346_vm0, %v332_v23  ;;  %2596 = vmatmul.msk.f32.gmra.mxu1 %vm346_vm0, %v332_v23 }
  0x2a   : > { %2588 = vmatmul.msk.f32.gmra.mxu2 %vm346_vm0, %v340_v24  ;;  %2604 = vmatmul.msk.f32.gmra.mxu3 %vm346_vm0, %v340_v24 }
  0x2b   : > { %621 = vperm.xlu2 %2661, %v533_v25   ;;  %v2936_v25 = vadd.s32 %v2848_v55, %v700_v21 }
  0x2d   : > { %734 = vst.msk [vmem:[%s2855_s12 + $0x20] sm:$0xff] %vm729_vm1, %v2936_v25 }
  0x2f   : > { %631 = vperm.xlu1 %2660, %v535_v28   ;;  %626 = vperm.xlu0 %2659, %v534_v29  }
  0x31   : > { %2581 = vmatmul.msk.f32.gmra.mxu0 %vm346_vm0, %v333_v30  ;;  %2597 = vmatmul.msk.f32.gmra.mxu1 %vm346_vm0, %v333_v30 }
  0x32   : > { %2589 = vmatmul.msk.f32.gmra.mxu2 %vm346_vm0, %v341_v31  ;;  %2605 = vmatmul.msk.f32.gmra.mxu3 %vm346_vm0, %v341_v31 }
  0x33   : > { %636 = vperm.xlu2 %2661, %v536_v32   ;;  %v708_v32 = vadd.s32 96, %v2846_v54 }
  0x35   : > { %v2959_v40 = vadd.s32 %v2848_v55, %v708_v32 }
  0x37   : > { %646 = vperm.xlu1 %2660, %v538_v35   ;;  %641 = vperm.xlu0 %2659, %v537_v36   ;;  %742 = vst.msk [vmem:[%s2855_s12 + $0x60] sm:$0xff] %vm729_vm1, %v2959_v40 }
  0x39   : > { %2582 = vmatmul.msk.f32.gmra.mxu0 %vm346_vm0, %v334_v37  ;;  %2598 = vmatmul.msk.f32.gmra.mxu1 %vm346_vm0, %v334_v37 }
  0x3a   : > { %2590 = vmatmul.msk.f32.gmra.mxu2 %vm346_vm0, %v342_v38  ;;  %2606 = vmatmul.msk.f32.gmra.mxu3 %vm346_vm0, %v342_v38 }
  0x3b   : > { %651 = vperm.xlu2 %2661, %v539_v39  }
  0x3f   : > { %656 = vperm.xlu0 %2659, %v540_v42  }
  0x41   : > { %2583 = vmatmul.msk.f32.gmra.mxu0 %vm346_vm0, %v335_v43  ;;  %2599 = vmatmul.msk.f32.gmra.mxu1 %vm346_vm0, %v335_v43 }
  0x42   : > { %2591 = vmatmul.msk.f32.gmra.mxu2 %vm346_vm0, %v343_v44  ;;  %2607 = vmatmul.msk.f32.gmra.mxu3 %vm346_vm0, %v343_v44 }
  0x49   : > { %2584 = vmatmul.msk.f32.gmra.mxu0 %vm346_vm0, %v336_v47  ;;  %2600 = vmatmul.msk.f32.gmra.mxu1 %vm346_vm0, %v336_v47 }
  0x4a   : > { %2592 = vmatmul.msk.f32.gmra.mxu2 %vm346_vm0, %v344_v48  ;;  %2608 = vmatmul.msk.f32.gmra.mxu3 %vm346_vm0, %v344_v48 }
  0x51   : > { %2585 = vmatmul.msk.f32.gmra.mxu0 %vm346_vm0, %v337_v51  ;;  %2601 = vmatmul.msk.f32.gmra.mxu1 %vm346_vm0, %v337_v51 }
  0x52   : > { %2593 = vmatmul.msk.f32.gmra.mxu2 %vm346_vm0, %v345_v52  ;;  %2609 = vmatmul.msk.f32.gmra.mxu3 %vm346_vm0, %v345_v52  ;;  %vm768_vm0 = vcmp.eq.s32.totalorder %v2901_v8, %v2925_v20 }
  0x75   : > { %v2886_v2 = vpop.permute.xlu2 %601 }
  0x7d   : > { %v2919_v14 = vpop.permute.xlu2 %606 }
  0x85   : > { %v622_v37 = vpop.permute.xlu2 %621 }
  0x89   : > { %v582_v0 = vpop.permute.xlu0 %581  ;;  %v2899_v7 = vpop.permute.xlu1 %591 }
  0x91   : > { %v587_v10 = vpop.permute.xlu0 %586  ;;  %v2933_v24 = vpop.permute.xlu1 %596 }
  0x96   : > { %v412_v16 = vpop.f32.mrf.mxu0  ;;  %v477_v17 = vpop.f32.mrf.mxu1 }
  0x97   : > { %v547_v18 = vsub.f32 %v2909_v11, %v412_v16  ;;  %v548_v19 = vsub.f32 %v2911_v12, %v477_v17  ;;  %v3008_v17 = vadd.s32 %v2848_v55, %v702_v3 }
  0x99   : > { %v659_v22 = vadd.f32 %v582_v0, %v547_v18  ;;  %v660_v23 = vadd.f32 %v582_v0, %v548_v19  ;;  %v2942_v28 = vpop.permute.xlu0 %611  ;;  %v2974_v50 = vpop.permute.xlu1 %616  ;;  %v2995_v0 = vadd.s32 %v2848_v55, %v709_v53  ;;  %736 = vst.msk [vmem:[%s2855_s12 + $0x30] sm:$0xff] %vm729_vm1, %v3008_v17 }
  0x9b   : > { %v2938_v26 = vsel %vm746_vm2, inf, %v659_v22  ;;  %v2940_v27 = vsel %vm747_vm3, inf, %v660_v23  ;;  %743 = vst.msk [vmem:[%s2855_s12 + $0x68] sm:$0xff] %vm729_vm1, %v2995_v0  ;;  %vm769_vm2 = vcmp.eq.s32.totalorder %v2917_v13, %v2925_v20  ;;  %vm754_vm3 = vcmp.eq.s32.totalorder %v2901_v8, %v2936_v25 }
  0x9c   : > { %v810_v29 = vmin.f32 %v2938_v26, %v2940_v27 }
  0x9d   : > { %v436_v30 = vpop.f32.mrf.mxu2  ;;  %v501_v31 = vpop.f32.mrf.mxu3 }
  0x9e   : > { %v563_v33 = vsub.f32 %v2909_v11, %v436_v30  ;;  %v564_v34 = vsub.f32 %v2911_v12, %v501_v31  ;;  %v480_v35 = vpop.f32.mrf.mxu1  ;;  %811 = vmin.xlane.f32.xlu1 %v810_v29  ;;  %v415_v36 = vpop.f32.mrf.mxu0 }
  0x9f   : > { %v550_v38 = vsub.f32 %v2911_v12, %v480_v35  ;;  %v549_v39 = vsub.f32 %v2909_v11, %v415_v36 }
  0xa0   : > { %v675_v42 = vadd.f32 %v622_v37, %v563_v33  ;;  %v676_v43 = vadd.f32 %v622_v37, %v564_v34 }
  0xa1   : > { %v662_v47 = vadd.f32 %v587_v10, %v550_v38  ;;  %v661_v48 = vadd.f32 %v587_v10, %v549_v39  ;;  %v627_v60 = vpop.permute.xlu0 %626  ;;  %v632_v34 = vpop.permute.xlu1 %631  ;;  %v703_v38 = vadd.s32 56, %v2846_v54 }
  0xa2   : > { %v2965_v44 = vsel %vm762_vm4, inf, %v675_v42  ;;  %v2967_v45 = vsel %vm763_vm5, inf, %v676_v43  ;;  %vm755_vm4 = vcmp.eq.s32.totalorder %v2917_v13, %v2936_v25  ;;  %vm771_vm5 = vcmp.eq.s32.totalorder %v2917_v13, %v2959_v40 }
  0xa3   : > { %v834_v49 = vmin.f32 %v2965_v44, %v2967_v45  ;;  %v2990_v61 = vsel %vm748_vm6, inf, %v661_v48  ;;  %v2992_v63 = vsel %vm749_vm7, inf, %v662_v47  ;;  %v3066_v1 = vadd.s32 %v2848_v55, %v703_v38 }
  0xa4   : > { %v813_v19 = vmin.f32 %v2990_v61, %v2992_v63  ;;  %vm756_vm6 = vcmp.eq.s32.totalorder %v2901_v8, %v2970_v46  ;;  %vm757_vm7 = vcmp.eq.s32.totalorder %v2917_v13, %v2970_v46 }
  0xa5   : > { %v504_v51 = vpop.f32.mrf.mxu3  ;;  %835 = vmin.xlane.f32.xlu2 %v834_v49  ;;  %v439_v52 = vpop.f32.mrf.mxu2  ;;  %737 = vst.msk [vmem:[%s2855_s12 + $0x38] sm:$0xff] %vm729_vm1, %v3066_v1 }
  0xa6   : > { %v566_v56 = vsub.f32 %v2911_v12, %v504_v51  ;;  %v565_v57 = vsub.f32 %v2909_v11, %v439_v52  ;;  %v418_v58 = vpop.f32.mrf.mxu0  ;;  %v483_v59 = vpop.f32.mrf.mxu1 }
  0xa7   : > { %v551_v10 = vsub.f32 %v2909_v11, %v418_v58  ;;  %v552_v15 = vsub.f32 %v2911_v12, %v483_v59  ;;  %v711_v59 = vadd.s32 120, %v2846_v54 }
  0xa8   : > { %v678_v5 = vadd.f32 %v627_v60, %v566_v56  ;;  %v677_v6 = vadd.f32 %v627_v60, %v565_v57 }
  0xa9   : > { %v663_v21 = vadd.f32 %v2899_v7, %v551_v10  ;;  %v664_v22 = vadd.f32 %v2899_v7, %v552_v15  ;;  %v710_v7 = vadd.s32 112, %v2846_v54  ;;  %v3097_v54 = vadd.s32 %v2848_v55, %v711_v59 }
  0xaa   : > { %v3003_v62 = vsel %vm764_vm8, inf, %v677_v6  ;;  %v3005_v16 = vsel %vm765_vm9, inf, %v678_v5  ;;  %v637_v6 = vpop.permute.xlu2 %636  ;;  %vm772_vm8 = vcmp.eq.s32.totalorder %v2901_v8, %v2995_v0  ;;  %vm773_vm9 = vcmp.eq.s32.totalorder %v2917_v13, %v2995_v0 }
  0xab   : > { %v837_v18 = vmin.f32 %v3003_v62, %v3005_v16  ;;  %v3037_v37 = vadd.s32 %v2848_v55, %v710_v7  ;;  %v3043_v42 = vsel %vm750_vm10, inf, %v663_v21  ;;  %v3048_v43 = vsel %vm751_vm13, inf, %v664_v22  ;;  %745 = vst.msk [vmem:[%s2855_s12 + $0x78] sm:$0xff] %vm729_vm1, %v3097_v54 }
  0xac   : > { %vm758_vm10 = vcmp.eq.s32.totalorder %v2901_v8, %v3008_v17 }
  0xad   : > { %v507_v23 = vpop.f32.mrf.mxu3  ;;  %838 = vmin.xlane.f32.xlu0 %v837_v18  ;;  %v442_v29 = vpop.f32.mrf.mxu2  ;;  %814 = vmin.xlane.f32.xlu2 %v813_v19  ;;  %744 = vst.msk [vmem:[%s2855_s12 + $0x70] sm:$0xff] %vm729_vm1, %v3037_v37  ;;  %vm770_vm1 = vcmp.eq.s32.totalorder %v2901_v8, %v2959_v40  ;;  %vm775_vm13 = vcmp.eq.s32.totalorder %v2917_v13, %v3037_v37 }
  0xae   : > { %v568_v30 = vsub.f32 %v2911_v12, %v507_v23  ;;  %v567_v31 = vsub.f32 %v2909_v11, %v442_v29  ;;  %v421_v32 = vpop.f32.mrf.mxu0  ;;  %v486_v33 = vpop.f32.mrf.mxu1 }
  0xaf   : > { %v553_v35 = vsub.f32 %v2909_v11, %v421_v32  ;;  %v554_v36 = vsub.f32 %v2911_v12, %v486_v33 }
  0xb0   : > { %v680_v39 = vadd.f32 %v632_v34, %v568_v30  ;;  %v679_v41 = vadd.f32 %v632_v34, %v567_v31 }
  0xb1   : > { %v665_v47 = vadd.f32 %v2933_v24, %v553_v35  ;;  %v666_v48 = vadd.f32 %v2933_v24, %v554_v36  ;;  %v816_v24 = vmin.f32 %v3043_v42, %v3048_v43  ;;  %v642_v35 = vpop.permute.xlu0 %641 }
  0xb2   : > { %v3058_v49 = vsel %vm766_vm11, inf, %v679_v41  ;;  %v3063_v51 = vsel %vm767_vm12, inf, %v680_v39  ;;  %vm759_vm11 = vcmp.eq.s32.totalorder %v2917_v13, %v3008_v17  ;;  %vm774_vm12 = vcmp.eq.s32.totalorder %v2901_v8, %v3037_v37 }
  0xb3   : > { %v840_v52 = vmin.f32 %v3058_v49, %v3063_v51  ;;  %v3075_v53 = vsel %vm752_vm14, inf, %v665_v47  ;;  %v3080_v4 = vsel %vm753_vm15, inf, %v666_v48  ;;  %vm760_vm14 = vcmp.eq.s32.totalorder %v2901_v8, %v3066_v1 }
  0xb4   : > { %v819_v56 = vmin.f32 %v3075_v53, %v3080_v4  ;;  %vm761_vm15 = vcmp.eq.s32.totalorder %v2917_v13, %v3066_v1 }
  0xb5   : > { %v445_v57 = vpop.f32.mrf.mxu2  ;;  %v510_v58 = vpop.f32.mrf.mxu3  ;;  %841 = vmin.xlane.f32.xlu1 %v840_v52  ;;  %817 = vmin.xlane.f32.xlu0 %v816_v24 }
  0xb6   : > { %v569_v60 = vsub.f32 %v2909_v11, %v445_v57  ;;  %v570_v3 = vsub.f32 %v2911_v12, %v510_v58  ;;  %v489_v9 = vpop.f32.mrf.mxu1  ;;  %820 = vmin.xlane.f32.xlu2 %v819_v56  ;;  %v424_v5 = vpop.f32.mrf.mxu0 }
  0xb7   : > { %v556_v10 = vsub.f32 %v2911_v12, %v489_v9  ;;  %v555_v15 = vsub.f32 %v2909_v11, %v424_v5  ;;  %v647_v5 = vpop.permute.xlu1 %646 }
  0xb8   : > { %v681_v18 = vadd.f32 %v637_v6, %v569_v60  ;;  %v682_v19 = vadd.f32 %v637_v6, %v570_v3 }
  0xb9   : > { %v668_v21 = vadd.f32 %v2886_v2, %v556_v10  ;;  %v667_v22 = vadd.f32 %v2886_v2, %v555_v15 }
  0xba   : > { %v3108_v23 = vsel %vm768_vm0, inf, %v681_v18  ;;  %v3110_v20 = vsel %vm769_vm2, inf, %v682_v19  ;;  %vm776_vm0 = vcmp.eq.s32.totalorder %v2901_v8, %v3097_v54  ;;  %vm777_vm2 = vcmp.eq.s32.totalorder %v2917_v13, %v3097_v54 }
  0xbb   : > { %v3112_v55 = vsel %vm754_vm3, inf, %v667_v22  ;;  %v3114_v29 = vsel %vm755_vm4, inf, %v668_v21  ;;  %v843_v7 = vmin.f32 %v3108_v23, %v3110_v20 }
  0xbc   : > { %v822_v25 = vmin.f32 %v3112_v55, %v3114_v29 }
  0xbd   : > { %v448_v30 = vpop.f32.mrf.mxu2  ;;  %v513_v31 = vpop.f32.mrf.mxu3 }
  0xbe   : > { %v571_v2 = vsub.f32 %v2909_v11, %v448_v30  ;;  %v572_v32 = vsub.f32 %v2911_v12, %v513_v31  ;;  %v492_v33 = vpop.f32.mrf.mxu1  ;;  %844 = vmin.xlane.f32.xlu2 %v843_v7  ;;  %823 = vmin.xlane.f32.xlu1 %v822_v25  ;;  %v427_v34 = vpop.f32.mrf.mxu0 }
  0xbf   : > { %v558_v36 = vsub.f32 %v2911_v12, %v492_v33  ;;  %v557_v38 = vsub.f32 %v2909_v11, %v427_v34 }
  0xc0   : > { %v683_v39 = vadd.f32 %v642_v35, %v571_v2  ;;  %v684_v41 = vadd.f32 %v642_v35, %v572_v32  ;;  %v652_v35 = vpop.permute.xlu2 %651 }
  0xc1   : > { %v670_v47 = vadd.f32 %v2919_v14, %v558_v36  ;;  %v669_v48 = vadd.f32 %v2919_v14, %v557_v38 }
  0xc2   : > { %v3134_v52 = vsel %vm770_vm1, inf, %v683_v39  ;;  %v3136_v24 = vsel %vm771_vm5, inf, %v684_v41 }
  0xc3   : > { %v846_v56 = vmin.f32 %v3134_v52, %v3136_v24  ;;  %v3140_v40 = vsel %vm756_vm6, inf, %v669_v48  ;;  %v3142_v57 = vsel %vm757_vm7, inf, %v670_v47 }
  0xc4   : > { %v825_v58 = vmin.f32 %v3140_v40, %v3142_v57 }
  0xc5   : > { %v451_v59 = vpop.f32.mrf.mxu2  ;;  %v516_v46 = vpop.f32.mrf.mxu3  ;;  %847 = vmin.xlane.f32.xlu0 %v846_v56 }
  0xc6   : > { %v573_v60 = vsub.f32 %v2909_v11, %v451_v59  ;;  %v574_v14 = vsub.f32 %v2911_v12, %v516_v46  ;;  %v495_v3 = vpop.f32.mrf.mxu1  ;;  %826 = vmin.xlane.f32.xlu2 %v825_v58  ;;  %v430_v9 = vpop.f32.mrf.mxu0 }
  0xc7   : > { %v560_v6 = vsub.f32 %v2911_v12, %v495_v3  ;;  %v559_v10 = vsub.f32 %v2909_v11, %v430_v9  ;;  %v657_v9 = vpop.permute.xlu0 %656 }
  0xc8   : > { %v685_v15 = vadd.f32 %v647_v5, %v573_v60  ;;  %v686_v18 = vadd.f32 %v647_v5, %v574_v14 }
  0xc9   : > { %v672_v19 = vadd.f32 %v2942_v28, %v560_v6  ;;  %v671_v21 = vadd.f32 %v2942_v28, %v559_v10 }
  0xca   : > { %v3160_v22 = vsel %vm772_vm8, inf, %v685_v15  ;;  %v3162_v7 = vsel %vm773_vm9, inf, %v686_v18 }
  0xcb   : > { %v849_v25 = vmin.f32 %v3160_v22, %v3162_v7  ;;  %v3166_v0 = vsel %vm758_vm10, inf, %v671_v21  ;;  %v3168_v30 = vsel %vm759_vm11, inf, %v672_v19 }
  0xcc   : > { %v828_v31 = vmin.f32 %v3166_v0, %v3168_v30 }
  0xcd   : > { %v454_v2 = vpop.f32.mrf.mxu2  ;;  %v519_v17 = vpop.f32.mrf.mxu3  ;;  %850 = vmin.xlane.f32.xlu1 %v849_v25 }
  0xce   : > { %v575_v32 = vsub.f32 %v2909_v11, %v454_v2  ;;  %v576_v28 = vsub.f32 %v2911_v12, %v519_v17  ;;  %v498_v33 = vpop.f32.mrf.mxu1  ;;  %829 = vmin.xlane.f32.xlu0 %v828_v31  ;;  %v433_v34 = vpop.f32.mrf.mxu0 }
  0xcf   : > { %v562_v36 = vsub.f32 %v2911_v12, %v498_v33  ;;  %v561_v38 = vsub.f32 %v2909_v11, %v433_v34 }
  0xd0   : > { %v687_v39 = vadd.f32 %v652_v35, %v575_v32  ;;  %v688_v41 = vadd.f32 %v652_v35, %v576_v28 }
  0xd1   : > { %v674_v47 = vadd.f32 %v2974_v50, %v562_v36  ;;  %v673_v48 = vadd.f32 %v2974_v50, %v561_v38 }
  0xd2   : > { %v3186_v56 = vsel %vm774_vm12, inf, %v687_v39  ;;  %v3188_v58 = vsel %vm775_vm13, inf, %v688_v41 }
  0xd3   : > { %v852_v59 = vmin.f32 %v3186_v56, %v3188_v58  ;;  %v3192_v37 = vsel %vm760_vm14, inf, %v673_v48  ;;  %v3194_v46 = vsel %vm761_vm15, inf, %v674_v47 }
  0xd4   : > { %v831_v60 = vmin.f32 %v3192_v37, %v3194_v46 }
  0xd5   : > { %v457_v14 = vpop.f32.mrf.mxu2  ;;  %v522_v1 = vpop.f32.mrf.mxu3  ;;  %853 = vmin.xlane.f32.xlu2 %v852_v59 }
  0xd6   : > { %v577_v3 = vsub.f32 %v2909_v11, %v457_v14  ;;  %v578_v50 = vsub.f32 %v2911_v12, %v522_v1  ;;  %832 = vmin.xlane.f32.xlu1 %v831_v60 }
  0xd8   : > { %v689_v5 = vadd.f32 %v657_v9, %v577_v3  ;;  %v690_v6 = vadd.f32 %v657_v9, %v578_v50 }
  0xda   : > { %v3204_v10 = vsel %vm776_vm0, inf, %v689_v5  ;;  %v3206_v15 = vsel %vm777_vm2, inf, %v690_v6 }
  0xdb   : > { %v855_v18 = vmin.f32 %v3204_v10, %v3206_v15 }
  0xdd   : > { %856 = vmin.xlane.f32.xlu0 %v855_v18 }
 0x111   : > { %v812_v11 = vpop.xlane.xlu1 %811 }
 0x112   : > { %vm858_vm3 = vcmp.eq.f32.partialorder %v2938_v26, %v812_v11  ;;  %vm859_vm4 = vcmp.eq.f32.partialorder %v2940_v27, %v812_v11 }
 0x113   : > { %v3213_v12 = vsel %vm858_vm3, inf, %v2938_v26  ;;  %v3216_v54 = vsel %vm859_vm4, inf, %v2940_v27 }
 0x114   : > { %v922_v19 = vmin.f32 %v3213_v12, %v3216_v54 }
 0x116   : > { %923 = vmin.xlane.f32.xlu1 %v922_v19 }
 0x118   : > { %v836_v21 = vpop.xlane.xlu2 %835 }
 0x119   : > { %vm874_vm1 = vcmp.eq.f32.partialorder %v2965_v44, %v836_v21  ;;  %vm875_vm5 = vcmp.eq.f32.partialorder %v2967_v45, %v836_v21 }
 0x11a   : > { %v3223_v25 = vsel %vm874_vm1, inf, %v2965_v44  ;;  %v3226_v31 = vsel %vm875_vm5, inf, %v2967_v45 }
 0x11b   : > { %v946_v26 = vmin.f32 %v3223_v25, %v3226_v31 }
 0x11d   : > { %947 = vmin.xlane.f32.xlu0 %v946_v26 }
 0x120   : > { %v839_v27 = vpop.xlane.xlu0 %838  ;;  %v815_v2 = vpop.xlane.xlu2 %814 }
 0x121   : > { %vm876_vm6 = vcmp.eq.f32.partialorder %v3003_v62, %v839_v27  ;;  %vm877_vm7 = vcmp.eq.f32.partialorder %v3005_v16, %v839_v27  ;;  %vm860_vm8 = vcmp.eq.f32.partialorder %v2990_v61, %v815_v2  ;;  %vm861_vm9 = vcmp.eq.f32.partialorder %v2992_v63, %v815_v2 }
 0x122   : > { %v3235_v44 = vsel %vm860_vm8, inf, %v2990_v61  ;;  %v3238_v45 = vsel %vm861_vm9, inf, %v2992_v63  ;;  %v3241_v17 = vsel %vm876_vm6, inf, %v3003_v62  ;;  %v3244_v32 = vsel %vm877_vm7, inf, %v3005_v16 }
 0x123   : > { %v925_v28 = vmin.f32 %v3235_v44, %v3238_v45  ;;  %v949_v33 = vmin.f32 %v3241_v17, %v3244_v32 }
 0x125   : > { %926 = vmin.xlane.f32.xlu2 %v925_v28  ;;  %950 = vmin.xlane.f32.xlu1 %v949_v33 }
 0x128   : > { %v842_v34 = vpop.xlane.xlu1 %841  ;;  %v818_v61 = vpop.xlane.xlu0 %817 }
 0x129   : > { %vm878_vm10 = vcmp.eq.f32.partialorder %v3058_v49, %v842_v34  ;;  %vm879_vm11 = vcmp.eq.f32.partialorder %v3063_v51, %v842_v34  ;;  %vm862_vm12 = vcmp.eq.f32.partialorder %v3043_v42, %v818_v61  ;;  %vm863_vm13 = vcmp.eq.f32.partialorder %v3048_v43, %v818_v61  ;;  %v821_v63 = vpop.xlane.xlu2 %820 }
 0x12a   : > { %vm864_vm14 = vcmp.eq.f32.partialorder %v3075_v53, %v821_v63  ;;  %vm865_vm15 = vcmp.eq.f32.partialorder %v3080_v4, %v821_v63  ;;  %v3257_v62 = vsel %vm878_vm10, inf, %v3058_v49  ;;  %v3260_v16 = vsel %vm879_vm11, inf, %v3063_v51 }
 0x12b   : > { %v952_v35 = vmin.f32 %v3257_v62, %v3260_v16  ;;  %v3265_v36 = vsel %vm862_vm12, inf, %v3043_v42  ;;  %v3268_v38 = vsel %vm863_vm13, inf, %v3048_v43  ;;  %v3271_v39 = vsel %vm864_vm14, inf, %v3075_v53 }
 0x12c   : > { %v928_v41 = vmin.f32 %v3265_v36, %v3268_v38  ;;  %v3276_v49 = vsel %vm865_vm15, inf, %v3080_v4 }
 0x12d   : > { %953 = vmin.xlane.f32.xlu2 %v952_v35  ;;  %v931_v51 = vmin.f32 %v3271_v39, %v3276_v49 }
 0x12e   : > { %929 = vmin.xlane.f32.xlu0 %v928_v41 }
 0x12f   : > { %932 = vmin.xlane.f32.xlu1 %v931_v51 }
 0x131   : > { %v845_v42 = vpop.xlane.xlu2 %844  ;;  %v824_v47 = vpop.xlane.xlu1 %823 }
 0x132   : > { %vm880_vm0 = vcmp.eq.f32.partialorder %v3108_v23, %v845_v42  ;;  %vm881_vm2 = vcmp.eq.f32.partialorder %v3110_v20, %v845_v42  ;;  %vm866_vm3 = vcmp.eq.f32.partialorder %v3112_v55, %v824_v47  ;;  %vm867_vm4 = vcmp.eq.f32.partialorder %v3114_v29, %v824_v47 }
 0x133   : > { %v3285_v43 = vsel %vm866_vm3, inf, %v3112_v55  ;;  %v3288_v53 = vsel %vm867_vm4, inf, %v3114_v29  ;;  %v3291_v4 = vsel %vm880_vm0, inf, %v3108_v23  ;;  %v3294_v48 = vsel %vm881_vm2, inf, %v3110_v20 }
 0x134   : > { %v934_v59 = vmin.f32 %v3285_v43, %v3288_v53  ;;  %v955_v60 = vmin.f32 %v3291_v4, %v3294_v48 }
 0x136   : > { %935 = vmin.xlane.f32.xlu2 %v934_v59  ;;  %956 = vmin.xlane.f32.xlu0 %v955_v60 }
 0x138   : > { %v848_v14 = vpop.xlane.xlu0 %847 }
 0x139   : > { %vm882_vm1 = vcmp.eq.f32.partialorder %v3134_v52, %v848_v14  ;;  %vm883_vm5 = vcmp.eq.f32.partialorder %v3136_v24, %v848_v14  ;;  %v827_v55 = vpop.xlane.xlu2 %826 }
 0x13a   : > { %vm868_vm6 = vcmp.eq.f32.partialorder %v3140_v40, %v827_v55  ;;  %vm869_vm7 = vcmp.eq.f32.partialorder %v3142_v57, %v827_v55  ;;  %v3305_v23 = vsel %vm882_vm1, inf, %v3134_v52  ;;  %v3308_v20 = vsel %vm883_vm5, inf, %v3136_v24 }
 0x13b   : > { %v958_v29 = vmin.f32 %v3305_v23, %v3308_v20  ;;  %v3313_v1 = vsel %vm868_vm6, inf, %v3140_v40  ;;  %v3316_v3 = vsel %vm869_vm7, inf, %v3142_v57 }
 0x13c   : > { %4916 = vst [vmem:[#allocation2_spill] sm:$0xff] %v3313_v1  ;;  %v937_v50 = vmin.f32 %v3313_v1, %v3316_v3 }
 0x13d   : > { %4917 = vst [vmem:[#allocation3_spill] sm:$0xff] %v3316_v3  ;;  %959 = vmin.xlane.f32.xlu1 %v958_v29 }
 0x13e   : > { %938 = vmin.xlane.f32.xlu0 %v937_v50 }
 0x140   : > { %v851_v9 = vpop.xlane.xlu1 %850 }
 0x141   : > { %v830_v52 = vpop.xlane.xlu0 %829  ;;  %vm884_vm14 = vcmp.eq.f32.partialorder %v3160_v22, %v851_v9  ;;  %vm885_vm15 = vcmp.eq.f32.partialorder %v3162_v7, %v851_v9 }
 0x142   : > { %vm870_vm8 = vcmp.eq.f32.partialorder %v3166_v0, %v830_v52  ;;  %vm871_vm9 = vcmp.eq.f32.partialorder %v3168_v30, %v830_v52 }
 0x143   : > { %v3323_v24 = vsel %vm870_vm8, inf, %v3166_v0  ;;  %v3326_v40 = vsel %vm871_vm9, inf, %v3168_v30 }
 0x144   : > { %4918 = vst [vmem:[#allocation4_spill] sm:$0xff] %v3326_v40  ;;  %v940_v57 = vmin.f32 %v3323_v24, %v3326_v40 }
 0x146   : > { %941 = vmin.xlane.f32.xlu1 %v940_v57 }
 0x148   : > { %v854_v5 = vpop.xlane.xlu2 %853 }
 0x149   : > { %vm886_vm10 = vcmp.eq.f32.partialorder %v3186_v56, %v854_v5  ;;  %vm887_vm11 = vcmp.eq.f32.partialorder %v3188_v58, %v854_v5  ;;  %v833_v6 = vpop.xlane.xlu1 %832 }
 0x14a   : > { %vm872_vm12 = vcmp.eq.f32.partialorder %v3192_v37, %v833_v6  ;;  %vm873_vm13 = vcmp.eq.f32.partialorder %v3194_v46, %v833_v6  ;;  %v3335_v0 = vsel %vm886_vm10, inf, %v3186_v56  ;;  %v3338_v30 = vsel %vm887_vm11, inf, %v3188_v58 }
 0x14b   : > { %4919 = vst [vmem:[#allocation5_spill] sm:$0xff] %v3335_v0  ;;  %v964_v18 = vmin.f32 %v3335_v0, %v3338_v30  ;;  %v3343_v11 = vsel %vm872_vm12, inf, %v3192_v37  ;;  %v3346_v19 = vsel %vm873_vm13, inf, %v3194_v46  ;;  %v3355_v58 = vsel %vm884_vm14, inf, %v3160_v22 }
 0x14c   : > { %4920 = vst [vmem:[#allocation6_spill] sm:$0xff] %v3338_v30  ;;  %v943_v21 = vmin.f32 %v3343_v11, %v3346_v19  ;;  %v3358_v37 = vsel %vm885_vm15, inf, %v3162_v7 }
 0x14d   : > { %4921 = vst [vmem:[#allocation7_spill] sm:$0xff] %v3343_v11  ;;  %965 = vmin.xlane.f32.xlu0 %v964_v18  ;;  %v961_v2 = vmin.f32 %v3355_v58, %v3358_v37 }
 0x14e   : > { %4922 = vst [vmem:[#allocation8_spill] sm:$0xff] %v3346_v19  ;;  %944 = vmin.xlane.f32.xlu2 %v943_v21 }
 0x14f   : > { %4923 = vst [vmem:[#allocation9_spill] sm:$0xff] %v3355_v58 }
 0x150   : > { %v857_v56 = vpop.xlane.xlu0 %856  ;;  %4924 = vst [vmem:[#allocation10_spill] sm:$0xff] %v3358_v37 }
 0x151   : > { %vm888_vm0 = vcmp.eq.f32.partialorder %v3204_v10, %v857_v56  ;;  %vm889_vm2 = vcmp.eq.f32.partialorder %v3206_v15, %v857_v56 }
 0x152   : > { %v3361_v46 = vsel %vm888_vm0, inf, %v3204_v10  ;;  %v3364_v26 = vsel %vm889_vm2, inf, %v3206_v15 }
 0x153   : > { %4925 = vst [vmem:[#allocation11_spill] sm:$0xff] %v3361_v46  ;;  %v967_v27 = vmin.f32 %v3361_v46, %v3364_v26 }
 0x154   : > { %4926 = vst [vmem:[#allocation12_spill] sm:$0xff] %v3364_v26 }
 0x155   : > { %968 = vmin.xlane.f32.xlu1 %v967_v27 }
 0x156   : > { %962 = vmin.xlane.f32.xlu2 %v961_v2 }
 0x189   : > { %v924_v28 = vpop.xlane.xlu1 %923 }
 0x18a   : > { %vm970_vm3 = vcmp.eq.f32.partialorder %v3213_v12, %v924_v28  ;;  %vm971_vm4 = vcmp.eq.f32.partialorder %v3216_v54, %v924_v28 }
 0x18b   : > { %v1002_v22 = vsel %vm970_vm3, %v2901_v8, 256  ;;  %v1003_v7 = vsel %vm971_vm4, %v2917_v13, 256 }
 0x18c   : > { %vm1034_vm1 = vcmp.lt.s32.totalorder %v1002_v22, %v1003_v7 }
 0x18d   : > { %v3374_v10 = vsel %vm1034_vm1, %v1002_v22, %v1003_v7 }
 0x18e   : > { %v1037_v15 = vshra.s32 %v3374_v10, 16 }
 0x190   : > { %v948_v33 = vpop.xlane.xlu0 %947  ;;  %v3377_v34 = vcvt.s32.f32 %v1037_v15 }
 0x191   : > { %vm986_vm5 = vcmp.eq.f32.partialorder %v3223_v25, %v948_v33  ;;  %vm987_vm6 = vcmp.eq.f32.partialorder %v3226_v31, %v948_v33 }
 0x192   : > { %v1018_v61 = vsel %vm986_vm5, %v2901_v8, 256  ;;  %v1019_v63 = vsel %vm987_vm6, %v2917_v13, 256  ;;  %1040 = vmin.xlane.f32.xlu2 %v3377_v34 }
 0x193   : > { %vm1162_vm7 = vcmp.lt.s32.totalorder %v1018_v61, %v1019_v63 }
 0x194   : > { %v3384_v35 = vsel %vm1162_vm7, %v1018_v61, %v1019_v63 }
 0x195   : > { %v1165_v41 = vshra.s32 %v3384_v35, 16 }
 0x197   : > { %v3387_v51 = vcvt.s32.f32 %v1165_v41 }
 0x198   : > { %v927_v42 = vpop.xlane.xlu2 %926  ;;  %v951_v47 = vpop.xlane.xlu1 %950 }
 0x199   : > { %vm972_vm8 = vcmp.eq.f32.partialorder %v3235_v44, %v927_v42  ;;  %vm973_vm9 = vcmp.eq.f32.partialorder %v3238_v45, %v927_v42  ;;  %vm988_vm10 = vcmp.eq.f32.partialorder %v3241_v17, %v951_v47  ;;  %vm989_vm11 = vcmp.eq.f32.partialorder %v3244_v32, %v951_v47  ;;  %1168 = vmin.xlane.f32.xlu0 %v3387_v51 }
 0x19a   : > { %v1004_v59 = vsel %vm972_vm8, %v2901_v8, 256  ;;  %v1005_v60 = vsel %vm973_vm9, %v2917_v13, 256  ;;  %v1020_v14 = vsel %vm988_vm10, %v2901_v8, 256  ;;  %v1021_v55 = vsel %vm989_vm11, %v2917_v13, 256 }
 0x19b   : > { %vm1050_vm12 = vcmp.lt.s32.totalorder %v1004_v59, %v1005_v60  ;;  %vm1178_vm13 = vcmp.lt.s32.totalorder %v1020_v14, %v1021_v55 }
 0x19c   : > { %v3398_v29 = vsel %vm1050_vm12, %v1004_v59, %v1005_v60  ;;  %v3401_v9 = vsel %vm1178_vm13, %v1020_v14, %v1021_v55 }
 0x19d   : > { %v1053_v50 = vshra.s32 %v3398_v29, 16  ;;  %v1181_v6 = vshra.s32 %v3401_v9, 16 }
 0x19f   : > { %v3403_v52 = vcvt.s32.f32 %v1053_v50  ;;  %v3425_v63 = vcvt.s32.f32 %v1181_v6 }
 0x1a0   : > { %v954_v57 = vpop.xlane.xlu2 %953 }
 0x1a1   : > { %vm990_vm14 = vcmp.eq.f32.partialorder %v3257_v62, %v954_v57  ;;  %vm991_vm15 = vcmp.eq.f32.partialorder %v3260_v16, %v954_v57  ;;  %v930_v5 = vpop.xlane.xlu0 %929  ;;  %1056 = vmin.xlane.f32.xlu1 %v3403_v52 }
 0x1a2   : > { %v1022_v18 = vsel %vm990_vm14, %v2901_v8, 256  ;;  %v1023_v21 = vsel %vm991_vm15, %v2917_v13, 256  ;;  %vm974_vm0 = vcmp.eq.f32.partialorder %v3265_v36, %v930_v5  ;;  %vm975_vm2 = vcmp.eq.f32.partialorder %v3268_v38, %v930_v5  ;;  %v933_v56 = vpop.xlane.xlu1 %932 }
 0x1a3   : > { %v1006_v27 = vsel %vm974_vm0, %v2901_v8, 256  ;;  %v1007_v2 = vsel %vm975_vm2, %v2917_v13, 256  ;;  %vm976_vm3 = vcmp.eq.f32.partialorder %v3271_v39, %v933_v56  ;;  %vm977_vm4 = vcmp.eq.f32.partialorder %v3276_v49, %v933_v56 }
 0x1a4   : > { %v1008_v28 = vsel %vm976_vm3, %v2901_v8, 256  ;;  %v1009_v22 = vsel %vm977_vm4, %v2917_v13, 256  ;;  %vm1066_vm1 = vcmp.lt.s32.totalorder %v1006_v27, %v1007_v2  ;;  %vm1194_vm5 = vcmp.lt.s32.totalorder %v1022_v18, %v1023_v21 }
 0x1a5   : > { %v3419_v7 = vsel %vm1066_vm1, %v1006_v27, %v1007_v2  ;;  %v3421_v15 = vsel %vm1194_vm5, %v1022_v18, %v1023_v21  ;;  %vm1082_vm6 = vcmp.lt.s32.totalorder %v1008_v28, %v1009_v22 }
 0x1a6   : > { %v1069_v33 = vshra.s32 %v3419_v7, 16  ;;  %v1197_v61 = vshra.s32 %v3421_v15, 16  ;;  %v3432_v60 = vsel %vm1082_vm6, %v1008_v28, %v1009_v22 }
 0x1a7   : > { %v1085_v5 = vshra.s32 %v3432_v60, 16 }
 0x1a8   : > { %v3427_v41 = vcvt.s32.f32 %v1069_v33  ;;  %v3429_v42 = vcvt.s32.f32 %v1197_v61 }
 0x1a9   : > { %1184 = vmin.xlane.f32.xlu1 %v3425_v63  ;;  %v936_v47 = vpop.xlane.xlu2 %935  ;;  %v957_v59 = vpop.xlane.xlu0 %956  ;;  %v3451_v2 = vcvt.s32.f32 %v1085_v5 }
 0x1aa   : > { %1072 = vmin.xlane.f32.xlu0 %v3427_v41  ;;  %1200 = vmin.xlane.f32.xlu2 %v3429_v42  ;;  %vm978_vm7 = vcmp.eq.f32.partialorder %v3285_v43, %v936_v47  ;;  %vm979_vm8 = vcmp.eq.f32.partialorder %v3288_v53, %v936_v47  ;;  %vm992_vm9 = vcmp.eq.f32.partialorder %v3291_v4, %v957_v59 }
 0x1ab   : > { %v1010_v14 = vsel %vm978_vm7, %v2901_v8, 256  ;;  %v1011_v55 = vsel %vm979_vm8, %v2917_v13, 256  ;;  %vm993_vm10 = vcmp.eq.f32.partialorder %v3294_v48, %v957_v59  ;;  %v1024_v50 = vsel %vm992_vm9, %v2901_v8, 256 }
 0x1ac   : > { %v1025_v57 = vsel %vm993_vm10, %v2917_v13, 256  ;;  %vm1098_vm11 = vcmp.lt.s32.totalorder %v1010_v14, %v1011_v55 }
 0x1ad   : > { %vm1210_vm12 = vcmp.lt.s32.totalorder %v1024_v50, %v1025_v57  ;;  %v3445_v6 = vsel %vm1098_vm11, %v1010_v14, %v1011_v55 }
 0x1ae   : > { %v3447_v18 = vsel %vm1210_vm12, %v1024_v50, %v1025_v57  ;;  %v1101_v21 = vshra.s32 %v3445_v6, 16 }
 0x1af   : > { %v1213_v56 = vshra.s32 %v3447_v18, 16 }
 0x1b0   : > { %v960_v27 = vpop.xlane.xlu1 %959  ;;  %v3453_v28 = vcvt.s32.f32 %v1101_v21 }
 0x1b1   : > { %vm994_vm13 = vcmp.eq.f32.partialorder %v3305_v23, %v960_v27  ;;  %vm995_vm14 = vcmp.eq.f32.partialorder %v3308_v20, %v960_v27  ;;  %v939_v22 = vpop.xlane.xlu0 %938  ;;  %v3457_v33 = vcvt.s32.f32 %v1213_v56 }
 0x1b2   : > { %v1026_v61 = vsel %vm994_vm13, %v2901_v8, 256  ;;  %v1027_v47 = vsel %vm995_vm14, %v2917_v13, 256  ;;  %1088 = vmin.xlane.f32.xlu2 %v3451_v2  ;;  %vm980_vm15 = vcmp.eq.f32.partialorder %v3313_v1, %v939_v22  ;;  %vm981_vm0 = vcmp.eq.f32.partialorder %v3316_v3, %v939_v22  ;;  %1104 = vmin.xlane.f32.xlu1 %v3453_v28 }
 0x1b3   : > { %v1012_v59 = vsel %vm980_vm15, %v2901_v8, 256  ;;  %v1013_v14 = vsel %vm981_vm0, %v2917_v13, 256  ;;  %1216 = vmin.xlane.f32.xlu0 %v3457_v33  ;;  %vm1226_vm2 = vcmp.lt.s32.totalorder %v1026_v61, %v1027_v47 }
 0x1b4   : > { %vm1114_vm3 = vcmp.lt.s32.totalorder %v1012_v59, %v1013_v14  ;;  %v3468_v55 = vsel %vm1226_vm2, %v1026_v61, %v1027_v47 }
 0x1b5   : > { %v3470_v50 = vsel %vm1114_vm3, %v1012_v59, %v1013_v14  ;;  %v1229_v57 = vshra.s32 %v3468_v55, 16 }
 0x1b6   : > { %v1117_v5 = vshra.s32 %v3470_v50, 16 }
 0x1b7   : > { %v3476_v56 = vcvt.s32.f32 %v1229_v57 }
 0x1b8   : > { %v3474_v21 = vcvt.s32.f32 %v1117_v5 }
 0x1b9   : > { %v942_v27 = vpop.xlane.xlu1 %941 }
 0x1ba   : > { %vm982_vm4 = vcmp.eq.f32.partialorder %v3323_v24, %v942_v27  ;;  %vm983_vm1 = vcmp.eq.f32.partialorder %v3326_v40, %v942_v27  ;;  %1232 = vmin.xlane.f32.xlu1 %v3476_v56 }
 0x1bb   : > { %v1014_v22 = vsel %vm982_vm4, %v2901_v8, 256  ;;  %v1015_v61 = vsel %vm983_vm1, %v2917_v13, 256  ;;  %1120 = vmin.xlane.f32.xlu0 %v3474_v21 }
 0x1bc   : > { %vm1130_vm5 = vcmp.lt.s32.totalorder %v1014_v22, %v1015_v61 }
 0x1bd   : > { %v3484_v47 = vsel %vm1130_vm5, %v1014_v22, %v1015_v61 }
 0x1be   : > { %v1133_v59 = vshra.s32 %v3484_v47, 16 }
 0x1c0   : > { %v966_v14 = vpop.xlane.xlu0 %965  ;;  %v3487_v57 = vcvt.s32.f32 %v1133_v59 }
 0x1c1   : > { %vm998_vm6 = vcmp.eq.f32.partialorder %v3335_v0, %v966_v14  ;;  %vm999_vm7 = vcmp.eq.f32.partialorder %v3338_v30, %v966_v14  ;;  %v945_v5 = vpop.xlane.xlu2 %944 }
 0x1c2   : > { %v1030_v27 = vsel %vm998_vm6, %v2901_v8, 256  ;;  %v1031_v3 = vsel %vm999_vm7, %v2917_v13, 256  ;;  %1136 = vmin.xlane.f32.xlu1 %v3487_v57  ;;  %vm984_vm9 = vcmp.eq.f32.partialorder %v3343_v11, %v945_v5  ;;  %vm985_vm10 = vcmp.eq.f32.partialorder %v3346_v19, %v945_v5 }
 0x1c3   : > { %vm1258_vm8 = vcmp.lt.s32.totalorder %v1030_v27, %v1031_v3  ;;  %v1016_v14 = vsel %vm984_vm9, %v2901_v8, 256  ;;  %v1017_v5 = vsel %vm985_vm10, %v2917_v13, 256 }
 0x1c4   : > { %v3494_v1 = vsel %vm1258_vm8, %v1030_v27, %v1031_v3  ;;  %vm1146_vm2 = vcmp.lt.s32.totalorder %v1016_v14, %v1017_v5 }
 0x1c5   : > { %v1261_v22 = vshra.s32 %v3494_v1, 16 }
 0x1c7   : > { %v3498_v61 = vcvt.s32.f32 %v1261_v22 }
 0x1c8   : > { %v969_v59 = vpop.xlane.xlu1 %968 }
 0x1c9   : > { %vm1000_vm11 = vcmp.eq.f32.partialorder %v3361_v46, %v969_v59  ;;  %vm1001_vm12 = vcmp.eq.f32.partialorder %v3364_v26, %v969_v59  ;;  %1264 = vmin.xlane.f32.xlu0 %v3498_v61  ;;  %v963_v30 = vpop.xlane.xlu2 %962 }
 0x1ca   : > { %v1032_v3 = vsel %vm1000_vm11, %v2901_v8, 256  ;;  %v1033_v27 = vsel %vm1001_vm12, %v2917_v13, 256  ;;  %vm996_vm13 = vcmp.eq.f32.partialorder %v3355_v58, %v963_v30  ;;  %vm997_vm14 = vcmp.eq.f32.partialorder %v3358_v37, %v963_v30 }
 0x1cb   : > { %v1028_v22 = vsel %vm996_vm13, %v2901_v8, 256  ;;  %v1029_v19 = vsel %vm997_vm14, %v2917_v13, 256  ;;  %vm1274_vm15 = vcmp.lt.s32.totalorder %v1032_v3, %v1033_v27  ;;  %v3523_v37 = vsel %vm1146_vm2, %v1016_v14, %v1017_v5 }
 0x1cc   : > { %v3512_v11 = vsel %vm1274_vm15, %v1032_v3, %v1033_v27  ;;  %vm1242_vm0 = vcmp.lt.s32.totalorder %v1028_v22, %v1029_v19  ;;  %v1149_v3 = vshra.s32 %v3523_v37, 16  ;;  %v1164_v14 = vand.u32 65535, %v3384_v35 }
 0x1cd   : > { %v1277_v59 = vshra.s32 %v3512_v11, 16  ;;  %v3515_v26 = vsel %vm1242_vm0, %v1028_v22, %v1029_v19  ;;  %v1036_v19 = vand.u32 65535, %v3374_v10  ;;  %v1052_v10 = vand.u32 65535, %v3398_v29 }
 0x1ce   : > { %v1245_v46 = vshra.s32 %v3515_v26, 16  ;;  %v3527_v27 = vcvt.s32.f32 %v1149_v3  ;;  %v1166_v0 = vcvt.s32.f32 %v1164_v14  ;;  %v1180_v35 = vand.u32 65535, %v3401_v9 }
 0x1cf   : > { %v3518_v58 = vcvt.s32.f32 %v1277_v59  ;;  %v1038_v59 = vcvt.s32.f32 %v1036_v19  ;;  %v1054_v19 = vcvt.s32.f32 %v1052_v10  ;;  %v1196_v9 = vand.u32 65535, %v3421_v15 }
 0x1d0   : > { %v3520_v30 = vcvt.s32.f32 %v1245_v46  ;;  %v1182_v14 = vcvt.s32.f32 %v1180_v35  ;;  %v1212_v10 = vand.u32 65535, %v3447_v18  ;;  %v1100_v18 = vand.u32 65535, %v3445_v6 }
 0x1d1   : > { %1280 = vmin.xlane.f32.xlu1 %v3518_v58  ;;  %v1116_v6 = vand.u32 65535, %v3470_v50 }
 0x1d2   : > { %1248 = vmin.xlane.f32.xlu2 %v3520_v30 }
 0x1da   : > { %1152 = vmin.xlane.f32.xlu2 %v3527_v27 }
 0x205   : > { %v3531_v22 = vpop.xlane.xlu2 %1040 }
 0x206   : > { %vm1042_vm3 = vcmp.eq.f32.partialorder %v3377_v34, %v3531_v22 }
 0x207   : > { %v1043_v46 = vsel %vm1042_vm3, %v1038_v59, inf  ;;  %v1068_v59 = vand.u32 65535, %v3419_v7  ;;  %v1084_v7 = vand.u32 65535, %v3432_v60  ;;  %v1228_v60 = vand.u32 65535, %v3468_v55 }
 0x208   : > { %1044 = vmin.xlane.f32.xlu0 %v1043_v46  ;;  %vm1290_vm3 = vcmask 15368  }
 0x209   : > { %v1070_v29 = vcvt.s32.f32 %v1068_v59  ;;  %v1086_v35 = vcvt.s32.f32 %v1084_v7  ;;  %v1214_v59 = vcvt.s32.f32 %v1212_v10  ;;  %v1118_v10 = vcvt.s32.f32 %v1116_v6 }
 0x20c   : > { %v3536_v5 = vpop.xlane.xlu0 %1168 }
 0x20d   : > { %vm1170_vm4 = vcmp.eq.f32.partialorder %v3387_v51, %v3536_v5 }
 0x20e   : > { %v1171_v3 = vsel %vm1170_vm4, %v1166_v0, inf }
 0x20f   : > { %1172 = vmin.xlane.f32.xlu2 %v1171_v3 }
 0x214   : > { %v3541_v40 = vpop.xlane.xlu1 %1056 }
 0x215   : > { %vm1058_vm1 = vcmp.eq.f32.partialorder %v3403_v52, %v3541_v40 }
 0x216   : > { %v1059_v34 = vsel %vm1058_vm1, %v1054_v19, inf }
 0x217   : > { %1060 = vmin.xlane.f32.xlu2 %v1059_v34 }
 0x21c   : > { %v3547_v46 = vpop.xlane.xlu1 %1184 }
 0x21d   : > { %v3549_v51 = vpop.xlane.xlu0 %1072  ;;  %v3551_v0 = vpop.xlane.xlu2 %1200  ;;  %vm1186_vm5 = vcmp.eq.f32.partialorder %v3425_v63, %v3547_v46  ;;  %v1198_v63 = vcvt.s32.f32 %v1196_v9  ;;  %v1132_v9 = vand.u32 65535, %v3484_v47  ;;  %v1260_v47 = vand.u32 65535, %v3494_v1 }
 0x21e   : > { %vm1074_vm6 = vcmp.eq.f32.partialorder %v3427_v41, %v3549_v51  ;;  %v1187_v52 = vsel %vm1186_vm5, %v1182_v14, inf  ;;  %vm1202_vm7 = vcmp.eq.f32.partialorder %v3429_v42, %v3551_v0 }
 0x21f   : > { %v1075_v3 = vsel %vm1074_vm6, %v1070_v29, inf  ;;  %1188 = vmin.xlane.f32.xlu0 %v1187_v52  ;;  %v1203_v15 = vsel %vm1202_vm7, %v1198_v63, inf  ;;  %v1102_v52 = vcvt.s32.f32 %v1100_v18  ;;  %v1262_v50 = vcvt.s32.f32 %v1260_v47 }
 0x220   : > { %1076 = vmin.xlane.f32.xlu1 %v1075_v3 }
 0x225   : > { %v3562_v19 = vpop.xlane.xlu2 %1088  ;;  %v3564_v34 = vpop.xlane.xlu1 %1104 }
 0x226   : > { %v3566_v41 = vpop.xlane.xlu0 %1216  ;;  %vm1090_vm8 = vcmp.eq.f32.partialorder %v3451_v2, %v3562_v19  ;;  %vm1106_vm10 = vcmp.eq.f32.partialorder %v3453_v28, %v3564_v34  ;;  %v1230_v2 = vcvt.s32.f32 %v1228_v60  ;;  %v1134_v28 = vcvt.s32.f32 %v1132_v9 }
 0x227   : > { %v1091_v14 = vsel %vm1090_vm8, %v1086_v35, inf  ;;  %vm1218_vm9 = vcmp.eq.f32.partialorder %v3457_v33, %v3566_v41  ;;  %v1107_v33 = vsel %vm1106_vm10, %v1102_v52, inf  ;;  %v1175_v9 = vcvt.f32.s32 %v3536_v5 }
 0x228   : > { %1204 = vmin.xlane.f32.xlu1 %v1203_v15  ;;  %1092 = vmin.xlane.f32.xlu0 %v1091_v14  ;;  %v1219_v42 = vsel %vm1218_vm9, %v1214_v59, inf  ;;  %v1244_v15 = vand.u32 65535, %v3515_v26 }
 0x229   : > { %1220 = vmin.xlane.f32.xlu2 %v1219_v42 }
 0x22a   : > { %v1246_v1 = vcvt.s32.f32 %v1244_v15 }
 0x22d   : > { %v3574_v29 = vpop.xlane.xlu1 %1232 }
 0x22e   : > { %vm1234_vm11 = vcmp.eq.f32.partialorder %v3476_v56, %v3574_v29  ;;  %v3581_v7 = vpop.xlane.xlu0 %1120 }
 0x22f   : > { %v1235_v3 = vsel %vm1234_vm11, %v1230_v2, inf  ;;  %vm1122_vm12 = vcmp.eq.f32.partialorder %v3474_v21, %v3581_v7  ;;  %v1276_v21 = vand.u32 65535, %v3512_v11  ;;  %v1148_v11 = vand.u32 65535, %v3523_v37 }
 0x230   : > { %1236 = vmin.xlane.f32.xlu0 %v1235_v3  ;;  %v1123_v63 = vsel %vm1122_vm12, %v1118_v10, inf }
 0x231   : > { %1108 = vmin.xlane.f32.xlu2 %v1107_v33  ;;  %v1150_v18 = vcvt.s32.f32 %v1148_v11 }
 0x235   : > { %v3584_v55 = vpop.xlane.xlu1 %1136 }
 0x236   : > { %vm1138_vm13 = vcmp.eq.f32.partialorder %v3487_v57, %v3584_v55  ;;  %v1278_v57 = vcvt.s32.f32 %v1276_v21  ;;  %v1191_v21 = vcvt.f32.s32 %v3547_v46 }
 0x237   : > { %v1139_v56 = vsel %vm1138_vm13, %v1134_v28, inf  ;;  %v1176_v28 = vshll.u32 %v1175_v9, 16 }
 0x238   : > { %1140 = vmin.xlane.f32.xlu0 %v1139_v56  ;;  %v1063_v56 = vcvt.f32.s32 %v3541_v40 }
 0x239   : > { %1124 = vmin.xlane.f32.xlu2 %v1123_v63 }
 0x23c   : > { %v3591_v35 = vpop.xlane.xlu0 %1264 }
 0x23d   : > { %vm1266_vm14 = vcmp.eq.f32.partialorder %v3498_v61, %v3591_v35 }
 0x23e   : > { %v1267_v59 = vsel %vm1266_vm14, %v1262_v50, inf  ;;  %v1064_v50 = vshll.u32 %v1063_v56, 16  ;;  %v1111_v56 = vcvt.f32.s32 %v3564_v34 }
 0x241   : > { %1268 = vmin.xlane.f32.xlu2 %v1267_v59 }
 0x244   : > { %v3597_v14 = vpop.xlane.xlu1 %1280 }
 0x245   : > { %v3599_v42 = vpop.xlane.xlu2 %1248  ;;  %vm1282_vm15 = vcmp.eq.f32.partialorder %v3518_v58, %v3597_v14  ;;  %v1047_v58 = vcvt.f32.s32 %v3531_v22 }
 0x246   : > { %v1283_v60 = vsel %vm1282_vm15, %v1278_v57, inf  ;;  %vm1250_vm0 = vcmp.eq.f32.partialorder %v3520_v30, %v3599_v42 }
 0x247   : > { %1284 = vmin.xlane.f32.xlu0 %v1283_v60  ;;  %v1251_v61 = vsel %vm1250_vm0, %v1246_v1, inf  ;;  %v1048_v3 = vshll.u32 %v1047_v58, 16  ;;  %v1192_v1 = vshll.u32 %v1191_v21, 16 }
 0x248   : > { %1252 = vmin.xlane.f32.xlu1 %v1251_v61 }
 0x24d   : > { %v3606_v26 = vpop.xlane.xlu2 %1152 }
 0x24e   : > { %vm1154_vm2 = vcmp.eq.f32.partialorder %v3527_v27, %v3606_v26 }
 0x24f   : > { %v1155_v2 = vsel %vm1154_vm2, %v1150_v18, inf }
 0x250   : > { %1156 = vmin.xlane.f32.xlu1 %v1155_v2 }
 0x27b   : > { %v1045_v52 = vpop.xlane.xlu0 %1044 }
 0x27c   : > { %v1046_v33 = vcvt.f32.s32 %v1045_v52 }
 0x27e   : > { %v1049_v30 = vadd.s32 %v1048_v3, %v1046_v33 }
 0x280   : > { %1291 = vst.msk [vmem:[%s2855_s12] sm:$0xff] %vm1290_vm3, %v1049_v30  ;;  %vm1307_vm4 = vcmp.eq.s32.totalorder %v2901_v8, %v1049_v30  ;;  %vm1308_vm1 = vcmp.eq.s32.totalorder %v2917_v13, %v1049_v30 }
 0x281   : > { %v3617_v37 = vsel %vm1307_vm4, inf, %v3213_v12  ;;  %v3620_v27 = vsel %vm1308_vm1, inf, %v3216_v54 }
 0x282   : > { %v1173_v22 = vpop.xlane.xlu2 %1172  ;;  %v1371_v6 = vmin.f32 %v3617_v37, %v3620_v27 }
 0x283   : > { %v1174_v10 = vcvt.f32.s32 %v1173_v22 }
 0x284   : > { %1372 = vmin.xlane.f32.xlu1 %v1371_v6 }
 0x285   : > { %v1177_v5 = vadd.s32 %v1176_v28, %v1174_v10 }
 0x287   : > { %1299 = vst.msk [vmem:[%s2855_s12 + $0x40] sm:$0xff] %vm1290_vm3, %v1177_v5  ;;  %vm1323_vm5 = vcmp.eq.s32.totalorder %v2901_v8, %v1177_v5  ;;  %vm1324_vm6 = vcmp.eq.s32.totalorder %v2917_v13, %v1177_v5 }
 0x288   : > { %v3630_v12 = vsel %vm1323_vm5, inf, %v3223_v25  ;;  %v3633_v54 = vsel %vm1324_vm6, inf, %v3226_v31  ;;  %v1079_v25 = vcvt.f32.s32 %v3549_v51  ;;  %v1207_v51 = vcvt.f32.s32 %v3551_v0 }
 0x289   : > { %v1395_v63 = vmin.f32 %v3630_v12, %v3633_v54  ;;  %v1223_v0 = vcvt.f32.s32 %v3566_v41 }
 0x28a   : > { %v1061_v47 = vpop.xlane.xlu2 %1060  ;;  %v1080_v11 = vshll.u32 %v1079_v25, 16  ;;  %v1208_v9 = vshll.u32 %v1207_v51, 16 }
 0x28b   : > { %v1062_v59 = vcvt.f32.s32 %v1061_v47  ;;  %1396 = vmin.xlane.f32.xlu0 %v1395_v63  ;;  %v1224_v10 = vshll.u32 %v1223_v0, 16  ;;  %v1239_v63 = vcvt.f32.s32 %v3574_v29 }
 0x28d   : > { %v1065_v40 = vadd.s32 %v1064_v50, %v1062_v59 }
 0x28f   : > { %1292 = vst.msk [vmem:[%s2855_s12 + $0x8] sm:$0xff] %vm1290_vm3, %v1065_v40  ;;  %vm1309_vm7 = vcmp.eq.s32.totalorder %v2901_v8, %v1065_v40  ;;  %vm1310_vm8 = vcmp.eq.s32.totalorder %v2917_v13, %v1065_v40 }
 0x290   : > { %v3644_v31 = vsel %vm1309_vm7, inf, %v3235_v44  ;;  %v3647_v15 = vsel %vm1310_vm8, inf, %v3238_v45  ;;  %v1095_v44 = vcvt.f32.s32 %v3562_v19 }
 0x291   : > { %v1374_v57 = vmin.f32 %v3644_v31, %v3647_v15 }
 0x292   : > { %v1189_v46 = vpop.xlane.xlu0 %1188  ;;  %v1096_v22 = vshll.u32 %v1095_v44, 16 }
 0x293   : > { %v1190_v60 = vcvt.f32.s32 %v1189_v46  ;;  %v1077_v61 = vpop.xlane.xlu1 %1076  ;;  %1375 = vmin.xlane.f32.xlu2 %v1374_v57 }
 0x294   : > { %v1078_v18 = vcvt.f32.s32 %v1077_v61 }
 0x295   : > { %v1193_v2 = vadd.s32 %v1192_v1, %v1190_v60  ;;  %v1112_v1 = vshll.u32 %v1111_v56, 16  ;;  %v1287_v56 = vcvt.f32.s32 %v3597_v14 }
 0x296   : > { %v1081_v58 = vadd.s32 %v1080_v11, %v1078_v18  ;;  %v1143_v18 = vcvt.f32.s32 %v3584_v55 }
 0x297   : > { %1300 = vst.msk [vmem:[%s2855_s12 + $0x48] sm:$0xff] %vm1290_vm3, %v1193_v2  ;;  %vm1325_vm9 = vcmp.eq.s32.totalorder %v2901_v8, %v1193_v2  ;;  %vm1326_vm10 = vcmp.eq.s32.totalorder %v2917_v13, %v1193_v2 }
 0x298   : > { %1293 = vst.msk [vmem:[%s2855_s12 + $0x10] sm:$0xff] %vm1290_vm3, %v1081_v58  ;;  %v3660_v45 = vsel %vm1325_vm9, inf, %v3241_v17  ;;  %v3663_v52 = vsel %vm1326_vm10, inf, %v3244_v32  ;;  %vm1311_vm11 = vcmp.eq.s32.totalorder %v2901_v8, %v1081_v58  ;;  %vm1312_vm12 = vcmp.eq.s32.totalorder %v2917_v13, %v1081_v58 }
 0x299   : > { %v1398_v19 = vmin.f32 %v3660_v45, %v3663_v52  ;;  %v3671_v3 = vsel %vm1311_vm11, inf, %v3265_v36  ;;  %v3674_v33 = vsel %vm1312_vm12, inf, %v3268_v38  ;;  %v1144_v51 = vshll.u32 %v1143_v18, 16  ;;  %v4932_v18 = vld [vmem:[#allocation11_spill] sm:$0xff] }
 0x29a   : > { %v1377_v17 = vmin.f32 %v3671_v3, %v3674_v33 }
 0x29b   : > { %v1093_v32 = vpop.xlane.xlu0 %1092  ;;  %v1205_v30 = vpop.xlane.xlu1 %1204  ;;  %1399 = vmin.xlane.f32.xlu1 %v1398_v19 }
 0x29c   : > { %v1094_v6 = vcvt.f32.s32 %v1093_v32  ;;  %v1206_v41 = vcvt.f32.s32 %v1205_v30  ;;  %1378 = vmin.xlane.f32.xlu0 %v1377_v17  ;;  %v1221_v28 = vpop.xlane.xlu2 %1220 }
 0x29d   : > { %v1222_v36 = vcvt.f32.s32 %v1221_v28  ;;  %v4929_v28 = vld [vmem:[#allocation3_spill] sm:$0xff] }
 0x29e   : > { %v1097_v5 = vadd.s32 %v1096_v22, %v1094_v6  ;;  %v1209_v38 = vadd.s32 %v1208_v9, %v1206_v41  ;;  %v4927_v9 = vld [vmem:[#allocation4_spill] sm:$0xff]  ;;  %v4928_v6 = vld [vmem:[#allocation2_spill] sm:$0xff] }
 0x29f   : > { %v1225_v47 = vadd.s32 %v1224_v10, %v1222_v36 }
 0x2a0   : > { %1294 = vst.msk [vmem:[%s2855_s12 + $0x18] sm:$0xff] %vm1290_vm3, %v1097_v5  ;;  %vm1313_vm13 = vcmp.eq.s32.totalorder %v2901_v8, %v1097_v5  ;;  %vm1314_vm14 = vcmp.eq.s32.totalorder %v2917_v13, %v1097_v5  ;;  %vm1327_vm15 = vcmp.eq.s32.totalorder %v2901_v8, %v1209_v38  ;;  %vm1328_vm0 = vcmp.eq.s32.totalorder %v2917_v13, %v1209_v38 }
 0x2a1   : > { %1301 = vst.msk [vmem:[%s2855_s12 + $0x50] sm:$0xff] %vm1290_vm3, %v1209_v38  ;;  %v3689_v50 = vsel %vm1313_vm13, inf, %v3271_v39  ;;  %v3692_v34 = vsel %vm1314_vm14, inf, %v3276_v49  ;;  %v3695_v29 = vsel %vm1327_vm15, inf, %v3257_v62  ;;  %v3698_v59 = vsel %vm1328_vm0, inf, %v3260_v16 }
 0x2a2   : > { %1302 = vst.msk [vmem:[%s2855_s12 + $0x58] sm:$0xff] %vm1290_vm3, %v1225_v47  ;;  %v1380_v40 = vmin.f32 %v3689_v50, %v3692_v34  ;;  %v1401_v21 = vmin.f32 %v3695_v29, %v3698_v59  ;;  %vm1329_vm2 = vcmp.eq.s32.totalorder %v2901_v8, %v1225_v47  ;;  %vm1330_vm4 = vcmp.eq.s32.totalorder %v2917_v13, %v1225_v47 }
 0x2a3   : > { %v1237_v39 = vpop.xlane.xlu0 %1236  ;;  %v3709_v62 = vsel %vm1329_vm2, inf, %v3291_v4  ;;  %v3712_v16 = vsel %vm1330_vm4, inf, %v3294_v48  ;;  %v1240_v49 = vshll.u32 %v1239_v63, 16  ;;  %v1127_v4 = vcvt.f32.s32 %v3581_v7 }
 0x2a4   : > { %1381 = vmin.xlane.f32.xlu1 %v1380_v40  ;;  %1402 = vmin.xlane.f32.xlu2 %v1401_v21  ;;  %v1109_v25 = vpop.xlane.xlu2 %1108  ;;  %v1238_v57 = vcvt.f32.s32 %v1237_v39  ;;  %v1404_v46 = vmin.f32 %v3709_v62, %v3712_v16  ;;  %v1255_v47 = vcvt.f32.s32 %v3599_v42  ;;  %v4930_v21 = vld [vmem:[#allocation5_spill] sm:$0xff] }
 0x2a5   : > { %v1110_v60 = vcvt.f32.s32 %v1109_v25  ;;  %v1128_v19 = vshll.u32 %v1127_v4, 16  ;;  %v1159_v4 = vcvt.f32.s32 %v3606_v26 }
 0x2a6   : > { %v1241_v61 = vadd.s32 %v1240_v49, %v1238_v57  ;;  %1405 = vmin.xlane.f32.xlu0 %v1404_v46  ;;  %v4931_v49 = vld [vmem:[#allocation6_spill] sm:$0xff]  ;;  %v1288_v57 = vshll.u32 %v1287_v56, 16 }
 0x2a7   : > { %v1113_v11 = vadd.s32 %v1112_v1, %v1110_v60  ;;  %v1256_v1 = vshll.u32 %v1255_v47, 16 }
 0x2a8   : > { %1303 = vst.msk [vmem:[%s2855_s12 + $0x60] sm:$0xff] %vm1290_vm3, %v1241_v61  ;;  %vm1331_vm1 = vcmp.eq.s32.totalorder %v2901_v8, %v1241_v61  ;;  %vm1332_vm5 = vcmp.eq.s32.totalorder %v2917_v13, %v1241_v61 }
 0x2a9   : > { %1295 = vst.msk [vmem:[%s2855_s12 + $0x20] sm:$0xff] %vm1290_vm3, %v1113_v11  ;;  %v3725_v48 = vsel %vm1331_vm1, inf, %v3305_v23  ;;  %v3728_v2 = vsel %vm1332_vm5, inf, %v3308_v20  ;;  %vm1315_vm6 = vcmp.eq.s32.totalorder %v2901_v8, %v1113_v11  ;;  %vm1316_vm7 = vcmp.eq.s32.totalorder %v2917_v13, %v1113_v11 }
 0x2aa   : > { %v1407_v7 = vmin.f32 %v3725_v48, %v3728_v2  ;;  %v3735_v55 = vsel %vm1315_vm6, inf, %v3285_v43  ;;  %v3738_v58 = vsel %vm1316_vm7, inf, %v3288_v53  ;;  %v1271_v43 = vcvt.f32.s32 %v3591_v35 }
 0x2ab   : > { %v1141_v23 = vpop.xlane.xlu0 %1140  ;;  %v1383_v20 = vmin.f32 %v3735_v55, %v3738_v58 }
 0x2ac   : > { %v1125_v44 = vpop.xlane.xlu2 %1124  ;;  %v1142_v0 = vcvt.f32.s32 %v1141_v23  ;;  %1408 = vmin.xlane.f32.xlu1 %v1407_v7  ;;  %v1272_v5 = vshll.u32 %v1271_v43, 16  ;;  %v4933_v23 = vld [vmem:[#allocation12_spill] sm:$0xff] }
 0x2ad   : > { %v1126_v17 = vcvt.f32.s32 %v1125_v44  ;;  %1384 = vmin.xlane.f32.xlu2 %v1383_v20 }
 0x2ae   : > { %v1145_v32 = vadd.s32 %v1144_v51, %v1142_v0  ;;  %v4934_v51 = vld [vmem:[#allocation9_spill] sm:$0xff]  ;;  %v4935_v0 = vld [vmem:[#allocation10_spill] sm:$0xff] }
 0x2af   : > { %v1129_v30 = vadd.s32 %v1128_v19, %v1126_v17 }
 0x2b0   : > { %1297 = vst.msk [vmem:[%s2855_s12 + $0x30] sm:$0xff] %vm1290_vm3, %v1145_v32  ;;  %vm1319_vm8 = vcmp.eq.s32.totalorder %v2901_v8, %v1145_v32  ;;  %vm1320_vm9 = vcmp.eq.s32.totalorder %v2917_v13, %v1145_v32 }
 0x2b1   : > { %1296 = vst.msk [vmem:[%s2855_s12 + $0x28] sm:$0xff] %vm1290_vm3, %v1129_v30  ;;  %v3750_v53 = vsel %vm1319_vm8, inf, %v3323_v24  ;;  %v3753_v22 = vsel %vm1320_vm9, inf, %v4927_v9  ;;  %vm1317_vm10 = vcmp.eq.s32.totalorder %v2901_v8, %v1129_v30  ;;  %vm1318_vm11 = vcmp.eq.s32.totalorder %v2917_v13, %v1129_v30 }
 0x2b2   : > { %v1389_v35 = vmin.f32 %v3750_v53, %v3753_v22  ;;  %v3760_v41 = vsel %vm1317_vm10, inf, %v4928_v6  ;;  %v3763_v10 = vsel %vm1318_vm11, inf, %v4929_v28  ;;  %v1160_v30 = vshll.u32 %v1159_v4, 16  ;;  %v4937_v28 = vld [vmem:[#allocation8_spill] sm:$0xff] }
 0x2b3   : > { %v1386_v24 = vmin.f32 %v3760_v41, %v3763_v10 }
 0x2b4   : > { %v1269_v36 = vpop.xlane.xlu2 %1268  ;;  %1390 = vmin.xlane.f32.xlu1 %v1389_v35  ;;  %v4936_v35 = vld [vmem:[#allocation7_spill] sm:$0xff] }
 0x2b5   : > { %v1270_v38 = vcvt.f32.s32 %v1269_v36  ;;  %1387 = vmin.xlane.f32.xlu0 %v1386_v24 }
 0x2b7   : > { %v1273_v63 = vadd.s32 %v1272_v5, %v1270_v38 }
 0x2b9   : > { %1305 = vst.msk [vmem:[%s2855_s12 + $0x70] sm:$0xff] %vm1290_vm3, %v1273_v63  ;;  %vm1335_vm12 = vcmp.eq.s32.totalorder %v2901_v8, %v1273_v63  ;;  %vm1336_vm13 = vcmp.eq.s32.totalorder %v2917_v13, %v1273_v63 }
 0x2ba   : > { %v1285_v40 = vpop.xlane.xlu0 %1284  ;;  %v3774_v39 = vsel %vm1335_vm12, inf, %v4930_v21  ;;  %v3777_v25 = vsel %vm1336_vm13, inf, %v4931_v49 }
 0x2bb   : > { %v1286_v14 = vcvt.f32.s32 %v1285_v40  ;;  %v1253_v46 = vpop.xlane.xlu1 %1252  ;;  %v1413_v42 = vmin.f32 %v3774_v39, %v3777_v25 }
 0x2bc   : > { %v1254_v60 = vcvt.f32.s32 %v1253_v46 }
 0x2bd   : > { %v1289_v61 = vadd.s32 %v1288_v57, %v1286_v14  ;;  %1414 = vmin.xlane.f32.xlu0 %v1413_v42 }
 0x2be   : > { %v1257_v11 = vadd.s32 %v1256_v1, %v1254_v60 }
 0x2bf   : > { %1306 = vst.msk [vmem:[%s2855_s12 + $0x78] sm:$0xff] %vm1290_vm3, %v1289_v61  ;;  %vm1337_vm14 = vcmp.eq.s32.totalorder %v2901_v8, %v1289_v61  ;;  %vm1338_vm15 = vcmp.eq.s32.totalorder %v2917_v13, %v1289_v61 }
 0x2c0   : > { %1304 = vst.msk [vmem:[%s2855_s12 + $0x68] sm:$0xff] %vm1290_vm3, %v1257_v11  ;;  %v3789_v7 = vsel %vm1337_vm14, inf, %v4932_v18  ;;  %v3792_v20 = vsel %vm1338_vm15, inf, %v4933_v23  ;;  %vm1333_vm0 = vcmp.eq.s32.totalorder %v2901_v8, %v1257_v11  ;;  %vm1334_vm2 = vcmp.eq.s32.totalorder %v2917_v13, %v1257_v11 }
 0x2c1   : > { %v1416_v26 = vmin.f32 %v3789_v7, %v3792_v20  ;;  %v3799_v44 = vsel %vm1333_vm0, inf, %v4934_v51  ;;  %v3802_v19 = vsel %vm1334_vm2, inf, %v4935_v0 }
 0x2c2   : > { %v1410_v17 = vmin.f32 %v3799_v44, %v3802_v19 }
 0x2c3   : > { %1417 = vmin.xlane.f32.xlu1 %v1416_v26  ;;  %v1157_v32 = vpop.xlane.xlu1 %1156 }
 0x2c4   : > { %v1158_v43 = vcvt.f32.s32 %v1157_v32  ;;  %1411 = vmin.xlane.f32.xlu2 %v1410_v17 }
 0x2c6   : > { %v1161_v9 = vadd.s32 %v1160_v30, %v1158_v43 }
 0x2c8   : > { %1298 = vst.msk [vmem:[%s2855_s12 + $0x38] sm:$0xff] %vm1290_vm3, %v1161_v9  ;;  %vm1321_vm4 = vcmp.eq.s32.totalorder %v2901_v8, %v1161_v9  ;;  %vm1322_vm1 = vcmp.eq.s32.totalorder %v2917_v13, %v1161_v9 }
 0x2c9   : > { %v3811_v6 = vsel %vm1321_vm4, inf, %v4936_v35  ;;  %v3814_v24 = vsel %vm1322_vm1, inf, %v4937_v28 }
 0x2ca   : > { %v1392_v36 = vmin.f32 %v3811_v6, %v3814_v24 }
 0x2cc   : > { %1393 = vmin.xlane.f32.xlu2 %v1392_v36 }
 0x2f7   : > { %v1373_v5 = vpop.xlane.xlu1 %1372 }
 0x2f8   : > { %vm1419_vm5 = vcmp.eq.f32.partialorder %v3617_v37, %v1373_v5  ;;  %vm1420_vm6 = vcmp.eq.f32.partialorder %v3620_v27, %v1373_v5 }
 0x2f9   : > { %v3821_v38 = vsel %vm1419_vm5, inf, %v3617_v37  ;;  %v3824_v56 = vsel %vm1420_vm6, inf, %v3620_v27 }
 0x2fa   : > { %v1483_v63 = vmin.f32 %v3821_v38, %v3824_v56 }
 0x2fc   : > { %1484 = vmin.xlane.f32.xlu2 %v1483_v63 }
 0x2fe   : > { %v1397_v47 = vpop.xlane.xlu0 %1396 }
 0x2ff   : > { %vm1435_vm3 = vcmp.eq.f32.partialorder %v3630_v12, %v1397_v47  ;;  %vm1436_vm7 = vcmp.eq.f32.partialorder %v3633_v54, %v1397_v47 }
 0x300   : > { %v3831_v40 = vsel %vm1435_vm3, inf, %v3630_v12  ;;  %v3834_v21 = vsel %vm1436_vm7, inf, %v3633_v54 }
 0x301   : > { %v1507_v37 = vmin.f32 %v3831_v40, %v3834_v21 }
 0x303   : > { %1508 = vmin.xlane.f32.xlu1 %v1507_v37 }
 0x306   : > { %v1376_v27 = vpop.xlane.xlu2 %1375 }
 0x307   : > { %vm1421_vm8 = vcmp.eq.f32.partialorder %v3644_v31, %v1376_v27  ;;  %vm1422_vm9 = vcmp.eq.f32.partialorder %v3647_v15, %v1376_v27 }
 0x308   : > { %v3841_v49 = vsel %vm1421_vm8, inf, %v3644_v31  ;;  %v3844_v57 = vsel %vm1422_vm9, inf, %v3647_v15 }
 0x309   : > { %v1486_v12 = vmin.f32 %v3841_v49, %v3844_v57 }
 0x30b   : > { %1487 = vmin.xlane.f32.xlu0 %v1486_v12 }
 0x30e   : > { %v1400_v54 = vpop.xlane.xlu1 %1399 }
 0x30f   : > { %v1379_v14 = vpop.xlane.xlu0 %1378  ;;  %vm1437_vm10 = vcmp.eq.f32.partialorder %v3660_v45, %v1400_v54  ;;  %vm1438_vm11 = vcmp.eq.f32.partialorder %v3663_v52, %v1400_v54 }
 0x310   : > { %vm1423_vm12 = vcmp.eq.f32.partialorder %v3671_v3, %v1379_v14  ;;  %vm1424_vm13 = vcmp.eq.f32.partialorder %v3674_v33, %v1379_v14  ;;  %v3853_v31 = vsel %vm1437_vm10, inf, %v3660_v45  ;;  %v3856_v15 = vsel %vm1438_vm11, inf, %v3663_v52 }
 0x311   : > { %v3859_v46 = vsel %vm1423_vm12, inf, %v3671_v3  ;;  %v3862_v42 = vsel %vm1424_vm13, inf, %v3674_v33  ;;  %v1510_v1 = vmin.f32 %v3853_v31, %v3856_v15 }
 0x312   : > { %v1489_v60 = vmin.f32 %v3859_v46, %v3862_v42 }
 0x313   : > { %1511 = vmin.xlane.f32.xlu2 %v1510_v1 }
 0x314   : > { %1490 = vmin.xlane.f32.xlu1 %v1489_v60 }
 0x317   : > { %v1403_v61 = vpop.xlane.xlu2 %1402  ;;  %v1382_v45 = vpop.xlane.xlu1 %1381 }
 0x318   : > { %vm1439_vm14 = vcmp.eq.f32.partialorder %v3695_v29, %v1403_v61  ;;  %vm1440_vm15 = vcmp.eq.f32.partialorder %v3698_v59, %v1403_v61  ;;  %vm1425_vm0 = vcmp.eq.f32.partialorder %v3689_v50, %v1382_v45  ;;  %vm1426_vm2 = vcmp.eq.f32.partialorder %v3692_v34, %v1382_v45 }
 0x319   : > { %v3873_v52 = vsel %vm1439_vm14, inf, %v3695_v29  ;;  %v3876_v3 = vsel %vm1440_vm15, inf, %v3698_v59  ;;  %v3879_v33 = vsel %vm1425_vm0, inf, %v3689_v50  ;;  %v3882_v11 = vsel %vm1426_vm2, inf, %v3692_v34  ;;  %v1406_v4 = vpop.xlane.xlu0 %1405 }
 0x31a   : > { %vm1441_vm4 = vcmp.eq.f32.partialorder %v3709_v62, %v1406_v4  ;;  %vm1442_vm1 = vcmp.eq.f32.partialorder %v3712_v16, %v1406_v4  ;;  %v1513_v18 = vmin.f32 %v3873_v52, %v3876_v3  ;;  %v1492_v29 = vmin.f32 %v3879_v33, %v3882_v11 }
 0x31b   : > { %v3891_v59 = vsel %vm1441_vm4, inf, %v3709_v62  ;;  %v3894_v50 = vsel %vm1442_vm1, inf, %v3712_v16 }
 0x31c   : > { %1514 = vmin.xlane.f32.xlu0 %v1513_v18  ;;  %1493 = vmin.xlane.f32.xlu2 %v1492_v29  ;;  %v1516_v34 = vmin.f32 %v3891_v59, %v3894_v50 }
 0x31e   : > { %1517 = vmin.xlane.f32.xlu1 %v1516_v34 }
 0x31f   : > { %v1409_v23 = vpop.xlane.xlu1 %1408 }
 0x320   : > { %v1385_v26 = vpop.xlane.xlu2 %1384  ;;  %vm1443_vm5 = vcmp.eq.f32.partialorder %v3725_v48, %v1409_v23  ;;  %vm1444_vm6 = vcmp.eq.f32.partialorder %v3728_v2, %v1409_v23 }
 0x321   : > { %vm1427_vm3 = vcmp.eq.f32.partialorder %v3735_v55, %v1385_v26  ;;  %vm1428_vm7 = vcmp.eq.f32.partialorder %v3738_v58, %v1385_v26  ;;  %v3903_v62 = vsel %vm1443_vm5, inf, %v3725_v48  ;;  %v3906_v16 = vsel %vm1444_vm6, inf, %v3728_v2 }
 0x322   : > { %v3909_v51 = vsel %vm1427_vm3, inf, %v3735_v55  ;;  %v3912_v0 = vsel %vm1428_vm7, inf, %v3738_v58  ;;  %v1519_v17 = vmin.f32 %v3903_v62, %v3906_v16 }
 0x323   : > { %v1495_v32 = vmin.f32 %v3909_v51, %v3912_v0 }
 0x324   : > { %1520 = vmin.xlane.f32.xlu2 %v1519_v17 }
 0x325   : > { %1496 = vmin.xlane.f32.xlu0 %v1495_v32 }
 0x327   : > { %v1391_v30 = vpop.xlane.xlu1 %1390 }
 0x328   : > { %v1388_v48 = vpop.xlane.xlu0 %1387  ;;  %vm1431_vm8 = vcmp.eq.f32.partialorder %v3750_v53, %v1391_v30  ;;  %vm1432_vm9 = vcmp.eq.f32.partialorder %v3753_v22, %v1391_v30 }
 0x329   : > { %vm1429_vm10 = vcmp.eq.f32.partialorder %v3760_v41, %v1388_v48  ;;  %vm1430_vm11 = vcmp.eq.f32.partialorder %v3763_v10, %v1388_v48  ;;  %v3923_v2 = vsel %vm1431_vm8, inf, %v3750_v53  ;;  %v3926_v55 = vsel %vm1432_vm9, inf, %v3753_v22 }
 0x32a   : > { %4938 = vst [vmem:[#allocation4_spill] sm:$0xff] %v3926_v55  ;;  %v3929_v58 = vsel %vm1429_vm10, inf, %v3760_v41  ;;  %v3932_v43 = vsel %vm1430_vm11, inf, %v3763_v10  ;;  %v1501_v9 = vmin.f32 %v3923_v2, %v3926_v55 }
 0x32b   : > { %4939 = vst [vmem:[#allocation2_spill] sm:$0xff] %v3929_v58  ;;  %v1498_v35 = vmin.f32 %v3929_v58, %v3932_v43 }
 0x32c   : > { %4940 = vst [vmem:[#allocation3_spill] sm:$0xff] %v3932_v43  ;;  %1502 = vmin.xlane.f32.xlu2 %v1501_v9 }
 0x32d   : > { %1499 = vmin.xlane.f32.xlu1 %v1498_v35 }
 0x330   : > { %v1415_v28 = vpop.xlane.xlu0 %1414 }
 0x331   : > { %vm1447_vm12 = vcmp.eq.f32.partialorder %v3774_v39, %v1415_v28  ;;  %vm1448_vm13 = vcmp.eq.f32.partialorder %v3777_v25, %v1415_v28 }
 0x332   : > { %v3941_v53 = vsel %vm1447_vm12, inf, %v3774_v39  ;;  %v3944_v22 = vsel %vm1448_vm13, inf, %v3777_v25 }
 0x333   : > { %4941 = vst [vmem:[#allocation5_spill] sm:$0xff] %v3941_v53  ;;  %v1525_v41 = vmin.f32 %v3941_v53, %v3944_v22 }
 0x334   : > { %4942 = vst [vmem:[#allocation6_spill] sm:$0xff] %v3944_v22 }
 0x335   : > { %1526 = vmin.xlane.f32.xlu1 %v1525_v41 }
 0x336   : > { %v1418_v10 = vpop.xlane.xlu1 %1417 }
 0x337   : > { %vm1449_vm14 = vcmp.eq.f32.partialorder %v3789_v7, %v1418_v10  ;;  %vm1450_vm15 = vcmp.eq.f32.partialorder %v3792_v20, %v1418_v10  ;;  %v1412_v36 = vpop.xlane.xlu2 %1411 }
 0x338   : > { %v3951_v5 = vsel %vm1449_vm14, inf, %v3789_v7  ;;  %v3954_v63 = vsel %vm1450_vm15, inf, %v3792_v20  ;;  %vm1445_vm0 = vcmp.eq.f32.partialorder %v3799_v44, %v1412_v36  ;;  %vm1446_vm2 = vcmp.eq.f32.partialorder %v3802_v19, %v1412_v36 }
 0x339   : > { %4943 = vst [vmem:[#allocation11_spill] sm:$0xff] %v3951_v5  ;;  %v3959_v39 = vsel %vm1445_vm0, inf, %v3799_v44  ;;  %v3962_v25 = vsel %vm1446_vm2, inf, %v3802_v19  ;;  %v1528_v47 = vmin.f32 %v3951_v5, %v3954_v63 }
 0x33a   : > { %4944 = vst [vmem:[#allocation12_spill] sm:$0xff] %v3954_v63  ;;  %v1522_v7 = vmin.f32 %v3959_v39, %v3962_v25 }
 0x33b   : > { %4945 = vst [vmem:[#allocation9_spill] sm:$0xff] %v3959_v39  ;;  %1529 = vmin.xlane.f32.xlu2 %v1528_v47 }
 0x33c   : > { %4946 = vst [vmem:[#allocation10_spill] sm:$0xff] %v3962_v25  ;;  %1523 = vmin.xlane.f32.xlu0 %v1522_v7 }
 0x33f   : > { %v1394_v20 = vpop.xlane.xlu2 %1393 }
 0x340   : > { %vm1433_vm4 = vcmp.eq.f32.partialorder %v3811_v6, %v1394_v20  ;;  %vm1434_vm1 = vcmp.eq.f32.partialorder %v3814_v24, %v1394_v20 }
 0x341   : > { %v3971_v37 = vsel %vm1433_vm4, inf, %v3811_v6  ;;  %v3974_v44 = vsel %vm1434_vm1, inf, %v3814_v24 }
 0x342   : > { %4947 = vst [vmem:[#allocation7_spill] sm:$0xff] %v3971_v37  ;;  %v1504_v19 = vmin.f32 %v3971_v37, %v3974_v44 }
 0x343   : > { %4948 = vst [vmem:[#allocation8_spill] sm:$0xff] %v3974_v44 }
 0x344   : > { %1505 = vmin.xlane.f32.xlu0 %v1504_v19 }
 0x36f   : > { %v1485_v27 = vpop.xlane.xlu2 %1484 }
 0x370   : > { %vm1531_vm5 = vcmp.eq.f32.partialorder %v3821_v38, %v1485_v27  ;;  %vm1532_vm6 = vcmp.eq.f32.partialorder %v3824_v56, %v1485_v27 }
 0x371   : > { %v1563_v12 = vsel %vm1531_vm5, %v2901_v8, 256  ;;  %v1564_v54 = vsel %vm1532_vm6, %v2917_v13, 256 }
 0x372   : > { %vm1595_vm3 = vcmp.lt.s32.totalorder %v1563_v12, %v1564_v54 }
 0x373   : > { %v3982_v14 = vsel %vm1595_vm3, %v1563_v12, %v1564_v54 }
 0x374   : > { %v1598_v6 = vshra.s32 %v3982_v14, 16 }
 0x376   : > { %v1509_v24 = vpop.xlane.xlu1 %1508  ;;  %v3985_v1 = vcvt.s32.f32 %v1598_v6 }
 0x377   : > { %vm1547_vm7 = vcmp.eq.f32.partialorder %v3831_v40, %v1509_v24  ;;  %vm1548_vm8 = vcmp.eq.f32.partialorder %v3834_v21, %v1509_v24 }
 0x378   : > { %v1579_v60 = vsel %vm1547_vm7, %v2901_v8, 256  ;;  %v1580_v61 = vsel %vm1548_vm8, %v2917_v13, 256  ;;  %1601 = vmin.xlane.f32.xlu0 %v3985_v1 }
 0x379   : > { %vm1723_vm9 = vcmp.lt.s32.totalorder %v1579_v60, %v1580_v61 }
 0x37a   : > { %v3992_v45 = vsel %vm1723_vm9, %v1579_v60, %v1580_v61 }
 0x37b   : > { %v1726_v4 = vshra.s32 %v3992_v45, 16 }
 0x37d   : > { %v3995_v18 = vcvt.s32.f32 %v1726_v4 }
 0x37e   : > { %v1488_v29 = vpop.xlane.xlu0 %1487 }
 0x37f   : > { %vm1533_vm10 = vcmp.eq.f32.partialorder %v3841_v49, %v1488_v29  ;;  %vm1534_vm11 = vcmp.eq.f32.partialorder %v3844_v57, %v1488_v29  ;;  %1729 = vmin.xlane.f32.xlu2 %v3995_v18 }
 0x380   : > { %v1565_v34 = vsel %vm1533_vm10, %v2901_v8, 256  ;;  %v1566_v23 = vsel %vm1534_vm11, %v2917_v13, 256 }
 0x381   : > { %vm1611_vm12 = vcmp.lt.s32.totalorder %v1565_v34, %v1566_v23 }
 0x382   : > { %v4002_v26 = vsel %vm1611_vm12, %v1565_v34, %v1566_v23 }
 0x383   : > { %v1614_v17 = vshra.s32 %v4002_v26, 16 }
 0x385   : > { %v4005_v32 = vcvt.s32.f32 %v1614_v17 }
 0x386   : > { %v1512_v30 = vpop.xlane.xlu2 %1511 }
 0x387   : > { %vm1549_vm13 = vcmp.eq.f32.partialorder %v3853_v31, %v1512_v30  ;;  %vm1550_vm14 = vcmp.eq.f32.partialorder %v3856_v15, %v1512_v30  ;;  %v1491_v48 = vpop.xlane.xlu1 %1490  ;;  %1617 = vmin.xlane.f32.xlu2 %v4005_v32 }
 0x388   : > { %v1581_v9 = vsel %vm1549_vm13, %v2901_v8, 256  ;;  %v1582_v35 = vsel %vm1550_vm14, %v2917_v13, 256  ;;  %vm1535_vm15 = vcmp.eq.f32.partialorder %v3859_v46, %v1491_v48  ;;  %vm1536_vm0 = vcmp.eq.f32.partialorder %v3862_v42, %v1491_v48 }
 0x389   : > { %vm1739_vm2 = vcmp.lt.s32.totalorder %v1581_v9, %v1582_v35  ;;  %v1567_v28 = vsel %vm1535_vm15, %v2901_v8, 256  ;;  %v1568_v41 = vsel %vm1536_vm0, %v2917_v13, 256 }
 0x38a   : > { %vm1627_vm4 = vcmp.lt.s32.totalorder %v1567_v28, %v1568_v41  ;;  %v4016_v10 = vsel %vm1739_vm2, %v1581_v9, %v1582_v35 }
 0x38b   : > { %v1742_v36 = vshra.s32 %v4016_v10, 16  ;;  %v4019_v47 = vsel %vm1627_vm4, %v1567_v28, %v1568_v41 }
 0x38c   : > { %v1630_v7 = vshra.s32 %v4019_v47, 16 }
 0x38d   : > { %v4022_v20 = vcvt.s32.f32 %v1742_v36 }
 0x38e   : > { %v4024_v19 = vcvt.s32.f32 %v1630_v7 }
 0x38f   : > { %v1515_v27 = vpop.xlane.xlu0 %1514  ;;  %v1494_v12 = vpop.xlane.xlu2 %1493  ;;  %1745 = vmin.xlane.f32.xlu0 %v4022_v20 }
 0x390   : > { %vm1551_vm1 = vcmp.eq.f32.partialorder %v3873_v52, %v1515_v27  ;;  %vm1552_vm5 = vcmp.eq.f32.partialorder %v3876_v3, %v1515_v27  ;;  %vm1537_vm6 = vcmp.eq.f32.partialorder %v3879_v33, %v1494_v12  ;;  %vm1538_vm3 = vcmp.eq.f32.partialorder %v3882_v11, %v1494_v12  ;;  %1633 = vmin.xlane.f32.xlu1 %v4024_v19 }
 0x391   : > { %v1583_v54 = vsel %vm1551_vm1, %v2901_v8, 256  ;;  %v1584_v6 = vsel %vm1552_vm5, %v2917_v13, 256  ;;  %v1569_v24 = vsel %vm1537_vm6, %v2901_v8, 256  ;;  %v1570_v60 = vsel %vm1538_vm3, %v2917_v13, 256  ;;  %v1518_v61 = vpop.xlane.xlu1 %1517 }
 0x392   : > { %vm1755_vm7 = vcmp.lt.s32.totalorder %v1583_v54, %v1584_v6  ;;  %vm1643_vm8 = vcmp.lt.s32.totalorder %v1569_v24, %v1570_v60  ;;  %vm1553_vm9 = vcmp.eq.f32.partialorder %v3891_v59, %v1518_v61  ;;  %vm1554_vm10 = vcmp.eq.f32.partialorder %v3894_v50, %v1518_v61 }
 0x393   : > { %v1585_v4 = vsel %vm1553_vm9, %v2901_v8, 256  ;;  %v1586_v29 = vsel %vm1554_vm10, %v2917_v13, 256  ;;  %v4040_v34 = vsel %vm1643_vm8, %v1569_v24, %v1570_v60  ;;  %v4042_v23 = vsel %vm1755_vm7, %v1583_v54, %v1584_v6 }
 0x394   : > { %vm1771_vm11 = vcmp.lt.s32.totalorder %v1585_v4, %v1586_v29  ;;  %v1646_v17 = vshra.s32 %v4040_v34, 16  ;;  %v1758_v30 = vshra.s32 %v4042_v23, 16 }
 0x395   : > { %v4046_v48 = vsel %vm1771_vm11, %v1585_v4, %v1586_v29 }
 0x396   : > { %v4048_v9 = vcvt.s32.f32 %v1646_v17  ;;  %v4050_v35 = vcvt.s32.f32 %v1758_v30  ;;  %v1774_v28 = vshra.s32 %v4046_v48, 16 }
 0x397   : > { %v1521_v41 = vpop.xlane.xlu2 %1520 }
 0x398   : > { %1649 = vmin.xlane.f32.xlu0 %v4048_v9  ;;  %1761 = vmin.xlane.f32.xlu1 %v4050_v35  ;;  %v1497_v36 = vpop.xlane.xlu0 %1496  ;;  %vm1555_vm12 = vcmp.eq.f32.partialorder %v3903_v62, %v1521_v41  ;;  %vm1556_vm13 = vcmp.eq.f32.partialorder %v3906_v16, %v1521_v41  ;;  %v4057_v7 = vcvt.s32.f32 %v1774_v28 }
 0x399   : > { %vm1539_vm14 = vcmp.eq.f32.partialorder %v3909_v51, %v1497_v36  ;;  %vm1540_vm15 = vcmp.eq.f32.partialorder %v3912_v0, %v1497_v36  ;;  %v1587_v27 = vsel %vm1555_vm12, %v2901_v8, 256  ;;  %v1588_v12 = vsel %vm1556_vm13, %v2917_v13, 256 }
 0x39a   : > { %v1571_v54 = vsel %vm1539_vm14, %v2901_v8, 256  ;;  %v1572_v6 = vsel %vm1540_vm15, %v2917_v13, 256  ;;  %vm1787_vm0 = vcmp.lt.s32.totalorder %v1587_v27, %v1588_v12  ;;  %1777 = vmin.xlane.f32.xlu2 %v4057_v7 }
 0x39b   : > { %vm1659_vm2 = vcmp.lt.s32.totalorder %v1571_v54, %v1572_v6  ;;  %v4066_v24 = vsel %vm1787_vm0, %v1587_v27, %v1588_v12 }
 0x39c   : > { %v1790_v60 = vshra.s32 %v4066_v24, 16  ;;  %v4069_v61 = vsel %vm1659_vm2, %v1571_v54, %v1572_v6 }
 0x39d   : > { %v1662_v4 = vshra.s32 %v4069_v61, 16 }
 0x39e   : > { %v4072_v29 = vcvt.s32.f32 %v1790_v60 }
 0x39f   : > { %v1503_v17 = vpop.xlane.xlu2 %1502  ;;  %v4074_v30 = vcvt.s32.f32 %v1662_v4 }
 0x3a0   : > { %vm1543_vm4 = vcmp.eq.f32.partialorder %v3923_v2, %v1503_v17  ;;  %vm1544_vm1 = vcmp.eq.f32.partialorder %v3926_v55, %v1503_v17  ;;  %v1500_v28 = vpop.xlane.xlu1 %1499  ;;  %1793 = vmin.xlane.f32.xlu0 %v4072_v29 }
 0x3a1   : > { %v1575_v41 = vsel %vm1543_vm4, %v2901_v8, 256  ;;  %v1576_v36 = vsel %vm1544_vm1, %v2917_v13, 256  ;;  %vm1541_vm5 = vcmp.eq.f32.partialorder %v3929_v58, %v1500_v28  ;;  %vm1542_vm6 = vcmp.eq.f32.partialorder %v3932_v43, %v1500_v28  ;;  %1665 = vmin.xlane.f32.xlu1 %v4074_v30 }
 0x3a2   : > { %vm1691_vm3 = vcmp.lt.s32.totalorder %v1575_v41, %v1576_v36  ;;  %v1573_v27 = vsel %vm1541_vm5, %v2901_v8, 256  ;;  %v1574_v12 = vsel %vm1542_vm6, %v2917_v13, 256 }
 0x3a3   : > { %vm1675_vm7 = vcmp.lt.s32.totalorder %v1573_v27, %v1574_v12  ;;  %v4086_v54 = vsel %vm1691_vm3, %v1575_v41, %v1576_v36 }
 0x3a4   : > { %v1694_v6 = vshra.s32 %v4086_v54, 16  ;;  %v4089_v60 = vsel %vm1675_vm7, %v1573_v27, %v1574_v12 }
 0x3a5   : > { %v1678_v4 = vshra.s32 %v4089_v60, 16 }
 0x3a6   : > { %v4092_v17 = vcvt.s32.f32 %v1694_v6 }
 0x3a7   : > { %v4094_v58 = vcvt.s32.f32 %v1678_v4 }
 0x3a8   : > { %v1527_v28 = vpop.xlane.xlu1 %1526  ;;  %1697 = vmin.xlane.f32.xlu0 %v4092_v17 }
 0x3a9   : > { %vm1559_vm8 = vcmp.eq.f32.partialorder %v3941_v53, %v1527_v28  ;;  %vm1560_vm9 = vcmp.eq.f32.partialorder %v3944_v22, %v1527_v28  ;;  %1681 = vmin.xlane.f32.xlu2 %v4094_v58 }
 0x3aa   : > { %v1591_v41 = vsel %vm1559_vm8, %v2901_v8, 256  ;;  %v1592_v36 = vsel %vm1560_vm9, %v2917_v13, 256 }
 0x3ab   : > { %vm1819_vm10 = vcmp.lt.s32.totalorder %v1591_v41, %v1592_v36 }
 0x3ac   : > { %v4102_v27 = vsel %vm1819_vm10, %v1591_v41, %v1592_v36 }
 0x3ad   : > { %v1822_v12 = vshra.s32 %v4102_v27, 16 }
 0x3ae   : > { %v1530_v6 = vpop.xlane.xlu2 %1529 }
 0x3af   : > { %vm1561_vm11 = vcmp.eq.f32.partialorder %v3951_v5, %v1530_v6  ;;  %vm1562_vm12 = vcmp.eq.f32.partialorder %v3954_v63, %v1530_v6  ;;  %v1524_v4 = vpop.xlane.xlu0 %1523  ;;  %v4107_v53 = vcvt.s32.f32 %v1822_v12 }
 0x3b0   : > { %v1593_v28 = vsel %vm1561_vm11, %v2901_v8, 256  ;;  %v1594_v22 = vsel %vm1562_vm12, %v2917_v13, 256  ;;  %vm1557_vm13 = vcmp.eq.f32.partialorder %v3959_v39, %v1524_v4  ;;  %vm1558_vm14 = vcmp.eq.f32.partialorder %v3962_v25, %v1524_v4 }
 0x3b1   : > { %vm1835_vm15 = vcmp.lt.s32.totalorder %v1593_v28, %v1594_v22  ;;  %v1589_v41 = vsel %vm1557_vm13, %v2901_v8, 256  ;;  %v1590_v36 = vsel %vm1558_vm14, %v2917_v13, 256  ;;  %1825 = vmin.xlane.f32.xlu2 %v4107_v53  ;;  %v1725_v25 = vand.u32 65535, %v3992_v45 }
 0x3b2   : > { %vm1803_vm0 = vcmp.lt.s32.totalorder %v1589_v41, %v1590_v36  ;;  %v4116_v6 = vsel %vm1835_vm15, %v1593_v28, %v1594_v22  ;;  %v1629_v45 = vand.u32 65535, %v4019_v47  ;;  %v1757_v47 = vand.u32 65535, %v4042_v23 }
 0x3b3   : > { %v1838_v12 = vshra.s32 %v4116_v6, 16  ;;  %v4119_v63 = vsel %vm1803_vm0, %v1589_v41, %v1590_v36 }
 0x3b4   : > { %v1806_v5 = vshra.s32 %v4119_v63, 16 }
 0x3b5   : > { %v4122_v43 = vcvt.s32.f32 %v1838_v12  ;;  %v1597_v12 = vand.u32 65535, %v3982_v14  ;;  %v1613_v14 = vand.u32 65535, %v4002_v26  ;;  %v1631_v26 = vcvt.s32.f32 %v1629_v45 }
 0x3b6   : > { %v4124_v39 = vcvt.s32.f32 %v1806_v5 }
 0x3b7   : > { %1841 = vmin.xlane.f32.xlu0 %v4122_v43  ;;  %v1506_v4 = vpop.xlane.xlu0 %1505 }
 0x3b8   : > { %vm1545_vm2 = vcmp.eq.f32.partialorder %v3971_v37, %v1506_v4  ;;  %vm1546_vm4 = vcmp.eq.f32.partialorder %v3974_v44, %v1506_v4  ;;  %1809 = vmin.xlane.f32.xlu1 %v4124_v39  ;;  %v1599_v4 = vcvt.s32.f32 %v1597_v12  ;;  %v1615_v12 = vcvt.s32.f32 %v1613_v14 }
 0x3b9   : > { %v1577_v22 = vsel %vm1545_vm2, %v2901_v8, 256  ;;  %v1578_v28 = vsel %vm1546_vm4, %v2917_v13, 256 }
 0x3ba   : > { %vm1707_vm1 = vcmp.lt.s32.totalorder %v1577_v22, %v1578_v28 }
 0x3bb   : > { %v4132_v41 = vsel %vm1707_vm1, %v1577_v22, %v1578_v28  ;;  %v1727_v28 = vcvt.s32.f32 %v1725_v25 }
 0x3bc   : > { %v1710_v36 = vshra.s32 %v4132_v41, 16 }
 0x3be   : > { %v4135_v5 = vcvt.s32.f32 %v1710_v36 }
 0x3c0   : > { %1713 = vmin.xlane.f32.xlu1 %v4135_v5 }
 0x3eb   : > { %v4139_v37 = vpop.xlane.xlu0 %1601 }
 0x3ec   : > { %vm1603_vm5 = vcmp.eq.f32.partialorder %v3985_v1, %v4139_v37 }
 0x3ed   : > { %v1604_v44 = vsel %vm1603_vm5, %v1599_v4, inf  ;;  %vm1851_vm5 = vcmask 23568  }
 0x3ee   : > { %1605 = vmin.xlane.f32.xlu1 %v1604_v44  ;;  %v1741_v44 = vand.u32 65535, %v4016_v10  ;;  %v1645_v10 = vand.u32 65535, %v4040_v34 }
 0x3f0   : > { %v1743_v4 = vcvt.s32.f32 %v1741_v44 }
 0x3f2   : > { %v4144_v22 = vpop.xlane.xlu2 %1729 }
 0x3f3   : > { %vm1731_vm6 = vcmp.eq.f32.partialorder %v3995_v18, %v4144_v22 }
 0x3f4   : > { %v1732_v36 = vsel %vm1731_vm6, %v1727_v28, inf }
 0x3f5   : > { %1733 = vmin.xlane.f32.xlu0 %v1732_v36  ;;  %v1773_v36 = vand.u32 65535, %v4046_v48  ;;  %v1789_v48 = vand.u32 65535, %v4066_v24  ;;  %v1693_v24 = vand.u32 65535, %v4086_v54  ;;  %v1821_v54 = vand.u32 65535, %v4102_v27 }
 0x3f7   : > { %v1775_v45 = vcvt.s32.f32 %v1773_v36 }
 0x3fa   : > { %v4149_v55 = vpop.xlane.xlu2 %1617 }
 0x3fb   : > { %vm1619_vm3 = vcmp.eq.f32.partialorder %v4005_v32, %v4149_v55 }
 0x3fc   : > { %v1620_v1 = vsel %vm1619_vm3, %v1615_v12, inf }
 0x3fd   : > { %1621 = vmin.xlane.f32.xlu0 %v1620_v1  ;;  %v1647_v1 = vcvt.s32.f32 %v1645_v10 }
 0x402   : > { %v4155_v25 = vpop.xlane.xlu0 %1745 }
 0x403   : > { %v4157_v18 = vpop.xlane.xlu1 %1633  ;;  %vm1747_vm7 = vcmp.eq.f32.partialorder %v4022_v20, %v4155_v25  ;;  %v1759_v20 = vcvt.s32.f32 %v1757_v47  ;;  %v1695_v47 = vcvt.s32.f32 %v1693_v24  ;;  %v1736_v24 = vcvt.f32.s32 %v4144_v22 }
 0x404   : > { %v1748_v28 = vsel %vm1747_vm7, %v1743_v4, inf  ;;  %vm1635_vm8 = vcmp.eq.f32.partialorder %v4024_v19, %v4157_v18  ;;  %v1661_v4 = vand.u32 65535, %v4069_v61  ;;  %v1677_v61 = vand.u32 65535, %v4089_v60 }
 0x405   : > { %1749 = vmin.xlane.f32.xlu1 %v1748_v28  ;;  %v1636_v32 = vsel %vm1635_vm8, %v1631_v26, inf  ;;  %v1791_v26 = vcvt.s32.f32 %v1789_v48  ;;  %v1823_v60 = vcvt.s32.f32 %v1821_v54 }
 0x406   : > { %1637 = vmin.xlane.f32.xlu2 %v1636_v32  ;;  %v1663_v28 = vcvt.s32.f32 %v1661_v4 }
 0x40b   : > { %v4166_v14 = vpop.xlane.xlu0 %1649  ;;  %v4168_v12 = vpop.xlane.xlu1 %1761 }
 0x40c   : > { %vm1651_vm9 = vcmp.eq.f32.partialorder %v4048_v9, %v4166_v14  ;;  %vm1763_vm10 = vcmp.eq.f32.partialorder %v4050_v35, %v4168_v12 }
 0x40d   : > { %v4174_v19 = vpop.xlane.xlu2 %1777  ;;  %v1652_v44 = vsel %vm1651_vm9, %v1647_v1, inf  ;;  %v1764_v34 = vsel %vm1763_vm10, %v1759_v20, inf }
 0x40e   : > { %1653 = vmin.xlane.f32.xlu1 %v1652_v44  ;;  %1765 = vmin.xlane.f32.xlu2 %v1764_v34  ;;  %vm1779_vm11 = vcmp.eq.f32.partialorder %v4057_v7, %v4174_v19  ;;  %v1837_v34 = vand.u32 65535, %v4116_v6  ;;  %v1709_v6 = vand.u32 65535, %v4132_v41 }
 0x40f   : > { %v1780_v23 = vsel %vm1779_vm11, %v1775_v45, inf }
 0x410   : > { %1781 = vmin.xlane.f32.xlu0 %v1780_v23  ;;  %v1711_v4 = vcvt.s32.f32 %v1709_v6 }
 0x413   : > { %v4180_v9 = vpop.xlane.xlu0 %1793 }
 0x414   : > { %v4182_v35 = vpop.xlane.xlu1 %1665  ;;  %vm1795_vm12 = vcmp.eq.f32.partialorder %v4072_v29, %v4180_v9  ;;  %v1679_v29 = vcvt.s32.f32 %v1677_v61 }
 0x415   : > { %v1796_v32 = vsel %vm1795_vm12, %v1791_v26, inf  ;;  %vm1667_vm13 = vcmp.eq.f32.partialorder %v4074_v30, %v4182_v35 }
 0x416   : > { %1797 = vmin.xlane.f32.xlu1 %v1796_v32  ;;  %v1668_v7 = vsel %vm1667_vm13, %v1663_v28, inf }
 0x417   : > { %1669 = vmin.xlane.f32.xlu2 %v1668_v7 }
 0x41b   : > { %v4190_v10 = vpop.xlane.xlu0 %1697 }
 0x41c   : > { %v4192_v36 = vpop.xlane.xlu2 %1681  ;;  %vm1699_vm14 = vcmp.eq.f32.partialorder %v4092_v17, %v4190_v10  ;;  %v1805_v17 = vand.u32 65535, %v4119_v63 }
 0x41d   : > { %v1700_v1 = vsel %vm1699_vm14, %v1695_v47, inf  ;;  %vm1683_vm15 = vcmp.eq.f32.partialorder %v4094_v58, %v4192_v36  ;;  %v1839_v58 = vcvt.s32.f32 %v1837_v34  ;;  %v1737_v47 = vshll.u32 %v1736_v24, 16 }
 0x41e   : > { %1701 = vmin.xlane.f32.xlu1 %v1700_v1  ;;  %v1684_v30 = vsel %vm1683_vm15, %v1679_v29, inf  ;;  %v1807_v27 = vcvt.s32.f32 %v1805_v17  ;;  %v1624_v1 = vcvt.f32.s32 %v4149_v55  ;;  %v1752_v34 = vcvt.f32.s32 %v4155_v25 }
 0x41f   : > { %1685 = vmin.xlane.f32.xlu0 %v1684_v30 }
 0x424   : > { %v4199_v20 = vpop.xlane.xlu2 %1825 }
 0x425   : > { %vm1827_vm0 = vcmp.eq.f32.partialorder %v4107_v53, %v4199_v20 }
 0x426   : > { %v1828_v44 = vsel %vm1827_vm0, %v1823_v60, inf  ;;  %v1625_v60 = vshll.u32 %v1624_v1, 16 }
 0x427   : > { %1829 = vmin.xlane.f32.xlu0 %v1828_v44 }
 0x42a   : > { %v4205_v45 = vpop.xlane.xlu0 %1841 }
 0x42b   : > { %v4207_v23 = vpop.xlane.xlu1 %1809  ;;  %vm1843_vm2 = vcmp.eq.f32.partialorder %v4122_v43, %v4205_v45  ;;  %v1608_v43 = vcvt.f32.s32 %v4139_v37 }
 0x42c   : > { %v1844_v48 = vsel %vm1843_vm2, %v1839_v58, inf  ;;  %vm1811_vm4 = vcmp.eq.f32.partialorder %v4124_v39, %v4207_v23 }
 0x42d   : > { %1845 = vmin.xlane.f32.xlu1 %v1844_v48  ;;  %v1812_v53 = vsel %vm1811_vm4, %v1807_v27, inf  ;;  %v1609_v32 = vshll.u32 %v1608_v43, 16  ;;  %v1753_v27 = vshll.u32 %v1752_v34, 16 }
 0x42e   : > { %1813 = vmin.xlane.f32.xlu2 %v1812_v53 }
 0x433   : > { %v4214_v63 = vpop.xlane.xlu1 %1713 }
 0x434   : > { %vm1715_vm1 = vcmp.eq.f32.partialorder %v4135_v5, %v4214_v63 }
 0x435   : > { %v1716_v26 = vsel %vm1715_vm1, %v1711_v4, inf }
 0x436   : > { %1717 = vmin.xlane.f32.xlu2 %v1716_v26 }
 0x461   : > { %v1606_v28 = vpop.xlane.xlu1 %1605 }
 0x462   : > { %v1607_v7 = vcvt.f32.s32 %v1606_v28 }
 0x464   : > { %v1610_v39 = vadd.s32 %v1609_v32, %v1607_v7 }
 0x466   : > { %1852 = vst.msk [vmem:[%s2855_s12] sm:$0xff] %vm1851_vm5, %v1610_v39  ;;  %vm1868_vm6 = vcmp.eq.s32.totalorder %v2901_v8, %v1610_v39  ;;  %vm1869_vm3 = vcmp.eq.s32.totalorder %v2917_v13, %v1610_v39  ;;  %v1784_v39 = vcvt.f32.s32 %v4174_v19  ;;  %v1672_v19 = vcvt.f32.s32 %v4182_v35 }
 0x467   : > { %v4225_v41 = vsel %vm1868_vm6, inf, %v3821_v38  ;;  %v4228_v5 = vsel %vm1869_vm3, inf, %v3824_v56 }
 0x468   : > { %v1734_v37 = vpop.xlane.xlu0 %1733  ;;  %v1932_v61 = vmin.f32 %v4225_v41, %v4228_v5  ;;  %v1785_v1 = vshll.u32 %v1784_v39, 16 }
 0x469   : > { %v1735_v29 = vcvt.f32.s32 %v1734_v37 }
 0x46a   : > { %1933 = vmin.xlane.f32.xlu2 %v1932_v61 }
 0x46b   : > { %v1738_v22 = vadd.s32 %v1737_v47, %v1735_v29 }
 0x46d   : > { %1860 = vst.msk [vmem:[%s2855_s12 + $0x40] sm:$0xff] %vm1851_vm5, %v1738_v22  ;;  %vm1884_vm7 = vcmp.eq.s32.totalorder %v2901_v8, %v1738_v22  ;;  %vm1885_vm8 = vcmp.eq.s32.totalorder %v2917_v13, %v1738_v22 }
 0x46e   : > { %v4238_v38 = vsel %vm1884_vm7, inf, %v3831_v40  ;;  %v4241_v56 = vsel %vm1885_vm8, inf, %v3834_v21  ;;  %v1640_v40 = vcvt.f32.s32 %v4157_v18  ;;  %v1656_v18 = vcvt.f32.s32 %v4166_v14 }
 0x46f   : > { %v1956_v30 = vmin.f32 %v4238_v38, %v4241_v56 }
 0x470   : > { %v1622_v54 = vpop.xlane.xlu0 %1621  ;;  %v1641_v6 = vshll.u32 %v1640_v40, 16 }
 0x471   : > { %v1623_v44 = vcvt.f32.s32 %v1622_v54  ;;  %1957 = vmin.xlane.f32.xlu1 %v1956_v30  ;;  %v1800_v30 = vcvt.f32.s32 %v4180_v9 }
 0x473   : > { %v1626_v55 = vadd.s32 %v1625_v60, %v1623_v44  ;;  %v1801_v34 = vshll.u32 %v1800_v30, 16 }
 0x475   : > { %1853 = vst.msk [vmem:[%s2855_s12 + $0x8] sm:$0xff] %vm1851_vm5, %v1626_v55  ;;  %vm1870_vm9 = vcmp.eq.s32.totalorder %v2901_v8, %v1626_v55  ;;  %vm1871_vm10 = vcmp.eq.s32.totalorder %v2917_v13, %v1626_v55 }
 0x476   : > { %v4252_v21 = vsel %vm1870_vm9, inf, %v3841_v49  ;;  %v4255_v17 = vsel %vm1871_vm10, inf, %v3844_v57  ;;  %v1768_v49 = vcvt.f32.s32 %v4168_v12 }
 0x477   : > { %v1935_v58 = vmin.f32 %v4252_v21, %v4255_v17 }
 0x478   : > { %v1750_v25 = vpop.xlane.xlu1 %1749  ;;  %v1769_v37 = vshll.u32 %v1768_v49, 16 }
 0x479   : > { %v1638_v48 = vpop.xlane.xlu2 %1637  ;;  %v1751_v53 = vcvt.f32.s32 %v1750_v25  ;;  %1936 = vmin.xlane.f32.xlu0 %v1935_v58  ;;  %v1673_v25 = vshll.u32 %v1672_v19, 16 }
 0x47a   : > { %v1639_v4 = vcvt.f32.s32 %v1638_v48 }
 0x47b   : > { %v1754_v26 = vadd.s32 %v1753_v27, %v1751_v53 }
 0x47c   : > { %v1642_v43 = vadd.s32 %v1641_v6, %v1639_v4  ;;  %v1704_v4 = vcvt.f32.s32 %v4190_v10 }
 0x47d   : > { %1861 = vst.msk [vmem:[%s2855_s12 + $0x48] sm:$0xff] %vm1851_vm5, %v1754_v26  ;;  %vm1886_vm11 = vcmp.eq.s32.totalorder %v2901_v8, %v1754_v26  ;;  %vm1887_vm12 = vcmp.eq.s32.totalorder %v2917_v13, %v1754_v26  ;;  %v1688_v26 = vcvt.f32.s32 %v4192_v36 }
 0x47e   : > { %1854 = vst.msk [vmem:[%s2855_s12 + $0x10] sm:$0xff] %vm1851_vm5, %v1642_v43  ;;  %vm1872_vm13 = vcmp.eq.s32.totalorder %v2901_v8, %v1642_v43  ;;  %vm1873_vm14 = vcmp.eq.s32.totalorder %v2917_v13, %v1642_v43  ;;  %v4270_v57 = vsel %vm1886_vm11, inf, %v3853_v31  ;;  %v4273_v28 = vsel %vm1887_vm12, inf, %v3856_v15 }
 0x47f   : > { %v4276_v14 = vsel %vm1872_vm13, inf, %v3859_v46  ;;  %v4279_v12 = vsel %vm1873_vm14, inf, %v3862_v42  ;;  %v1959_v32 = vmin.f32 %v4270_v57, %v4273_v28  ;;  %v1657_v15 = vshll.u32 %v1656_v18, 16 }
 0x480   : > { %v1938_v7 = vmin.f32 %v4276_v14, %v4279_v12 }
 0x481   : > { %v1766_v31 = vpop.xlane.xlu2 %1765  ;;  %v1654_v24 = vpop.xlane.xlu1 %1653  ;;  %1960 = vmin.xlane.f32.xlu2 %v1959_v32 }
 0x482   : > { %v1767_v46 = vcvt.f32.s32 %v1766_v31  ;;  %v1655_v61 = vcvt.f32.s32 %v1654_v24  ;;  %1939 = vmin.xlane.f32.xlu1 %v1938_v7 }
 0x483   : > { %v1782_v42 = vpop.xlane.xlu0 %1781 }
 0x484   : > { %v1770_v47 = vadd.s32 %v1769_v37, %v1767_v46  ;;  %v1658_v29 = vadd.s32 %v1657_v15, %v1655_v61  ;;  %v1783_v22 = vcvt.f32.s32 %v1782_v42  ;;  %v4949_v15 = vld [vmem:[#allocation4_spill] sm:$0xff]  ;;  %v4951_v61 = vld [vmem:[#allocation3_spill] sm:$0xff] }
 0x486   : > { %1862 = vst.msk [vmem:[%s2855_s12 + $0x50] sm:$0xff] %vm1851_vm5, %v1770_v47  ;;  %vm1888_vm15 = vcmp.eq.s32.totalorder %v2901_v8, %v1770_v47  ;;  %vm1889_vm0 = vcmp.eq.s32.totalorder %v2917_v13, %v1770_v47  ;;  %vm1874_vm2 = vcmp.eq.s32.totalorder %v2901_v8, %v1658_v29  ;;  %vm1875_vm4 = vcmp.eq.s32.totalorder %v2917_v13, %v1658_v29 }
 0x487   : > { %1855 = vst.msk [vmem:[%s2855_s12 + $0x18] sm:$0xff] %vm1851_vm5, %v1658_v29  ;;  %v1786_v54 = vadd.s32 %v1785_v1, %v1783_v22  ;;  %v4297_v60 = vsel %vm1888_vm15, inf, %v3873_v52  ;;  %v4300_v9 = vsel %vm1889_vm0, inf, %v3876_v3  ;;  %v4303_v35 = vsel %vm1874_vm2, inf, %v3879_v33 }
 0x488   : > { %v1962_v44 = vmin.f32 %v4297_v60, %v4300_v9  ;;  %v4308_v55 = vsel %vm1875_vm4, inf, %v3882_v11 }
 0x489   : > { %1863 = vst.msk [vmem:[%s2855_s12 + $0x58] sm:$0xff] %vm1851_vm5, %v1786_v54  ;;  %vm1890_vm1 = vcmp.eq.s32.totalorder %v2901_v8, %v1786_v54  ;;  %vm1891_vm6 = vcmp.eq.s32.totalorder %v2917_v13, %v1786_v54  ;;  %v1941_v52 = vmin.f32 %v4303_v35, %v4308_v55  ;;  %v1798_v3 = vpop.xlane.xlu1 %1797  ;;  %v1816_v54 = vcvt.f32.s32 %v4207_v23 }
 0x48a   : > { %1963 = vmin.xlane.f32.xlu0 %v1962_v44  ;;  %v1670_v33 = vpop.xlane.xlu2 %1669  ;;  %v1799_v40 = vcvt.f32.s32 %v1798_v3  ;;  %v4317_v58 = vsel %vm1890_vm1, inf, %v3891_v59  ;;  %v4320_v11 = vsel %vm1891_vm6, inf, %v3894_v50 }
 0x48b   : > { %1942 = vmin.xlane.f32.xlu2 %v1941_v52  ;;  %v1671_v27 = vcvt.f32.s32 %v1670_v33  ;;  %v1965_v48 = vmin.f32 %v4317_v58, %v4320_v11  ;;  %v4952_v52 = vld [vmem:[#allocation5_spill] sm:$0xff] }
 0x48c   : > { %v1802_v53 = vadd.s32 %v1801_v34, %v1799_v40  ;;  %v4953_v34 = vld [vmem:[#allocation6_spill] sm:$0xff] }
 0x48d   : > { %v1674_v6 = vadd.s32 %v1673_v25, %v1671_v27  ;;  %1966 = vmin.xlane.f32.xlu1 %v1965_v48  ;;  %v1817_v27 = vshll.u32 %v1816_v54, 16 }
 0x48e   : > { %1864 = vst.msk [vmem:[%s2855_s12 + $0x60] sm:$0xff] %vm1851_vm5, %v1802_v53  ;;  %vm1892_vm3 = vcmp.eq.s32.totalorder %v2901_v8, %v1802_v53  ;;  %vm1893_vm7 = vcmp.eq.s32.totalorder %v2917_v13, %v1802_v53 }
 0x48f   : > { %1856 = vst.msk [vmem:[%s2855_s12 + $0x20] sm:$0xff] %vm1851_vm5, %v1674_v6  ;;  %vm1876_vm8 = vcmp.eq.s32.totalorder %v2901_v8, %v1674_v6  ;;  %vm1877_vm9 = vcmp.eq.s32.totalorder %v2917_v13, %v1674_v6  ;;  %v4335_v59 = vsel %vm1892_vm3, inf, %v3903_v62  ;;  %v4338_v50 = vsel %vm1893_vm7, inf, %v3906_v16 }
 0x490   : > { %v4341_v10 = vsel %vm1876_vm8, inf, %v3909_v51  ;;  %v4344_v36 = vsel %vm1877_vm9, inf, %v3912_v0  ;;  %v1968_v43 = vmin.f32 %v4335_v59, %v4338_v50  ;;  %v1705_v62 = vshll.u32 %v1704_v4, 16 }
 0x491   : > { %v1702_v18 = vpop.xlane.xlu1 %1701  ;;  %v1944_v49 = vmin.f32 %v4341_v10, %v4344_v36  ;;  %v1689_v16 = vshll.u32 %v1688_v26, 16  ;;  %v1832_v0 = vcvt.f32.s32 %v4199_v20  ;;  %v4950_v20 = vld [vmem:[#allocation2_spill] sm:$0xff]  ;;  %v1720_v4 = vcvt.f32.s32 %v4214_v63  ;;  %v4954_v26 = vld [vmem:[#allocation11_spill] sm:$0xff] }
 0x492   : > { %v1686_v32 = vpop.xlane.xlu0 %1685  ;;  %v1703_v7 = vcvt.f32.s32 %v1702_v18  ;;  %v4955_v18 = vld [vmem:[#allocation12_spill] sm:$0xff] }
 0x493   : > { %v1687_v39 = vcvt.f32.s32 %v1686_v32  ;;  %1945 = vmin.xlane.f32.xlu0 %v1944_v49  ;;  %1969 = vmin.xlane.f32.xlu2 %v1968_v43  ;;  %v1833_v1 = vshll.u32 %v1832_v0, 16 }
 0x494   : > { %v1706_v51 = vadd.s32 %v1705_v62, %v1703_v7  ;;  %v4956_v62 = vld [vmem:[#allocation9_spill] sm:$0xff]  ;;  %v4957_v7 = vld [vmem:[#allocation10_spill] sm:$0xff] }
 0x495   : > { %v1690_v31 = vadd.s32 %v1689_v16, %v1687_v39 }
 0x496   : > { %1858 = vst.msk [vmem:[%s2855_s12 + $0x30] sm:$0xff] %vm1851_vm5, %v1706_v51  ;;  %vm1880_vm10 = vcmp.eq.s32.totalorder %v2901_v8, %v1706_v51  ;;  %vm1881_vm11 = vcmp.eq.s32.totalorder %v2917_v13, %v1706_v51 }
 0x497   : > { %1857 = vst.msk [vmem:[%s2855_s12 + $0x28] sm:$0xff] %vm1851_vm5, %v1690_v31  ;;  %vm1878_vm12 = vcmp.eq.s32.totalorder %v2901_v8, %v1690_v31  ;;  %vm1879_vm13 = vcmp.eq.s32.totalorder %v2917_v13, %v1690_v31  ;;  %v4360_v24 = vsel %vm1880_vm10, inf, %v3923_v2  ;;  %v4363_v37 = vsel %vm1881_vm11, inf, %v4949_v15 }
 0x498   : > { %v4366_v46 = vsel %vm1878_vm12, inf, %v4950_v20  ;;  %v4369_v42 = vsel %vm1879_vm13, inf, %v4951_v61  ;;  %v1950_v47 = vmin.f32 %v4360_v24, %v4363_v37  ;;  %v1848_v2 = vcvt.f32.s32 %v4205_v45  ;;  %v4958_v20 = vld [vmem:[#allocation7_spill] sm:$0xff] }
 0x499   : > { %v1947_v29 = vmin.f32 %v4366_v46, %v4369_v42  ;;  %v1721_v31 = vshll.u32 %v1720_v4, 16 }
 0x49a   : > { %v1830_v22 = vpop.xlane.xlu0 %1829  ;;  %v1849_v40 = vshll.u32 %v1848_v2, 16 }
 0x49b   : > { %v1831_v30 = vcvt.f32.s32 %v1830_v22  ;;  %1948 = vmin.xlane.f32.xlu1 %v1947_v29  ;;  %1951 = vmin.xlane.f32.xlu2 %v1950_v47  ;;  %v4959_v47 = vld [vmem:[#allocation8_spill] sm:$0xff] }
 0x49d   : > { %v1834_v19 = vadd.s32 %v1833_v1, %v1831_v30 }
 0x49f   : > { %1866 = vst.msk [vmem:[%s2855_s12 + $0x70] sm:$0xff] %vm1851_vm5, %v1834_v19  ;;  %vm1896_vm14 = vcmp.eq.s32.totalorder %v2901_v8, %v1834_v19  ;;  %vm1897_vm15 = vcmp.eq.s32.totalorder %v2917_v13, %v1834_v19 }
 0x4a0   : > { %v1846_v44 = vpop.xlane.xlu1 %1845  ;;  %v4382_v3 = vsel %vm1896_vm14, inf, %v4952_v52  ;;  %v4385_v33 = vsel %vm1897_vm15, inf, %v4953_v34 }
 0x4a1   : > { %v1847_v45 = vcvt.f32.s32 %v1846_v44  ;;  %v1814_v25 = vpop.xlane.xlu2 %1813  ;;  %v1974_v23 = vmin.f32 %v4382_v3, %v4385_v33 }
 0x4a2   : > { %v1815_v48 = vcvt.f32.s32 %v1814_v25 }
 0x4a3   : > { %v1850_v53 = vadd.s32 %v1849_v40, %v1847_v45  ;;  %1975 = vmin.xlane.f32.xlu1 %v1974_v23 }
 0x4a4   : > { %v1818_v6 = vadd.s32 %v1817_v27, %v1815_v48 }
 0x4a5   : > { %1867 = vst.msk [vmem:[%s2855_s12 + $0x78] sm:$0xff] %vm1851_vm5, %v1850_v53  ;;  %vm1898_vm0 = vcmp.eq.s32.totalorder %v2901_v8, %v1850_v53  ;;  %vm1899_vm2 = vcmp.eq.s32.totalorder %v2917_v13, %v1850_v53 }
 0x4a6   : > { %1865 = vst.msk [vmem:[%s2855_s12 + $0x68] sm:$0xff] %vm1851_vm5, %v1818_v6  ;;  %vm1894_vm4 = vcmp.eq.s32.totalorder %v2901_v8, %v1818_v6  ;;  %vm1895_vm1 = vcmp.eq.s32.totalorder %v2917_v13, %v1818_v6  ;;  %v4399_v43 = vsel %vm1898_vm0, inf, %v4954_v26  ;;  %v4402_v49 = vsel %vm1899_vm2, inf, %v4955_v18 }
 0x4a7   : > { %v1977_v63 = vmin.f32 %v4399_v43, %v4402_v49  ;;  %v4407_v32 = vsel %vm1894_vm4, inf, %v4956_v62  ;;  %v4410_v16 = vsel %vm1895_vm1, inf, %v4957_v7 }
 0x4a8   : > { %v1971_v39 = vmin.f32 %v4407_v32, %v4410_v16 }
 0x4a9   : > { %1978 = vmin.xlane.f32.xlu2 %v1977_v63  ;;  %v1718_v51 = vpop.xlane.xlu2 %1717 }
 0x4aa   : > { %v1719_v0 = vcvt.f32.s32 %v1718_v51  ;;  %1972 = vmin.xlane.f32.xlu0 %v1971_v39 }
 0x4ac   : > { %v1722_v15 = vadd.s32 %v1721_v31, %v1719_v0 }
 0x4ae   : > { %1859 = vst.msk [vmem:[%s2855_s12 + $0x38] sm:$0xff] %vm1851_vm5, %v1722_v15  ;;  %vm1882_vm6 = vcmp.eq.s32.totalorder %v2901_v8, %v1722_v15  ;;  %vm1883_vm3 = vcmp.eq.s32.totalorder %v2917_v13, %v1722_v15 }
 0x4af   : > { %v4419_v61 = vsel %vm1882_vm6, inf, %v4958_v20  ;;  %v4422_v29 = vsel %vm1883_vm3, inf, %v4959_v47 }
 0x4b0   : > { %v1953_v22 = vmin.f32 %v4419_v61, %v4422_v29 }
 0x4b2   : > { %1954 = vmin.xlane.f32.xlu0 %v1953_v22 }
 0x4dd   : > { %v1934_v1 = vpop.xlane.xlu2 %1933 }
 0x4de   : > { %vm1980_vm7 = vcmp.eq.f32.partialorder %v4225_v41, %v1934_v1  ;;  %vm1981_vm8 = vcmp.eq.f32.partialorder %v4228_v5, %v1934_v1 }
 0x4df   : > { %v4429_v30 = vsel %vm1980_vm7, inf, %v4225_v41  ;;  %v4432_v2 = vsel %vm1981_vm8, inf, %v4228_v5 }
 0x4e0   : > { %v2044_v19 = vmin.f32 %v4429_v30, %v4432_v2 }
 0x4e2   : > { %2045 = vmin.xlane.f32.xlu0 %v2044_v19 }
 0x4e4   : > { %v1958_v54 = vpop.xlane.xlu1 %1957 }
 0x4e5   : > { %vm1996_vm5 = vcmp.eq.f32.partialorder %v4238_v38, %v1958_v54  ;;  %vm1997_vm9 = vcmp.eq.f32.partialorder %v4241_v56, %v1958_v54 }
 0x4e6   : > { %v4439_v44 = vsel %vm1996_vm5, inf, %v4238_v38  ;;  %v4442_v52 = vsel %vm1997_vm9, inf, %v4241_v56 }
 0x4e7   : > { %v2068_v41 = vmin.f32 %v4439_v44, %v4442_v52 }
 0x4e9   : > { %2069 = vmin.xlane.f32.xlu2 %v2068_v41 }
 0x4ec   : > { %v1937_v5 = vpop.xlane.xlu0 %1936 }
 0x4ed   : > { %vm1982_vm10 = vcmp.eq.f32.partialorder %v4252_v21, %v1937_v5  ;;  %vm1983_vm11 = vcmp.eq.f32.partialorder %v4255_v17, %v1937_v5 }
 0x4ee   : > { %v4449_v34 = vsel %vm1982_vm10, inf, %v4252_v21  ;;  %v4452_v40 = vsel %vm1983_vm11, inf, %v4255_v17 }
 0x4ef   : > { %v2047_v38 = vmin.f32 %v4449_v34, %v4452_v40 }
 0x4f1   : > { %2048 = vmin.xlane.f32.xlu1 %v2047_v38 }
 0x4f4   : > { %v1961_v56 = vpop.xlane.xlu2 %1960 }
 0x4f5   : > { %vm1998_vm12 = vcmp.eq.f32.partialorder %v4270_v57, %v1961_v56  ;;  %vm1999_vm13 = vcmp.eq.f32.partialorder %v4273_v28, %v1961_v56  ;;  %v1940_v45 = vpop.xlane.xlu1 %1939 }
 0x4f6   : > { %v4459_v25 = vsel %vm1998_vm12, inf, %v4270_v57  ;;  %v4462_v23 = vsel %vm1999_vm13, inf, %v4273_v28  ;;  %vm1984_vm14 = vcmp.eq.f32.partialorder %v4276_v14, %v1940_v45  ;;  %vm1985_vm15 = vcmp.eq.f32.partialorder %v4279_v12, %v1940_v45 }
 0x4f7   : > { %v2071_v21 = vmin.f32 %v4459_v25, %v4462_v23  ;;  %v4469_v17 = vsel %vm1984_vm14, inf, %v4276_v14  ;;  %v4472_v27 = vsel %vm1985_vm15, inf, %v4279_v12 }
 0x4f8   : > { %v2050_v57 = vmin.f32 %v4469_v17, %v4472_v27 }
 0x4f9   : > { %2072 = vmin.xlane.f32.xlu0 %v2071_v21 }
 0x4fa   : > { %2051 = vmin.xlane.f32.xlu2 %v2050_v57 }
 0x4fd   : > { %v1964_v28 = vpop.xlane.xlu0 %1963 }
 0x4fe   : > { %vm2000_vm0 = vcmp.eq.f32.partialorder %v4297_v60, %v1964_v28  ;;  %vm2001_vm2 = vcmp.eq.f32.partialorder %v4300_v9, %v1964_v28  ;;  %v1943_v48 = vpop.xlane.xlu2 %1942 }
 0x4ff   : > { %v4479_v53 = vsel %vm2000_vm0, inf, %v4297_v60  ;;  %v4482_v14 = vsel %vm2001_vm2, inf, %v4300_v9  ;;  %vm1986_vm4 = vcmp.eq.f32.partialorder %v4303_v35, %v1943_v48  ;;  %vm1987_vm1 = vcmp.eq.f32.partialorder %v4308_v55, %v1943_v48 }
 0x500   : > { %v2074_v12 = vmin.f32 %v4479_v53, %v4482_v14  ;;  %v4489_v6 = vsel %vm1986_vm4, inf, %v4303_v35  ;;  %v4492_v4 = vsel %vm1987_vm1, inf, %v4308_v55  ;;  %v1967_v26 = vpop.xlane.xlu1 %1966 }
 0x501   : > { %v2053_v60 = vmin.f32 %v4489_v6, %v4492_v4  ;;  %vm2002_vm6 = vcmp.eq.f32.partialorder %v4317_v58, %v1967_v26  ;;  %vm2003_vm3 = vcmp.eq.f32.partialorder %v4320_v11, %v1967_v26 }
 0x502   : > { %v4499_v9 = vsel %vm2002_vm6, inf, %v4317_v58  ;;  %v4502_v18 = vsel %vm2003_vm3, inf, %v4320_v11  ;;  %2075 = vmin.xlane.f32.xlu1 %v2074_v12 }
 0x503   : > { %v2077_v35 = vmin.f32 %v4499_v9, %v4502_v18  ;;  %2054 = vmin.xlane.f32.xlu0 %v2053_v60 }
 0x505   : > { %2078 = vmin.xlane.f32.xlu2 %v2077_v35 }
 0x506   : > { %v1946_v55 = vpop.xlane.xlu0 %1945  ;;  %v1970_v63 = vpop.xlane.xlu2 %1969 }
 0x507   : > { %vm1988_vm7 = vcmp.eq.f32.partialorder %v4341_v10, %v1946_v55  ;;  %vm1989_vm8 = vcmp.eq.f32.partialorder %v4344_v36, %v1946_v55  ;;  %vm2004_vm5 = vcmp.eq.f32.partialorder %v4335_v59, %v1970_v63  ;;  %vm2005_vm9 = vcmp.eq.f32.partialorder %v4338_v50, %v1970_v63 }
 0x508   : > { %v4511_v58 = vsel %vm1988_vm7, inf, %v4341_v10  ;;  %v4514_v11 = vsel %vm1989_vm8, inf, %v4344_v36  ;;  %v4517_v62 = vsel %vm2004_vm5, inf, %v4335_v59  ;;  %v4520_v7 = vsel %vm2005_vm9, inf, %v4338_v50 }
 0x509   : > { %v2056_v39 = vmin.f32 %v4511_v58, %v4514_v11  ;;  %v2080_v51 = vmin.f32 %v4517_v62, %v4520_v7 }
 0x50b   : > { %2057 = vmin.xlane.f32.xlu1 %v2056_v39  ;;  %2081 = vmin.xlane.f32.xlu0 %v2080_v51 }
 0x50e   : > { %v1952_v31 = vpop.xlane.xlu2 %1951  ;;  %v1949_v10 = vpop.xlane.xlu1 %1948 }
 0x50f   : > { %vm1992_vm10 = vcmp.eq.f32.partialorder %v4360_v24, %v1952_v31  ;;  %vm1993_vm11 = vcmp.eq.f32.partialorder %v4363_v37, %v1952_v31  ;;  %vm1990_vm12 = vcmp.eq.f32.partialorder %v4366_v46, %v1949_v10  ;;  %vm1991_vm13 = vcmp.eq.f32.partialorder %v4369_v42, %v1949_v10 }
 0x510   : > { %v4531_v59 = vsel %vm1992_vm10, inf, %v4360_v24  ;;  %v4534_v50 = vsel %vm1993_vm11, inf, %v4363_v37  ;;  %v4537_v36 = vsel %vm1990_vm12, inf, %v4366_v46  ;;  %v4540_v0 = vsel %vm1991_vm13, inf, %v4369_v42 }
 0x511   : > { %v2062_v15 = vmin.f32 %v4531_v59, %v4534_v50  ;;  %v2059_v20 = vmin.f32 %v4537_v36, %v4540_v0 }
 0x513   : > { %2063 = vmin.xlane.f32.xlu0 %v2062_v15  ;;  %2060 = vmin.xlane.f32.xlu2 %v2059_v20 }
 0x516   : > { %v1976_v47 = vpop.xlane.xlu1 %1975 }
 0x517   : > { %vm2008_vm14 = vcmp.eq.f32.partialorder %v4382_v3, %v1976_v47  ;;  %vm2009_vm15 = vcmp.eq.f32.partialorder %v4385_v33, %v1976_v47 }
 0x518   : > { %v4549_v24 = vsel %vm2008_vm14, inf, %v4382_v3  ;;  %v4552_v37 = vsel %vm2009_vm15, inf, %v4385_v33 }
 0x519   : > { %v2086_v46 = vmin.f32 %v4549_v24, %v4552_v37 }
 0x51b   : > { %2087 = vmin.xlane.f32.xlu2 %v2086_v46 }
 0x51c   : > { %v1979_v42 = vpop.xlane.xlu2 %1978 }
 0x51d   : > { %vm2010_vm0 = vcmp.eq.f32.partialorder %v4399_v43, %v1979_v42  ;;  %vm2011_vm2 = vcmp.eq.f32.partialorder %v4402_v49, %v1979_v42  ;;  %v1973_v22 = vpop.xlane.xlu0 %1972 }
 0x51e   : > { %v4559_v1 = vsel %vm2010_vm0, inf, %v4399_v43  ;;  %v4562_v19 = vsel %vm2011_vm2, inf, %v4402_v49  ;;  %vm2006_vm6 = vcmp.eq.f32.partialorder %v4407_v32, %v1973_v22  ;;  %vm2007_vm3 = vcmp.eq.f32.partialorder %v4410_v16, %v1973_v22 }
 0x51f   : > { %v2089_v3 = vmin.f32 %v4559_v1, %v4562_v19  ;;  %v4579_v49 = vsel %vm2006_vm6, inf, %v4407_v32  ;;  %v4582_v5 = vsel %vm2007_vm3, inf, %v4410_v16 }
 0x521   : > { %2090 = vmin.xlane.f32.xlu0 %v2089_v3 }
 0x525   : > { %v1955_v33 = vpop.xlane.xlu0 %1954 }
 0x526   : > { %vm1994_vm4 = vcmp.eq.f32.partialorder %v4419_v61, %v1955_v33  ;;  %vm1995_vm1 = vcmp.eq.f32.partialorder %v4422_v29, %v1955_v33 }
 0x527   : > { %v4569_v54 = vsel %vm1994_vm4, inf, %v4419_v61  ;;  %v4572_v41 = vsel %vm1995_vm1, inf, %v4422_v29  ;;  %v2083_v61 = vmin.f32 %v4579_v49, %v4582_v5 }
 0x528   : > { %v2065_v43 = vmin.f32 %v4569_v54, %v4572_v41 }
 0x52a   : > { %2066 = vmin.xlane.f32.xlu1 %v2065_v43 }
 0x532   : > { %2084 = vmin.xlane.f32.xlu1 %v2083_v61 }
 0x555   : > { %v2046_v29 = vpop.xlane.xlu0 %2045 }
 0x556   : > { %vm2092_vm7 = vcmp.eq.f32.partialorder %v4429_v30, %v2046_v29  ;;  %vm2093_vm8 = vcmp.eq.f32.partialorder %v4432_v2, %v2046_v29 }
 0x557   : > { %v2124_v38 = vsel %vm2092_vm7, %v2901_v8, 256  ;;  %v2125_v56 = vsel %vm2093_vm8, %v2917_v13, 256 }
 0x558   : > { %vm2156_vm5 = vcmp.lt.s32.totalorder %v2124_v38, %v2125_v56 }
 0x559   : > { %v4590_v45 = vsel %vm2156_vm5, %v2124_v38, %v2125_v56 }
 0x55a   : > { %v2159_v32 = vshra.s32 %v4590_v45, 16 }
 0x55c   : > { %v2070_v16 = vpop.xlane.xlu2 %2069  ;;  %v4593_v21 = vcvt.s32.f32 %v2159_v32 }
 0x55d   : > { %vm2108_vm9 = vcmp.eq.f32.partialorder %v4439_v44, %v2070_v16  ;;  %vm2109_vm10 = vcmp.eq.f32.partialorder %v4442_v52, %v2070_v16 }
 0x55e   : > { %v2140_v30 = vsel %vm2108_vm9, %v2901_v8, 256  ;;  %v2141_v2 = vsel %vm2109_vm10, %v2917_v13, 256  ;;  %2162 = vmin.xlane.f32.xlu1 %v4593_v21 }
 0x55f   : > { %vm2284_vm11 = vcmp.lt.s32.totalorder %v2140_v30, %v2141_v2 }
 0x560   : > { %v4600_v57 = vsel %vm2284_vm11, %v2140_v30, %v2141_v2 }
 0x561   : > { %v2287_v28 = vshra.s32 %v4600_v57, 16 }
 0x563   : > { %v4603_v48 = vcvt.s32.f32 %v2287_v28 }
 0x564   : > { %v2049_v12 = vpop.xlane.xlu1 %2048 }
 0x565   : > { %vm2094_vm12 = vcmp.eq.f32.partialorder %v4449_v34, %v2049_v12  ;;  %vm2095_vm13 = vcmp.eq.f32.partialorder %v4452_v40, %v2049_v12  ;;  %2290 = vmin.xlane.f32.xlu2 %v4603_v48 }
 0x566   : > { %v2126_v44 = vsel %vm2094_vm12, %v2901_v8, 256  ;;  %v2127_v52 = vsel %vm2095_vm13, %v2917_v13, 256 }
 0x567   : > { %vm2172_vm14 = vcmp.lt.s32.totalorder %v2126_v44, %v2127_v52 }
 0x568   : > { %v4610_v26 = vsel %vm2172_vm14, %v2126_v44, %v2127_v52 }
 0x569   : > { %v2175_v60 = vshra.s32 %v4610_v26, 16 }
 0x56b   : > { %v4613_v35 = vcvt.s32.f32 %v2175_v60 }
 0x56c   : > { %v2073_v55 = vpop.xlane.xlu0 %2072 }
 0x56d   : > { %vm2110_vm15 = vcmp.eq.f32.partialorder %v4459_v25, %v2073_v55  ;;  %vm2111_vm0 = vcmp.eq.f32.partialorder %v4462_v23, %v2073_v55  ;;  %v2052_v34 = vpop.xlane.xlu2 %2051  ;;  %2178 = vmin.xlane.f32.xlu0 %v4613_v35 }
 0x56e   : > { %v2142_v40 = vsel %vm2110_vm15, %v2901_v8, 256  ;;  %v2143_v63 = vsel %vm2111_vm0, %v2917_v13, 256  ;;  %vm2096_vm2 = vcmp.eq.f32.partialorder %v4469_v17, %v2052_v34  ;;  %vm2097_vm4 = vcmp.eq.f32.partialorder %v4472_v27, %v2052_v34 }
 0x56f   : > { %vm2300_vm1 = vcmp.lt.s32.totalorder %v2142_v40, %v2143_v63  ;;  %v2128_v39 = vsel %vm2096_vm2, %v2901_v8, 256  ;;  %v2129_v51 = vsel %vm2097_vm4, %v2917_v13, 256 }
 0x570   : > { %v4624_v31 = vsel %vm2300_vm1, %v2142_v40, %v2143_v63  ;;  %vm2188_vm6 = vcmp.lt.s32.totalorder %v2128_v39, %v2129_v51 }
 0x571   : > { %v4626_v25 = vsel %vm2188_vm6, %v2128_v39, %v2129_v51  ;;  %v2303_v23 = vshra.s32 %v4624_v31, 16 }
 0x572   : > { %v2191_v10 = vshra.s32 %v4626_v25, 16 }
 0x573   : > { %v4630_v15 = vcvt.s32.f32 %v2303_v23 }
 0x574   : > { %v4632_v20 = vcvt.s32.f32 %v2191_v10 }
 0x575   : > { %v2076_v17 = vpop.xlane.xlu1 %2075  ;;  %2306 = vmin.xlane.f32.xlu0 %v4630_v15 }
 0x576   : > { %v2055_v27 = vpop.xlane.xlu0 %2054  ;;  %vm2112_vm3 = vcmp.eq.f32.partialorder %v4479_v53, %v2076_v17  ;;  %vm2113_vm7 = vcmp.eq.f32.partialorder %v4482_v14, %v2076_v17  ;;  %2194 = vmin.xlane.f32.xlu2 %v4632_v20 }
 0x577   : > { %vm2098_vm8 = vcmp.eq.f32.partialorder %v4489_v6, %v2055_v27  ;;  %vm2099_vm5 = vcmp.eq.f32.partialorder %v4492_v4, %v2055_v27  ;;  %v2144_v47 = vsel %vm2112_vm3, %v2901_v8, 256  ;;  %v2145_v46 = vsel %vm2113_vm7, %v2917_v13, 256 }
 0x578   : > { %v2130_v42 = vsel %vm2098_vm8, %v2901_v8, 256  ;;  %v2131_v22 = vsel %vm2099_vm5, %v2917_v13, 256  ;;  %vm2316_vm9 = vcmp.lt.s32.totalorder %v2144_v47, %v2145_v46  ;;  %v2079_v3 = vpop.xlane.xlu2 %2078 }
 0x579   : > { %vm2204_vm10 = vcmp.lt.s32.totalorder %v2130_v42, %v2131_v22  ;;  %v4644_v53 = vsel %vm2316_vm9, %v2144_v47, %v2145_v46  ;;  %vm2114_vm11 = vcmp.eq.f32.partialorder %v4499_v9, %v2079_v3  ;;  %vm2115_vm12 = vcmp.eq.f32.partialorder %v4502_v18, %v2079_v3 }
 0x57a   : > { %v4648_v14 = vsel %vm2204_vm10, %v2130_v42, %v2131_v22  ;;  %v2146_v6 = vsel %vm2114_vm11, %v2901_v8, 256  ;;  %v2147_v4 = vsel %vm2115_vm12, %v2917_v13, 256  ;;  %v2319_v33 = vshra.s32 %v4644_v53, 16 }
 0x57b   : > { %vm2332_vm13 = vcmp.lt.s32.totalorder %v2146_v6, %v2147_v4  ;;  %v2207_v43 = vshra.s32 %v4648_v14, 16 }
 0x57c   : > { %v4654_v61 = vsel %vm2332_vm13, %v2146_v6, %v2147_v4  ;;  %v4656_v29 = vcvt.s32.f32 %v2319_v33 }
 0x57d   : > { %v4658_v38 = vcvt.s32.f32 %v2207_v43  ;;  %v2335_v9 = vshra.s32 %v4654_v61, 16 }
 0x57e   : > { %2322 = vmin.xlane.f32.xlu1 %v4656_v29  ;;  %v2082_v18 = vpop.xlane.xlu0 %2081  ;;  %v2058_v56 = vpop.xlane.xlu1 %2057 }
 0x57f   : > { %2210 = vmin.xlane.f32.xlu0 %v4658_v38  ;;  %vm2116_vm14 = vcmp.eq.f32.partialorder %v4517_v62, %v2082_v18  ;;  %vm2117_vm15 = vcmp.eq.f32.partialorder %v4520_v7, %v2082_v18  ;;  %vm2100_vm0 = vcmp.eq.f32.partialorder %v4511_v58, %v2058_v56  ;;  %vm2101_vm2 = vcmp.eq.f32.partialorder %v4514_v11, %v2058_v56 }
 0x580   : > { %v2148_v32 = vsel %vm2116_vm14, %v2901_v8, 256  ;;  %v2149_v16 = vsel %vm2117_vm15, %v2917_v13, 256  ;;  %v2132_v30 = vsel %vm2100_vm0, %v2901_v8, 256  ;;  %v2133_v2 = vsel %vm2101_vm2, %v2917_v13, 256 }
 0x581   : > { %vm2348_vm4 = vcmp.lt.s32.totalorder %v2148_v32, %v2149_v16  ;;  %vm2220_vm1 = vcmp.lt.s32.totalorder %v2132_v30, %v2133_v2  ;;  %v4671_v28 = vcvt.s32.f32 %v2335_v9 }
 0x582   : > { %v4673_v12 = vsel %vm2348_vm4, %v2148_v32, %v2149_v16  ;;  %v4675_v62 = vsel %vm2220_vm1, %v2132_v30, %v2133_v2  ;;  %v2286_v30 = vand.u32 65535, %v4600_v57  ;;  %v2302_v57 = vand.u32 65535, %v4624_v31 }
 0x583   : > { %2338 = vmin.xlane.f32.xlu2 %v4671_v28  ;;  %v2351_v58 = vshra.s32 %v4673_v12, 16  ;;  %v2223_v11 = vshra.s32 %v4675_v62, 16  ;;  %v2318_v31 = vand.u32 65535, %v4644_v53 }
 0x585   : > { %v4680_v7 = vcvt.s32.f32 %v2351_v58  ;;  %v4682_v44 = vcvt.s32.f32 %v2223_v11  ;;  %v2288_v58 = vcvt.s32.f32 %v2286_v30 }
 0x586   : > { %v2064_v52 = vpop.xlane.xlu0 %2063  ;;  %v2061_v60 = vpop.xlane.xlu2 %2060 }
 0x587   : > { %vm2104_vm6 = vcmp.eq.f32.partialorder %v4531_v59, %v2064_v52  ;;  %vm2105_vm3 = vcmp.eq.f32.partialorder %v4534_v50, %v2064_v52  ;;  %vm2102_vm7 = vcmp.eq.f32.partialorder %v4537_v36, %v2061_v60  ;;  %vm2103_vm8 = vcmp.eq.f32.partialorder %v4540_v0, %v2061_v60  ;;  %2354 = vmin.xlane.f32.xlu0 %v4680_v7 }
 0x588   : > { %v2136_v55 = vsel %vm2104_vm6, %v2901_v8, 256  ;;  %v2137_v34 = vsel %vm2105_vm3, %v2917_v13, 256  ;;  %v2134_v40 = vsel %vm2102_vm7, %v2901_v8, 256  ;;  %v2135_v63 = vsel %vm2103_vm8, %v2917_v13, 256  ;;  %2226 = vmin.xlane.f32.xlu1 %v4682_v44 }
 0x589   : > { %vm2252_vm5 = vcmp.lt.s32.totalorder %v2136_v55, %v2137_v34  ;;  %vm2236_vm9 = vcmp.lt.s32.totalorder %v2134_v40, %v2135_v63 }
 0x58a   : > { %v4694_v59 = vsel %vm2252_vm5, %v2136_v55, %v2137_v34  ;;  %v4696_v50 = vsel %vm2236_vm9, %v2134_v40, %v2135_v63  ;;  %v2190_v55 = vand.u32 65535, %v4626_v25  ;;  %v2304_v40 = vcvt.s32.f32 %v2302_v57 }
 0x58b   : > { %v2239_v36 = vshra.s32 %v4696_v50, 16  ;;  %v2255_v0 = vshra.s32 %v4694_v59, 16  ;;  %v2206_v25 = vand.u32 65535, %v4648_v14 }
 0x58d   : > { %v4700_v39 = vcvt.s32.f32 %v2239_v36  ;;  %v4702_v51 = vcvt.s32.f32 %v2255_v0  ;;  %v2320_v0 = vcvt.s32.f32 %v2318_v31 }
 0x58e   : > { %v2088_v23 = vpop.xlane.xlu2 %2087 }
 0x58f   : > { %vm2120_vm10 = vcmp.eq.f32.partialorder %v4549_v24, %v2088_v23  ;;  %vm2121_vm11 = vcmp.eq.f32.partialorder %v4552_v37, %v2088_v23  ;;  %2242 = vmin.xlane.f32.xlu2 %v4700_v39  ;;  %2258 = vmin.xlane.f32.xlu0 %v4702_v51 }
 0x590   : > { %v2152_v10 = vsel %vm2120_vm10, %v2901_v8, 256  ;;  %v2153_v17 = vsel %vm2121_vm11, %v2917_v13, 256 }
 0x591   : > { %vm2380_vm12 = vcmp.lt.s32.totalorder %v2152_v10, %v2153_v17 }
 0x592   : > { %v4710_v27 = vsel %vm2380_vm12, %v2152_v10, %v2153_v17  ;;  %v2334_v10 = vand.u32 65535, %v4654_v61 }
 0x593   : > { %v2383_v47 = vshra.s32 %v4710_v27, 16 }
 0x594   : > { %v2091_v46 = vpop.xlane.xlu0 %2090  ;;  %v2336_v14 = vcvt.s32.f32 %v2334_v10 }
 0x595   : > { %vm2122_vm13 = vcmp.eq.f32.partialorder %v4559_v1, %v2091_v46  ;;  %vm2123_vm14 = vcmp.eq.f32.partialorder %v4562_v19, %v2091_v46  ;;  %v4715_v24 = vcvt.s32.f32 %v2383_v47  ;;  %v2350_v47 = vand.u32 65535, %v4673_v12 }
 0x596   : > { %v2154_v37 = vsel %vm2122_vm13, %v2901_v8, 256  ;;  %v2155_v42 = vsel %vm2123_vm14, %v2917_v13, 256 }
 0x597   : > { %vm2396_vm15 = vcmp.lt.s32.totalorder %v2154_v37, %v2155_v42  ;;  %2386 = vmin.xlane.f32.xlu2 %v4715_v24 }
 0x598   : > { %v4720_v22 = vsel %vm2396_vm15, %v2154_v37, %v2155_v42  ;;  %v2352_v37 = vcvt.s32.f32 %v2350_v47 }
 0x599   : > { %v2399_v3 = vshra.s32 %v4720_v22, 16 }
 0x59b   : > { %v4723_v6 = vcvt.s32.f32 %v2399_v3 }
 0x59d   : > { %2402 = vmin.xlane.f32.xlu0 %v4723_v6  ;;  %v2067_v1 = vpop.xlane.xlu1 %2066 }
 0x59e   : > { %vm2106_vm0 = vcmp.eq.f32.partialorder %v4569_v54, %v2067_v1  ;;  %vm2107_vm2 = vcmp.eq.f32.partialorder %v4572_v41, %v2067_v1 }
 0x59f   : > { %v2138_v4 = vsel %vm2106_vm0, %v2901_v8, 256  ;;  %v2139_v33 = vsel %vm2107_vm2, %v2917_v13, 256 }
 0x5a0   : > { %vm2268_vm3 = vcmp.lt.s32.totalorder %v2138_v4, %v2139_v33 }
 0x5a1   : > { %v4739_v56 = vsel %vm2268_vm3, %v2138_v4, %v2139_v33 }
 0x5a5   : > { %v2085_v19 = vpop.xlane.xlu1 %2084 }
 0x5a6   : > { %vm2118_vm4 = vcmp.eq.f32.partialorder %v4579_v49, %v2085_v19  ;;  %vm2119_vm1 = vcmp.eq.f32.partialorder %v4582_v5, %v2085_v19  ;;  %v2271_v49 = vshra.s32 %v4739_v56, 16 }
 0x5a7   : > { %v2150_v43 = vsel %vm2118_vm4, %v2901_v8, 256  ;;  %v2151_v9 = vsel %vm2119_vm1, %v2917_v13, 256  ;;  %v2158_v8 = vand.u32 65535, %v4590_v45  ;;  %v2174_v45 = vand.u32 65535, %v4610_v26 }
 0x5a8   : > { %vm2364_vm6 = vcmp.lt.s32.totalorder %v2150_v43, %v2151_v9  ;;  %v4743_v5 = vcvt.s32.f32 %v2271_v49  ;;  %v2192_v26 = vcvt.s32.f32 %v2190_v55 }
 0x5a9   : > { %v4734_v18 = vsel %vm2364_vm6, %v2150_v43, %v2151_v9  ;;  %v2160_v32 = vcvt.s32.f32 %v2158_v8  ;;  %v2176_v60 = vcvt.s32.f32 %v2174_v45 }
 0x5aa   : > { %v2367_v54 = vshra.s32 %v4734_v18, 16 }
 0x5ac   : > { %v4737_v41 = vcvt.s32.f32 %v2367_v54  ;;  %v2398_v54 = vand.u32 65535, %v4720_v22  ;;  %v2366_v22 = vand.u32 65535, %v4734_v18 }
 0x5ae   : > { %2370 = vmin.xlane.f32.xlu1 %v4737_v41  ;;  %v2400_v49 = vcvt.s32.f32 %v2398_v54 }
 0x5b6   : > { %2274 = vmin.xlane.f32.xlu1 %v4743_v5 }
 0x5d1   : > { %v4747_v13 = vpop.xlane.xlu1 %2162 }
 0x5d2   : > { %vm2164_vm7 = vcmp.eq.f32.partialorder %v4593_v21, %v4747_v13 }
 0x5d3   : > { %v2165_v16 = vsel %vm2164_vm7, %v2160_v32, inf  ;;  %vm2412_vm7 = vcmask 31768  }
 0x5d4   : > { %2166 = vmin.xlane.f32.xlu2 %v2165_v16 }
 0x5d8   : > { %v4752_v2 = vpop.xlane.xlu2 %2290 }
 0x5d9   : > { %vm2292_vm8 = vcmp.eq.f32.partialorder %v4603_v48, %v4752_v2 }
 0x5da   : > { %v2293_v11 = vsel %vm2292_vm8, %v2288_v58, inf }
 0x5db   : > { %2294 = vmin.xlane.f32.xlu1 %v2293_v11 }
 0x5e0   : > { %v4757_v52 = vpop.xlane.xlu0 %2178 }
 0x5e1   : > { %vm2180_vm5 = vcmp.eq.f32.partialorder %v4613_v35, %v4757_v52  ;;  %v2185_v55 = vcvt.f32.s32 %v4757_v52 }
 0x5e2   : > { %v2181_v21 = vsel %vm2180_vm5, %v2176_v60, inf }
 0x5e3   : > { %2182 = vmin.xlane.f32.xlu1 %v2181_v21 }
 0x5e8   : > { %v4763_v34 = vpop.xlane.xlu0 %2306 }
 0x5e9   : > { %v4765_v48 = vpop.xlane.xlu2 %2194  ;;  %vm2308_vm9 = vcmp.eq.f32.partialorder %v4630_v15, %v4763_v34  ;;  %v2208_v15 = vcvt.s32.f32 %v2206_v25 }
 0x5ea   : > { %vm2196_vm10 = vcmp.eq.f32.partialorder %v4632_v20, %v4765_v48  ;;  %v2309_v63 = vsel %vm2308_vm9, %v2304_v40, inf  ;;  %v2186_v40 = vshll.u32 %v2185_v55, 16 }
 0x5eb   : > { %v2197_v35 = vsel %vm2196_vm10, %v2192_v26, inf  ;;  %2310 = vmin.xlane.f32.xlu2 %v2309_v63 }
 0x5ec   : > { %2198 = vmin.xlane.f32.xlu1 %v2197_v35  ;;  %v2313_v35 = vcvt.f32.s32 %v4763_v34 }
 0x5ee   : > { %v2314_v25 = vshll.u32 %v2313_v35, 16 }
 0x5f1   : > { %v4773_v36 = vpop.xlane.xlu1 %2322 }
 0x5f2   : > { %v4775_v23 = vpop.xlane.xlu0 %2210  ;;  %vm2324_vm11 = vcmp.eq.f32.partialorder %v4656_v29, %v4773_v36  ;;  %v2222_v29 = vand.u32 65535, %v4675_v62  ;;  %v2254_v62 = vand.u32 65535, %v4694_v59 }
 0x5f3   : > { %vm2212_vm12 = vcmp.eq.f32.partialorder %v4658_v38, %v4775_v23  ;;  %v2325_v20 = vsel %vm2324_vm11, %v2320_v0, inf  ;;  %v2217_v34 = vcvt.f32.s32 %v4775_v23 }
 0x5f4   : > { %v2213_v17 = vsel %vm2212_vm12, %v2208_v15, inf  ;;  %2326 = vmin.xlane.f32.xlu0 %v2325_v20  ;;  %v2224_v42 = vcvt.s32.f32 %v2222_v29 }
 0x5f5   : > { %2214 = vmin.xlane.f32.xlu2 %v2213_v17 }
 0x5f6   : > { %v4782_v53 = vpop.xlane.xlu2 %2338 }
 0x5f7   : > { %vm2340_vm13 = vcmp.eq.f32.partialorder %v4671_v28, %v4782_v53  ;;  %v2238_v28 = vand.u32 65535, %v4696_v50  ;;  %v2382_v50 = vand.u32 65535, %v4710_v27  ;;  %v2270_v27 = vand.u32 65535, %v4739_v56 }
 0x5f8   : > { %v2341_v46 = vsel %vm2340_vm13, %v2336_v14, inf  ;;  %v2169_v56 = vcvt.f32.s32 %v4747_v13  ;;  %v2329_v14 = vcvt.f32.s32 %v4773_v36 }
 0x5f9   : > { %2342 = vmin.xlane.f32.xlu1 %v2341_v46  ;;  %v2240_v4 = vcvt.s32.f32 %v2238_v28  ;;  %v2384_v59 = vcvt.s32.f32 %v2382_v50  ;;  %v2272_v16 = vcvt.s32.f32 %v2270_v27 }
 0x5fa   : > { %v4788_v61 = vpop.xlane.xlu0 %2354  ;;  %v2170_v11 = vshll.u32 %v2169_v56, 16 }
 0x5fb   : > { %vm2356_vm14 = vcmp.eq.f32.partialorder %v4680_v7, %v4788_v61  ;;  %v4792_v38 = vpop.xlane.xlu1 %2226  ;;  %v2256_v7 = vcvt.s32.f32 %v2254_v62 }
 0x5fc   : > { %vm2228_vm15 = vcmp.eq.f32.partialorder %v4682_v44, %v4792_v38  ;;  %v2357_v12 = vsel %vm2356_vm14, %v2352_v37, inf  ;;  %v2218_v37 = vshll.u32 %v2217_v34, 16 }
 0x5fd   : > { %2358 = vmin.xlane.f32.xlu2 %v2357_v12  ;;  %v2229_v3 = vsel %vm2228_vm15, %v2224_v42, inf  ;;  %v2345_v42 = vcvt.f32.s32 %v4782_v53 }
 0x5fe   : > { %2230 = vmin.xlane.f32.xlu0 %v2229_v3 }
 0x5ff   : > { %v2346_v36 = vshll.u32 %v2345_v42, 16 }
 0x602   : > { %v4798_v1 = vpop.xlane.xlu2 %2242  ;;  %v4800_v19 = vpop.xlane.xlu0 %2258 }
 0x603   : > { %vm2244_vm0 = vcmp.eq.f32.partialorder %v4700_v39, %v4798_v1  ;;  %vm2260_vm2 = vcmp.eq.f32.partialorder %v4702_v51, %v4800_v19  ;;  %v2265_v27 = vcvt.f32.s32 %v4800_v19 }
 0x604   : > { %v2245_v44 = vsel %vm2244_vm0, %v2240_v4, inf  ;;  %v2261_v33 = vsel %vm2260_vm2, %v2256_v7, inf  ;;  %v2361_v4 = vcvt.f32.s32 %v4788_v61  ;;  %v2233_v7 = vcvt.f32.s32 %v4792_v38 }
 0x605   : > { %2246 = vmin.xlane.f32.xlu1 %v2245_v44  ;;  %2262 = vmin.xlane.f32.xlu2 %v2261_v33 }
 0x606   : > { %v2362_v50 = vshll.u32 %v2361_v4, 16 }
 0x60a   : > { %v4807_v43 = vpop.xlane.xlu2 %2386 }
 0x60b   : > { %vm2388_vm4 = vcmp.eq.f32.partialorder %v4715_v24, %v4807_v43 }
 0x60c   : > { %v2389_v9 = vsel %vm2388_vm4, %v2384_v59, inf }
 0x60d   : > { %2390 = vmin.xlane.f32.xlu1 %v2389_v9  ;;  %v2234_v9 = vshll.u32 %v2233_v7, 16 }
 0x610   : > { %v4812_v39 = vpop.xlane.xlu0 %2402 }
 0x611   : > { %vm2404_vm1 = vcmp.eq.f32.partialorder %v4723_v6, %v4812_v39  ;;  %v2368_v6 = vcvt.s32.f32 %v2366_v22  ;;  %v2266_v22 = vshll.u32 %v2265_v27, 16 }
 0x612   : > { %v2405_v51 = vsel %vm2404_vm1, %v2400_v49, inf }
 0x613   : > { %2406 = vmin.xlane.f32.xlu2 %v2405_v51  ;;  %v2249_v51 = vcvt.f32.s32 %v4798_v1 }
 0x621   : > { %v4816_v8 = vpop.xlane.xlu1 %2370 }
 0x622   : > { %vm2372_vm3 = vcmp.eq.f32.partialorder %v4737_v41, %v4816_v8 }
 0x623   : > { %v2373_v30 = vsel %vm2372_vm3, %v2368_v6, inf }
 0x629   : > { %v4819_v32 = vpop.xlane.xlu1 %2274 }
 0x62a   : > { %vm2276_vm6 = vcmp.eq.f32.partialorder %v4743_v5, %v4819_v32  ;;  %v2297_v5 = vcvt.f32.s32 %v4752_v2  ;;  %v2201_v2 = vcvt.f32.s32 %v4765_v48  ;;  %v2330_v48 = vshll.u32 %v2329_v14, 16 }
 0x62b   : > { %v2277_v24 = vsel %vm2276_vm6, %v2272_v16, inf }
 0x62c   : > { %2278 = vmin.xlane.f32.xlu0 %v2277_v24  ;;  %v2298_v21 = vshll.u32 %v2297_v5, 16  ;;  %v2202_v10 = vshll.u32 %v2201_v2, 16  ;;  %v2250_v24 = vshll.u32 %v2249_v51, 16 }
 0x634   : > { %2374 = vmin.xlane.f32.xlu0 %v2373_v30 }
 0x647   : > { %v2167_v58 = vpop.xlane.xlu2 %2166 }
 0x648   : > { %v2168_v45 = vcvt.f32.s32 %v2167_v58 }
 0x64a   : > { %v2171_v60 = vadd.s32 %v2170_v11, %v2168_v45  ;;  %v2393_v11 = vcvt.f32.s32 %v4807_v43  ;;  %v2281_v43 = vcvt.f32.s32 %v4819_v32 }
 0x64c   : > { %2413 = vst.msk [vmem:[%s2855_s12] sm:$0xff] %vm2412_vm7, %v2171_v60  ;;  %v2394_v19 = vshll.u32 %v2393_v11, 16  ;;  %v2409_v60 = vcvt.f32.s32 %v4812_v39 }
 0x64e   : > { %v2295_v18 = vpop.xlane.xlu1 %2294 }
 0x64f   : > { %v2296_v57 = vcvt.f32.s32 %v2295_v18 }
 0x651   : > { %v2299_v41 = vadd.s32 %v2298_v21, %v2296_v57  ;;  %v2410_v21 = vshll.u32 %v2409_v60, 16 }
 0x653   : > { %2421 = vst.msk [vmem:[%s2855_s12 + $0x40] sm:$0xff] %vm2412_vm7, %v2299_v41 }
 0x656   : > { %v2183_v13 = vpop.xlane.xlu1 %2182 }
 0x657   : > { %v2184_v26 = vcvt.f32.s32 %v2183_v13  ;;  %v2282_v13 = vshll.u32 %v2281_v43, 16 }
 0x659   : > { %v2187_v63 = vadd.s32 %v2186_v40, %v2184_v26 }
 0x65b   : > { %2414 = vst.msk [vmem:[%s2855_s12 + $0x8] sm:$0xff] %vm2412_vm7, %v2187_v63  ;;  %v2377_v63 = vcvt.f32.s32 %v4816_v8 }
 0x65d   : > { %v2378_v35 = vshll.u32 %v2377_v63, 16 }
 0x65e   : > { %v2311_v31 = vpop.xlane.xlu2 %2310 }
 0x65f   : > { %v2312_v0 = vcvt.f32.s32 %v2311_v31  ;;  %v2199_v15 = vpop.xlane.xlu1 %2198 }
 0x660   : > { %v2200_v52 = vcvt.f32.s32 %v2199_v15 }
 0x661   : > { %v2315_v20 = vadd.s32 %v2314_v25, %v2312_v0 }
 0x662   : > { %v2203_v17 = vadd.s32 %v2202_v10, %v2200_v52 }
 0x663   : > { %2422 = vst.msk [vmem:[%s2855_s12 + $0x48] sm:$0xff] %vm2412_vm7, %v2315_v20 }
 0x664   : > { %2415 = vst.msk [vmem:[%s2855_s12 + $0x10] sm:$0xff] %vm2412_vm7, %v2203_v17 }
 0x667   : > { %v2327_v47 = vpop.xlane.xlu0 %2326 }
 0x668   : > { %v2215_v29 = vpop.xlane.xlu2 %2214  ;;  %v2328_v46 = vcvt.f32.s32 %v2327_v47 }
 0x669   : > { %v2216_v12 = vcvt.f32.s32 %v2215_v29 }
 0x66a   : > { %v2331_v3 = vadd.s32 %v2330_v48, %v2328_v46 }
 0x66b   : > { %v2219_v28 = vadd.s32 %v2218_v37, %v2216_v12 }
 0x66c   : > { %2423 = vst.msk [vmem:[%s2855_s12 + $0x50] sm:$0xff] %vm2412_vm7, %v2331_v3  ;;  %v2343_v62 = vpop.xlane.xlu1 %2342 }
 0x66d   : > { %2416 = vst.msk [vmem:[%s2855_s12 + $0x18] sm:$0xff] %vm2412_vm7, %v2219_v28  ;;  %v2344_v23 = vcvt.f32.s32 %v2343_v62 }
 0x66f   : > { %v2347_v44 = vadd.s32 %v2346_v36, %v2344_v23 }
 0x670   : > { %v2359_v33 = vpop.xlane.xlu2 %2358 }
 0x671   : > { %2424 = vst.msk [vmem:[%s2855_s12 + $0x58] sm:$0xff] %vm2412_vm7, %v2347_v44  ;;  %v2360_v53 = vcvt.f32.s32 %v2359_v33  ;;  %v2231_v59 = vpop.xlane.xlu0 %2230 }
 0x672   : > { %v2232_v54 = vcvt.f32.s32 %v2231_v59 }
 0x673   : > { %v2363_v49 = vadd.s32 %v2362_v50, %v2360_v53 }
 0x674   : > { %v2235_v61 = vadd.s32 %v2234_v9, %v2232_v54 }
 0x675   : > { %2425 = vst.msk [vmem:[%s2855_s12 + $0x60] sm:$0xff] %vm2412_vm7, %v2363_v49 }
 0x676   : > { %2417 = vst.msk [vmem:[%s2855_s12 + $0x20] sm:$0xff] %vm2412_vm7, %v2235_v61 }
 0x678   : > { %v2263_v38 = vpop.xlane.xlu2 %2262  ;;  %v2247_v16 = vpop.xlane.xlu1 %2246 }
 0x679   : > { %v2264_v6 = vcvt.f32.s32 %v2263_v38  ;;  %v2248_v30 = vcvt.f32.s32 %v2247_v16 }
 0x67b   : > { %v2267_v56 = vadd.s32 %v2266_v22, %v2264_v6  ;;  %v2251_v58 = vadd.s32 %v2250_v24, %v2248_v30 }
 0x67d   : > { %2419 = vst.msk [vmem:[%s2855_s12 + $0x30] sm:$0xff] %vm2412_vm7, %v2267_v56 }
 0x67e   : > { %2418 = vst.msk [vmem:[%s2855_s12 + $0x28] sm:$0xff] %vm2412_vm7, %v2251_v58 }
 0x680   : > { %v2391_v1 = vpop.xlane.xlu1 %2390 }
 0x681   : > { %v2392_v45 = vcvt.f32.s32 %v2391_v1 }
 0x683   : > { %v2395_v5 = vadd.s32 %v2394_v19, %v2392_v45 }
 0x685   : > { %2427 = vst.msk [vmem:[%s2855_s12 + $0x70] sm:$0xff] %vm2412_vm7, %v2395_v5 }
 0x686   : > { %v2407_v18 = vpop.xlane.xlu2 %2406 }
 0x687   : > { %v2408_v57 = vcvt.f32.s32 %v2407_v18 }
 0x689   : > { %v2411_v41 = vadd.s32 %v2410_v21, %v2408_v57 }
 0x68b   : > { %2428 = vst.msk [vmem:[%s2855_s12 + $0x78] sm:$0xff] %vm2412_vm7, %v2411_v41 }
 0x69f   : > { %v2279_v55 = vpop.xlane.xlu0 %2278 }
 0x6a0   : > { %v2280_v40 = vcvt.f32.s32 %v2279_v55 }
 0x6a2   : > { %v2283_v26 = vadd.s32 %v2282_v13, %v2280_v40 }
 0x6a4   : > { %2420 = vst.msk [vmem:[%s2855_s12 + $0x38] sm:$0xff] %vm2412_vm7, %v2283_v26 }
 0x6a7   : > { %v2375_v39 = vpop.xlane.xlu0 %2374 }
 0x6a8   : > { %v2376_v2 = vcvt.f32.s32 %v2375_v39 }
 0x6aa   : > { %v2379_v31 = vadd.s32 %v2378_v35, %v2376_v2 }
 0x6ac   : > { %2426 = vst.msk [vmem:[%s2855_s12 + $0x68] sm:$0xff] %vm2412_vm7, %v2379_v31 }
 0x6ad PF: > { %s14_s19 = sadd.s32 1, %s2700_s19   ;;  %s4960_s15 = smov %s2692_s17 }
 0x6ae   : > { %p11_p7 = scmp.ge.s32.totalorder %s14_s19, 6   ;;  %s4961_s16 = smov %s2696_s18 }
 0x6af   : > { %s4962_s17 = smov %s4965_s20  ;;  %s4963_s18 = smov %s4969_s21 }
 0x6b0   :  { %13 = sbr.rel (!%p11_p7) target bundleno = 3 (0x3), region = 75 }

</bundles_post_ra>
